<compile_context>
chip_gen: v5e
topology: v5e:2x2
jax: 0.10.0
libtpu: 0.0.40
codegen_flags: <defaults>
</compile_context>

<pallas_src>
import functools

import jax
import jax.numpy as jnp
from jax.experimental import pallas as pl
from jax.experimental.pallas import tpu as pltpu


def _round_up(a, b):
    return ((a + b - 1) // b) * b


def mlp_block_kernel(x_ref, g_ref, beta_ref, w1_ref, b1_ref, w2_ref, b2_ref,
                     o_ref, acc_ref, xn_ref, *, mm_dtype, fast_gelu):
    """Grid: (row_tiles, m_chunks). Axis 1 is the reduction over hidden dim M."""
    k = pl.program_id(1)
    last_k = pl.num_programs(1) - 1

    # --- First m-chunk: LayerNorm once per row tile, cached for all m-chunks ---
    @pl.when(k == 0)
    def _layernorm():
        x = x_ref[...].astype(jnp.float32)                  # (TM, E)
        g = g_ref[...].astype(jnp.float32)                  # (1, E)
        bt = beta_ref[...].astype(jnp.float32)              # (1, E)
        mean = jnp.mean(x, axis=-1, keepdims=True)
        var = jnp.mean((x - mean) * (x - mean), axis=-1, keepdims=True)
        xn = (x - mean) * jax.lax.rsqrt(var + 1e-5)
        xn_ref[...] = (xn * g + bt).astype(mm_dtype)

    # --- Linear 1 on this m-chunk: (TM, E) @ (E, MC) + (1, MC) ---
    h = jnp.dot(xn_ref[...], w1_ref[...], preferred_element_type=jnp.float32)
    h = h + b1_ref[...].astype(jnp.float32)

    # --- GELU ---
    if fast_gelu:
        # tanh-approx GELU computed in the matmul dtype (bf16 VALU + EUP tanh on
        # v6e/v7x). Only use when the model tolerates the approximation.
        hh = h.astype(mm_dtype)
        c = jnp.asarray(0.7978845608028654, mm_dtype)   # sqrt(2/pi)
        a = jnp.asarray(0.044715, mm_dtype)
        half = jnp.asarray(0.5, mm_dtype)
        one = jnp.asarray(1.0, mm_dtype)
        h_act = half * hh * (one + jnp.tanh(c * (hh + a * hh * hh * hh)))
    else:
        # Exact erf GELU in f32 (matches torch nn.GELU default; f32 VPU on v5e).
        inv_sqrt2 = jnp.float32(0.7071067811865476)
        h = 0.5 * h * (1.0 + jax.lax.erf(h * inv_sqrt2))
        h_act = h.astype(mm_dtype)

    # --- Dropout: identity in inference mode ---

    # --- Linear 2 partial product: (TM, MC) @ (MC, E), f32 accumulation ---
    partial = jnp.dot(h_act, w2_ref[...], preferred_element_type=jnp.float32)

    @pl.when(k == 0)
    def _acc_init():
        acc_ref[...] = partial          # no zero-init / no b2 broadcast on k==0

    @pl.when(k != 0)
    def _acc_add():
        acc_ref[...] += partial

    # --- Last m-chunk: add output bias once and write out ---
    @pl.when(k == last_k)
    def _store():
        o_ref[...] = (acc_ref[...] + b2_ref[...].astype(jnp.float32)).astype(o_ref.dtype)


def _vmem_bytes(row_tile, E, m_chunk, mm_itemsize, x_itemsize, out_itemsize):
    """Conservative VMEM estimate (double-buffered pipelined blocks)."""
    xb = row_tile * E * x_itemsize * 2            # x block, double-buffered
    ob = row_tile * E * out_itemsize * 2          # out block, double-buffered
    small = (3 * E + m_chunk) * 4 * 2             # gamma/beta/b2/b1 blocks
    wb = 2 * (E * m_chunk + m_chunk * E) * mm_itemsize   # w1/w2 blocks (2 bufs)
    acc = row_tile * E * 4                        # f32 accumulator scratch
    xn = row_tile * E * mm_itemsize               # cached LayerNorm scratch
    h_tmp = row_tile * m_chunk * (4 + mm_itemsize)  # f32 h + mm_dtype copy
    return xb + ob + small + wb + acc + xn + h_tmp


@functools.partial(jax.jit, static_argnames=("row_tile", "m_chunk", "mm_dtype",
                                             "out_dtype", "fast_gelu"))
def mlp_block(x, gamma, beta, w1, b1, w2, b2, *,
              row_tile=512, m_chunk=None, mm_dtype=jnp.bfloat16,
              out_dtype=None, fast_gelu=False):
    """x: (B, S, E) float32.  w1: (E, M) = W1.T, w2: (M, E) = W2.T. Returns (B, S, E)."""
    B, S, E = x.shape
    M = w1.shape[1]
    N = B * S
    out_dtype = x.dtype if out_dtype is None else out_dtype

    mm_itemsize = jnp.dtype(mm_dtype).itemsize
    x_itemsize = jnp.dtype(x.dtype).itemsize
    out_itemsize = jnp.dtype(out_dtype).itemsize

    # ---- per-generation VMEM budget (trace-time hardware query) ----
    try:
        vmem_capacity = int(pltpu.get_tpu_info().vmem_capacity_bytes)
    except Exception:
        vmem_capacity = 64 * 1024 * 1024          # conservative (v7x-sized) fallback
    vmem_limit = min(int(vmem_capacity * 0.85), 110 * 1024 * 1024)  # leave headroom
    budget = int(vmem_limit * 0.9)

    # ---- row tile (static; all shape math happens at trace time) ----
    n_aligned = _round_up(N, 8)
    row_tile = max(8, (min(row_tile, n_aligned) // 8) * 8)
    if row_tile >= n_aligned and n_aligned >= 16:
        # keep >= 2 row tiles so both v7x TensorCores get work on the parallel axis
        row_tile = _round_up(pl.cdiv(n_aligned, 2), 8)
    n_row_tiles = pl.cdiv(N, row_tile)
    N_pad = n_row_tiles * row_tile

    # ---- pad hidden dim M to a multiple of 128 (zeros are exactly neutral) ----
    M_pad = _round_up(M, 128)
    if M_pad != M:
        w1 = jnp.pad(w1, ((0, 0), (0, M_pad - M)))
        b1 = jnp.pad(b1, (0, M_pad - M))
        w2 = jnp.pad(w2, ((0, M_pad - M), (0, 0)))

    # ---- choose m_chunk: prefer fully VMEM-resident weights (m_chunk = M_pad) ----
    cap = None if m_chunk is None else max(128, m_chunk)
    candidates = [c for c in range(128, M_pad + 1, 128) if M_pad % c == 0]
    if cap is not None:
        candidates = [c for c in candidates if c <= cap] or [min(128, M_pad)]
    candidates = sorted(set(candidates), reverse=True) or [M_pad]
    chosen = None
    for c in candidates:
        if _vmem_bytes(row_tile, E, c, mm_itemsize, x_itemsize, out_itemsize) <= budget:
            chosen = c
            break
    m_chunk = chosen if chosen is not None else candidates[-1]
    n_m_chunks = M_pad // m_chunk
    resident = (n_m_chunks == 1)

    # ---- flatten + pad rows (padded rows are sliced off afterwards) ----
    x2d = x.reshape(N, E)
    if N_pad != N:
        x2d = jnp.pad(x2d, ((0, N_pad - N), (0, 0)))
    gamma2 = gamma.reshape(1, E)
    beta2 = beta.reshape(1, E)
    b1_2 = b1.reshape(1, M_pad)
    b2_2 = b2.reshape(1, E)
    w1c = w1.astype(mm_dtype)     # MXU operands; biases / LN params stay f32
    w2c = w2.astype(mm_dtype)

    # Weights are read once when resident (block index never changes), otherwise
    # once per row tile.
    weight_reads = 1 if resident else n_row_tiles
    cost = pl.CostEstimate(
        flops=4 * N_pad * E * M_pad,
        transcendentals=N_pad * M_pad,
        bytes_accessed=(N_pad * E) * x_itemsize
                       + (N_pad * E) * out_itemsize
                       + weight_reads * (w1c.size + w2c.size) * mm_itemsize
                       + (b1_2.size + b2_2.size + 2 * E) * 4,
    )

    if resident:
        w1_map = lambda i, k: (0, 0)
        w2_map = lambda i, k: (0, 0)
        b1_map = lambda i, k: (0, 0)
    else:
        w1_map = lambda i, k: (0, k)
        w2_map = lambda i, k: (k, 0)
        b1_map = lambda i, k: (0, k)

    kernel = functools.partial(mlp_block_kernel, mm_dtype=mm_dtype,
                               fast_gelu=fast_gelu)

    out = pl.pallas_call(
        kernel,
        out_shape=jax.ShapeDtypeStruct((N_pad, E), out_dtype),
        grid_spec=pltpu.PrefetchScalarGridSpec(
            num_scalar_prefetch=0,
            grid=(n_row_tiles, n_m_chunks),
            in_specs=[
                pl.BlockSpec((row_tile, E), lambda i, k: (i, 0)),   # x rows
                pl.BlockSpec((1, E), lambda i, k: (0, 0)),          # gamma
                pl.BlockSpec((1, E), lambda i, k: (0, 0)),          # beta
                pl.BlockSpec((E, m_chunk), w1_map),                 # w1 (= W1.T)
                pl.BlockSpec((1, m_chunk), b1_map),                 # b1
                pl.BlockSpec((m_chunk, E), w2_map),                 # w2 (= W2.T)
                pl.BlockSpec((1, E), lambda i, k: (0, 0)),          # b2
            ],
            out_specs=pl.BlockSpec((row_tile, E), lambda i, k: (i, 0)),
            scratch_shapes=[
                pltpu.VMEM((row_tile, E), jnp.float32),   # f32 accumulator
                pltpu.VMEM((row_tile, E), mm_dtype),      # cached LayerNorm output
            ],
        ),
        compiler_params=pltpu.CompilerParams(
            dimension_semantics=("parallel", "arbitrary"),
            vmem_limit_bytes=vmem_limit,
        ),
        cost_estimate=cost,
    )(x2d, gamma2, beta2, w1c, b1_2, w2c, b2_2)

    return out[:N].reshape(B, S, E)


def init_params(key, embedding_dim, mlp_size):
    """Deterministic init mimicking nn.Linear / nn.LayerNorm defaults."""
    k1, k2, k3, k4 = jax.random.split(key, 4)
    gamma = jnp.ones((embedding_dim,), jnp.float32)
    beta = jnp.zeros((embedding_dim,), jnp.float32)
    bound1 = 1.0 / (embedding_dim ** 0.5)
    w1 = jax.random.uniform(k1, (embedding_dim, mlp_size), jnp.float32,
                            minval=-bound1, maxval=bound1)
    b1 = jax.random.uniform(k2, (mlp_size,), jnp.float32,
                            minval=-bound1, maxval=bound1)
    bound2 = 1.0 / (mlp_size ** 0.5)
    w2 = jax.random.uniform(k3, (mlp_size, embedding_dim), jnp.float32,
                            minval=-bound2, maxval=bound2)
    b2 = jax.random.uniform(k4, (embedding_dim,), jnp.float32,
                            minval=-bound2, maxval=bound2)
    return gamma, beta, w1, b1, w2, b2


def reference(x, gamma, beta, w1, b1, w2, b2):
    mean = jnp.mean(x, axis=-1, keepdims=True)
    var = jnp.mean((x - mean) ** 2, axis=-1, keepdims=True)
    xn = (x - mean) / jnp.sqrt(var + 1e-5) * gamma + beta
    h = xn @ w1 + b1
    h = jax.nn.gelu(h, approximate=False)
    return h @ w2 + b2


if __name__ == "__main__":
    # Small ViT-ish shapes: rows deliberately NOT a multiple of the row tile
    # (exercises padding); both resident and m-chunked paths are exercised.
    B, S, E, M = 2, 100, 128, 512
    key = jax.random.PRNGKey(0)
    kx, kp = jax.random.split(key)
    x = jax.random.normal(kx, (B, S, E), jnp.float32)
    gamma, beta, w1, b1, w2, b2 = init_params(kp, E, M)
    ref = reference(x, gamma, beta, w1, b1, w2, b2)

    # 1) f32 MXU path, weights resident (default): tight tolerance.
    out_f32 = mlp_block(x, gamma, beta, w1, b1, w2, b2, mm_dtype=jnp.float32)
    out_f32 = jax.block_until_ready(out_f32)
    assert out_f32.shape == (B, S, E)
    assert jnp.allclose(out_f32, ref, atol=1e-4, rtol=1e-4), \
        f"f32 resident max err {jnp.max(jnp.abs(out_f32 - ref))}"

    # 2) f32 MXU path, m-chunked reduction axis (streamed weights): tight tolerance.
    out_f32s = mlp_block(x, gamma, beta, w1, b1, w2, b2,
                         m_chunk=128, mm_dtype=jnp.float32)
    out_f32s = jax.block_until_ready(out_f32s)
    assert jnp.allclose(out_f32s, ref, atol=1e-4, rtol=1e-4), \
        f"f32 streamed max err {jnp.max(jnp.abs(out_f32s - ref))}"

    # 3) bf16 MXU operands + bf16 output (default fast path on v6e/v7x).
    out_bf16 = mlp_block(x, gamma, beta, w1, b1, w2, b2,
                         mm_dtype=jnp.bfloat16, out_dtype=jnp.bfloat16)
    out_bf16 = jax.block_until_ready(out_bf16)
    assert out_bf16.dtype == jnp.bfloat16
    assert jnp.allclose(out_bf16.astype(jnp.float32), ref, atol=5e-2, rtol=5e-2), \
        f"bf16 max err {jnp.max(jnp.abs(out_bf16.astype(jnp.float32) - ref))}"

    # 4) bf16 with tanh-approx GELU computed in bf16 (EUP/VALU offload): loose tol.
    out_fast = mlp_block(x, gamma, beta, w1, b1, w2, b2,
                         mm_dtype=jnp.bfloat16, fast_gelu=True)
    out_fast = jax.block_until_ready(out_fast)
    assert jnp.allclose(out_fast, ref, atol=1e-1, rtol=1e-1), \
        f"fast-gelu max err {jnp.max(jnp.abs(out_fast - ref))}"

    print("KERNEL_OK")
</pallas_src>

<mosaic_0001>
module attributes {stable_mosaic.version = 11 : i64} {
  func.func @mlp_block_kernel(%arg0: i32, %arg1: i32, %arg2: memref<104x128xf32, #tpu.memory_space<vmem>>, %arg3: memref<1x128xf32, #tpu.memory_space<vmem>>, %arg4: memref<1x128xf32, #tpu.memory_space<vmem>>, %arg5: memref<128x512xf32, #tpu.memory_space<vmem>>, %arg6: memref<1x512xf32, #tpu.memory_space<vmem>>, %arg7: memref<512x128xf32, #tpu.memory_space<vmem>>, %arg8: memref<1x128xf32, #tpu.memory_space<vmem>>, %arg9: memref<104x128xf32, #tpu.memory_space<vmem>>, %arg10: memref<104x128xf32, #tpu.memory_space<vmem>>, %arg11: memref<104x128xf32, #tpu.memory_space<vmem>>) attributes {dimension_semantics = [#tpu.dimension_semantics<parallel>, #tpu.dimension_semantics<arbitrary>], iteration_bounds = array<i64: 2, 1>, scalar_prefetch = 0 : i64, scratch_operands = 2 : i64, tpu.core_type = #tpu.core_type<tc>, window_params = [{transform_indices = @transform_0, window_bounds = array<i64: 104, 128>}, {pipeline_mode = #tpu.pipeline_mode<synchronous>, transform_indices = @transform_1, window_bounds = array<i64: 1, 128>}, {pipeline_mode = #tpu.pipeline_mode<synchronous>, transform_indices = @transform_2, window_bounds = array<i64: 1, 128>}, {pipeline_mode = #tpu.pipeline_mode<synchronous>, transform_indices = @transform_3, window_bounds = array<i64: 128, 512>}, {pipeline_mode = #tpu.pipeline_mode<synchronous>, transform_indices = @transform_4, window_bounds = array<i64: 1, 512>}, {pipeline_mode = #tpu.pipeline_mode<synchronous>, transform_indices = @transform_5, window_bounds = array<i64: 512, 128>}, {pipeline_mode = #tpu.pipeline_mode<synchronous>, transform_indices = @transform_6, window_bounds = array<i64: 1, 128>}, {transform_indices = @transform_7, window_bounds = array<i64: 104, 128>}]} {
    %c0_i32 = arith.constant 0 : i32
    %0 = arith.cmpi eq, %arg1, %c0_i32 : i32
    %1 = arith.extui %0 : i1 to i32
    %c0_i32_0 = arith.constant 0 : i32
    %2 = arith.cmpi ne, %1, %c0_i32_0 : i32
    scf.if %2 {
      %c0_18 = arith.constant 0 : index
      %c0_19 = arith.constant 0 : index
      %28 = vector.load %arg2[%c0_18, %c0_19] : memref<104x128xf32, #tpu.memory_space<vmem>>, vector<104x128xf32>
      %c0_20 = arith.constant 0 : index
      %c0_21 = arith.constant 0 : index
      %29 = vector.load %arg3[%c0_20, %c0_21] : memref<1x128xf32, #tpu.memory_space<vmem>>, vector<1x128xf32>
      %c0_22 = arith.constant 0 : index
      %c0_23 = arith.constant 0 : index
      %30 = vector.load %arg4[%c0_22, %c0_23] : memref<1x128xf32, #tpu.memory_space<vmem>>, vector<1x128xf32>
      %cst_24 = arith.constant dense<0.000000e+00> : vector<104xf32>
      %31 = vector.multi_reduction <add>, %28, %cst_24 [1] : vector<104x128xf32> to vector<104xf32>
      %32 = vector.shape_cast %31 : vector<104xf32> to vector<104x1xf32>
      %cst_25 = arith.constant 1.280000e+02 : f32
      %33 = vector.broadcast %cst_25 : f32 to vector<104x1xf32>
      %34 = arith.divf %32, %33 : vector<104x1xf32>
      %35 = vector.broadcast %34 : vector<104x1xf32> to vector<104x128xf32>
      %36 = arith.subf %28, %35 : vector<104x128xf32>
      %37 = vector.broadcast %34 : vector<104x1xf32> to vector<104x128xf32>
      %38 = arith.subf %28, %37 : vector<104x128xf32>
      %39 = arith.mulf %36, %38 : vector<104x128xf32>
      %cst_26 = arith.constant dense<0.000000e+00> : vector<104xf32>
      %40 = vector.multi_reduction <add>, %39, %cst_26 [1] : vector<104x128xf32> to vector<104xf32>
      %41 = vector.shape_cast %40 : vector<104xf32> to vector<104x1xf32>
      %cst_27 = arith.constant 1.280000e+02 : f32
      %42 = vector.broadcast %cst_27 : f32 to vector<104x1xf32>
      %43 = arith.divf %41, %42 : vector<104x1xf32>
      %44 = vector.broadcast %34 : vector<104x1xf32> to vector<104x128xf32>
      %45 = arith.subf %28, %44 : vector<104x128xf32>
      %cst_28 = arith.constant 9.99999974E-6 : f32
      %46 = vector.broadcast %cst_28 : f32 to vector<104x1xf32>
      %47 = arith.addf %43, %46 : vector<104x1xf32>
      %48 = math.rsqrt %47 : vector<104x1xf32>
      %49 = vector.broadcast %48 : vector<104x1xf32> to vector<104x128xf32>
      %50 = arith.mulf %45, %49 : vector<104x128xf32>
      %51 = vector.broadcast %29 : vector<1x128xf32> to vector<104x128xf32>
      %52 = arith.mulf %50, %51 : vector<104x128xf32>
      %53 = vector.broadcast %30 : vector<1x128xf32> to vector<104x128xf32>
      %54 = arith.addf %52, %53 : vector<104x128xf32>
      %c0_29 = arith.constant 0 : index
      %c0_30 = arith.constant 0 : index
      %55 = vector.load %arg11[%c0_29, %c0_30] : memref<104x128xf32, #tpu.memory_space<vmem>>, vector<104x128xf32>
      tpu.vector_store %arg11[%c0_29, %c0_30], %54 {strides = array<i32>} : memref<104x128xf32, #tpu.memory_space<vmem>>, vector<104x128xf32>,
    } else {
    }
    %c0 = arith.constant 0 : index
    %c0_1 = arith.constant 0 : index
    %3 = vector.load %arg11[%c0, %c0_1] : memref<104x128xf32, #tpu.memory_space<vmem>>, vector<104x128xf32>
    %c0_2 = arith.constant 0 : index
    %c0_3 = arith.constant 0 : index
    %4 = vector.load %arg5[%c0_2, %c0_3] : memref<128x512xf32, #tpu.memory_space<vmem>>, vector<128x512xf32>
    %cst = arith.constant dense<0.000000e+00> : vector<104x512xf32>
    %5 = tpu.matmul %3, %4, %cst {dimension_numbers = #tpu.dot_dimension_numbers<[1], [0], [0], [1], [0, 0, 1, 1], [], []>} : vector<104x128xf32>, vector<128x512xf32>, vector<104x512xf32> -> vector<104x512xf32>
    %c0_4 = arith.constant 0 : index
    %c0_5 = arith.constant 0 : index
    %6 = vector.load %arg6[%c0_4, %c0_5] : memref<1x512xf32, #tpu.memory_space<vmem>>, vector<1x512xf32>
    %7 = vector.broadcast %6 : vector<1x512xf32> to vector<104x512xf32>
    %8 = arith.addf %5, %7 : vector<104x512xf32>
    %cst_6 = arith.constant 5.000000e-01 : f32
    %9 = vector.broadcast %cst_6 : f32 to vector<104x512xf32>
    %10 = arith.mulf %9, %8 : vector<104x512xf32>
    %cst_7 = arith.constant 0.707106769 : f32
    %11 = vector.broadcast %cst_7 : f32 to vector<104x512xf32>
    %12 = arith.mulf %8, %11 : vector<104x512xf32>
    %13 = math.erf %12 : vector<104x512xf32>
    %cst_8 = arith.constant 1.000000e+00 : f32
    %14 = vector.broadcast %cst_8 : f32 to vector<104x512xf32>
    %15 = arith.addf %14, %13 : vector<104x512xf32>
    %16 = arith.mulf %10, %15 : vector<104x512xf32>
    %c0_9 = arith.constant 0 : index
    %c0_10 = arith.constant 0 : index
    %17 = vector.load %arg7[%c0_9, %c0_10] : memref<512x128xf32, #tpu.memory_space<vmem>>, vector<512x128xf32>
    %cst_11 = arith.constant dense<0.000000e+00> : vector<104x128xf32>
    %18 = tpu.matmul %16, %17, %cst_11 {dimension_numbers = #tpu.dot_dimension_numbers<[1], [0], [0], [1], [0, 0, 1, 1], [], []>} : vector<104x512xf32>, vector<512x128xf32>, vector<104x128xf32> -> vector<104x128xf32>
    %c0_i32_12 = arith.constant 0 : i32
    %19 = arith.cmpi eq, %arg1, %c0_i32_12 : i32
    %20 = arith.extui %19 : i1 to i32
    %c0_i32_13 = arith.constant 0 : i32
    %21 = arith.cmpi ne, %20, %c0_i32_13 : i32
    scf.if %21 {
      %c0_18 = arith.constant 0 : index
      %c0_19 = arith.constant 0 : index
      %28 = vector.load %arg10[%c0_18, %c0_19] : memref<104x128xf32, #tpu.memory_space<vmem>>, vector<104x128xf32>
      tpu.vector_store %arg10[%c0_18, %c0_19], %18 {strides = array<i32>} : memref<104x128xf32, #tpu.memory_space<vmem>>, vector<104x128xf32>,
    } else {
    }
    %c0_i32_14 = arith.constant 0 : i32
    %22 = arith.cmpi ne, %arg1, %c0_i32_14 : i32
    %23 = arith.extui %22 : i1 to i32
    %c0_i32_15 = arith.constant 0 : i32
    %24 = arith.cmpi ne, %23, %c0_i32_15 : i32
    scf.if %24 {
      %c0_18 = arith.constant 0 : index
      %c0_19 = arith.constant 0 : index
      %28 = vector.load %arg10[%c0_18, %c0_19] : memref<104x128xf32, #tpu.memory_space<vmem>>, vector<104x128xf32>
      %29 = arith.addf %28, %18 : vector<104x128xf32>
      %c0_20 = arith.constant 0 : index
      %c0_21 = arith.constant 0 : index
      %30 = vector.load %arg10[%c0_20, %c0_21] : memref<104x128xf32, #tpu.memory_space<vmem>>, vector<104x128xf32>
      tpu.vector_store %arg10[%c0_20, %c0_21], %29 {strides = array<i32>} : memref<104x128xf32, #tpu.memory_space<vmem>>, vector<104x128xf32>,
    } else {
    }
    %c0_i32_16 = arith.constant 0 : i32
    %25 = arith.cmpi eq, %arg1, %c0_i32_16 : i32
    %26 = arith.extui %25 : i1 to i32
    %c0_i32_17 = arith.constant 0 : i32
    %27 = arith.cmpi ne, %26, %c0_i32_17 : i32
    scf.if %27 {
      %c0_18 = arith.constant 0 : index
      %c0_19 = arith.constant 0 : index
      %28 = vector.load %arg10[%c0_18, %c0_19] : memref<104x128xf32, #tpu.memory_space<vmem>>, vector<104x128xf32>
      %c0_20 = arith.constant 0 : index
      %c0_21 = arith.constant 0 : index
      %29 = vector.load %arg8[%c0_20, %c0_21] : memref<1x128xf32, #tpu.memory_space<vmem>>, vector<1x128xf32>
      %30 = vector.broadcast %29 : vector<1x128xf32> to vector<104x128xf32>
      %31 = arith.addf %28, %30 : vector<104x128xf32>
      %c0_22 = arith.constant 0 : index
      %c0_23 = arith.constant 0 : index
      %32 = vector.load %arg9[%c0_22, %c0_23] : memref<104x128xf32, #tpu.memory_space<vmem>>, vector<104x128xf32>
      tpu.vector_store %arg9[%c0_22, %c0_23], %31 {strides = array<i32>} : memref<104x128xf32, #tpu.memory_space<vmem>>, vector<104x128xf32>,
    } else {
    }
    return
  }
  func.func @transform_0(%arg0: i32, %arg1: i32) -> (i32, i32) {
    %c0_i32 = arith.constant 0 : i32
    %c0_i32_0 = arith.constant 0 : i32
    return %arg0, %c0_i32 : i32, i32
  }
  func.func @transform_1(%arg0: i32, %arg1: i32) -> (i32, i32) {
    %c0_i32 = arith.constant 0 : i32
    %c0_i32_0 = arith.constant 0 : i32
    %c0_i32_1 = arith.constant 0 : i32
    return %c0_i32, %c0_i32_0 : i32, i32
  }
  func.func @transform_2(%arg0: i32, %arg1: i32) -> (i32, i32) {
    %c0_i32 = arith.constant 0 : i32
    %c0_i32_0 = arith.constant 0 : i32
    %c0_i32_1 = arith.constant 0 : i32
    return %c0_i32, %c0_i32_0 : i32, i32
  }
  func.func @transform_3(%arg0: i32, %arg1: i32) -> (i32, i32) {
    %c0_i32 = arith.constant 0 : i32
    %c0_i32_0 = arith.constant 0 : i32
    %c0_i32_1 = arith.constant 0 : i32
    return %c0_i32, %c0_i32_0 : i32, i32
  }
  func.func @transform_4(%arg0: i32, %arg1: i32) -> (i32, i32) {
    %c0_i32 = arith.constant 0 : i32
    %c0_i32_0 = arith.constant 0 : i32
    %c0_i32_1 = arith.constant 0 : i32
    return %c0_i32, %c0_i32_0 : i32, i32
  }
  func.func @transform_5(%arg0: i32, %arg1: i32) -> (i32, i32) {
    %c0_i32 = arith.constant 0 : i32
    %c0_i32_0 = arith.constant 0 : i32
    %c0_i32_1 = arith.constant 0 : i32
    return %c0_i32, %c0_i32_0 : i32, i32
  }
  func.func @transform_6(%arg0: i32, %arg1: i32) -> (i32, i32) {
    %c0_i32 = arith.constant 0 : i32
    %c0_i32_0 = arith.constant 0 : i32
    %c0_i32_1 = arith.constant 0 : i32
    return %c0_i32, %c0_i32_0 : i32, i32
  }
  func.func @transform_7(%arg0: i32, %arg1: i32) -> (i32, i32) {
    %c0_i32 = arith.constant 0 : i32
    %c0_i32_0 = arith.constant 0 : i32
    return %arg0, %c0_i32 : i32, i32
  }
}

</mosaic_0001>

<bundles_post_ra>
// kernel: mlp_block.1
= control target key start
LH: loop header
LB: loop body
LE: loop exit
PB: predicated region body
PF: predicated region fallthrough
CT: control target
= control target key end

     0   :  { %s3971_s24 = smov 0   ;;  %s3973_s25 = smov 0   ;;  %s7082_s0 = inlined_call_operand.vmem [shape: f32[208,128], index: 0, kind: input, shape index: {}]   ;;  %s7083_s1 = inlined_call_operand.vmem [shape: f32[1,128], index: 1, kind: input, shape index: {}]   ;;  %s7084_s2 = inlined_call_operand.vmem [shape: f32[1,128], index: 2, kind: input, shape index: {}]   ;;  %s7085_s3 = inlined_call_operand.vmem [shape: f32[128,512], index: 3, kind: input, shape index: {}]   ;;  %s7086_s4 = inlined_call_operand.vmem [shape: f32[1,512], index: 4, kind: input, shape index: {}]   ;;  %s7087_s5 = inlined_call_operand.vmem [shape: f32[512,128], index: 5, kind: input, shape index: {}]   ;;  %s7088_s6 = inlined_call_operand.vmem [shape: f32[1,128], index: 6, kind: input, shape index: {}]   ;;  %s7089_s7 = inlined_call_operand.vmem [shape: f32[208,128], index: 7, kind: output, shape index: {}]  }
   0x1   :  { %s3975_s26 = smov 0  }
   0x2 LB: > { %s29_s27 = sadd.s32 1, %s3924_s25  ;;  %p3686_p0 = scmp.ge.s32.totalorder %s3928_s26, 1  ;;  %s3928_s26 = sphi %s3975_s26, %s17_s26   ;;  %s3924_s25 = sphi %s3973_s25, %s7465_s25   ;;  %s3920_s24 = sphi %s3971_s24, %s7464_s24  }
   0x3   : > { %p31_p1 = scmp.ge.s32.totalorder %s29_s27, 2  ;;  %p250_p2 = scmp.lt.s32.totalorder %s3928_s26, 3 }
   0x5   : > { %s7467_s27 = smov (%p31_p1, %s29_s27), 0  ;;  %p251_p3 = pnand %p3686_p0, %p250_p2 }
   0x7   : > { %254 = sbr.rel (%p251_p3) target bundleno = 1146 (0x47a), region = 48 }
   0xc   : > { %s282_s28 = smul.u32 13, %s3920_s24  ;;  %v3930_v7 = vmov 128.0   ;;  %v698_v25 = vld [vmem:[%s7085_s3 + $0x1e0] sm:$0xff]  ;;  %v699_v26 = vld [vmem:[%s7085_s3 + $0x1e8] sm:$0xff]  ;;  %v700_v27 = vld [vmem:[%s7085_s3 + $0x1f0] sm:$0xff] }
   0xd   : > { %3771 = vrcp.f32 %v3930_v7  ;;  %712 = vmatpush.msra.mxu0 %v698_v25  ;;  %768 = vmatpush.msra.mxu1 %v699_v26  ;;  %v701_v30 = vld [vmem:[%s7085_s3 + $0x1f8] sm:$0xff]  ;;  %v694_v31 = vld [vmem:[%s7085_s3 + $0x1c0] sm:$0xff]  ;;  %v695_v32 = vld [vmem:[%s7085_s3 + $0x1c8] sm:$0xff] }
   0xe   : > { %p283_p4 = scmp.lt.s32.totalorder %s282_s28, 25  ;;  %824 = vmatpush.msra.mxu2 %v700_v27  ;;  %880 = vmatpush.msra.mxu3 %v701_v30  ;;  %v696_v33 = vld [vmem:[%s7085_s3 + $0x1d0] sm:$0xff]  ;;  %v697_v34 = vld [vmem:[%s7085_s3 + $0x1d8] sm:$0xff]  ;;  %v690_v56 = vld [vmem:[%s7085_s3 + $0x1a0] sm:$0xff] }
   0xf   : > { %713 = vmatpush.msra.mxu0 %v694_v31  ;;  %769 = vmatpush.msra.mxu1 %v695_v32  ;;  %v691_v57 = vld [vmem:[%s7085_s3 + $0x1a8] sm:$0xff]  ;;  %v692_v58 = vld [vmem:[%s7085_s3 + $0x1b0] sm:$0xff]  ;;  %v693_v59 = vld [vmem:[%s7085_s3 + $0x1b8] sm:$0xff] }
  0x10   : > { %s7469_s28 = smov (!%p283_p4, %s282_s28), 25  ;;  %825 = vmatpush.msra.mxu2 %v696_v33  ;;  %881 = vmatpush.msra.mxu3 %v697_v34  ;;  %v686_v60 = vld [vmem:[%s7085_s3 + $0x180] sm:$0xff]  ;;  %v687_v61 = vld [vmem:[%s7085_s3 + $0x188] sm:$0xff]  ;;  %v688_v62 = vld [vmem:[%s7085_s3 + $0x190] sm:$0xff] }
  0x11   : > { %s3687_s29 = sshll.u32 %s7469_s28, 3  ;;  %714 = vmatpush.msra.mxu0 %v690_v56  ;;  %770 = vmatpush.msra.mxu1 %v691_v57  ;;  %v689_v63 = vld [vmem:[%s7085_s3 + $0x198] sm:$0xff]  ;;  %v664_v25 = vld [vmem:[%s7085_s3 + $0xd0] sm:$0xff]  ;;  %v658_v27 = vld [vmem:[%s7085_s3 + $0xa0] sm:$0xff] }
  0x12   : > { %s3997_s9 = scalar_lea.vmem %s7082_s0, %s3687_s29  ;;  %826 = vmatpush.msra.mxu2 %v692_v58  ;;  %882 = vmatpush.msra.mxu3 %v693_v59  ;;  %v681_v7 = vld [vmem:[%s7085_s3 + $0x158] sm:$0xff]  ;;  %v654_v31 = vld [vmem:[%s7085_s3 + $0x80] sm:$0xff]  ;;  %v655_v32 = vld [vmem:[%s7085_s3 + $0x88] sm:$0xff]  ;;  %s6665_s11 = scalar_lea.vmem %s7089_s7, %s3687_s29 }
  0x13   : > { %v300_v0 = vld [vmem:[%s3997_s9 + $0x10] sm:$0xff]  ;;  %v298_v1 = vld [vmem:[%s3997_s9] sm:$0xff]  ;;  %v299_v3 = vld [vmem:[%s3997_s9 + $0x8] sm:$0xff]  ;;  %v3772_v8 = vpop.eup %3771  ;;  %715 = vmatpush.msra.mxu0 %v686_v60  ;;  %771 = vmatpush.msra.mxu1 %v687_v61 }
  0x14   : > { %v4002_v2 = vld [vmem:[%s3997_s9 + $0x20] sm:$0xff]  ;;  %317 = vadd.xlane.f32.xlu1 %v300_v0  ;;  %313 = vadd.xlane.f32.xlu0 %v298_v1  ;;  %v301_v4 = vld [vmem:[%s3997_s9 + $0x18] sm:$0xff]  ;;  %v303_v5 = vld [vmem:[%s3997_s9 + $0x28] sm:$0xff]  ;;  %v340_v9 = vmul.f32 128.0, %v3772_v8  ;;  %vm344_vm0 = vweird.f32 %v3772_v8 }
  0x15   : > { %321 = vadd.xlane.f32.xlu2 %v4002_v2  ;;  %v4009_v6 = vld [vmem:[%s3997_s9 + $0x30] sm:$0xff]  ;;  %v4054_v38 = vld [vmem:[%s3997_s9 + $0x48] sm:$0xff]  ;;  %v4057_v39 = vld [vmem:[%s3997_s9 + $0x38] sm:$0xff]  ;;  %827 = vmatpush.msra.mxu2 %v688_v62 }
  0x16   : > { %v341_v10 = vsub.f32 1.0, %v340_v9  ;;  %v4073_v46 = vld [vmem:[%s3997_s9 + $0x40] sm:$0xff]  ;;  %v4084_v51 = vld [vmem:[%s3997_s9 + $0x50] sm:$0xff]  ;;  %v4096_v55 = vld [vmem:[%s3997_s9 + $0x58] sm:$0xff]  ;;  %883 = vmatpush.msra.mxu3 %v689_v63 }
  0x17   : > { %v4081_v50 = vld [vmem:[%s3997_s9 + $0x60] sm:$0xff]  ;;  %v675_v9 = vld [vmem:[%s7085_s3 + $0x128] sm:$0xff]  ;;  %v665_v26 = vld [vmem:[%s7085_s3 + $0xd8] sm:$0xff] }
  0x18   : > { %v342_v11 = vmul.f32 %v3772_v8, %v341_v10  ;;  %v676_v10 = vld [vmem:[%s7085_s3 + $0x130] sm:$0xff]  ;;  %v661_v30 = vld [vmem:[%s7085_s3 + $0xb8] sm:$0xff]  ;;  %v638_v58 = vld [vmem:[%s7085_s3] sm:$0xff] }
  0x19   : > { %v656_v33 = vld [vmem:[%s7085_s3 + $0x90] sm:$0xff]  ;;  %v657_v34 = vld [vmem:[%s7085_s3 + $0x98] sm:$0xff]  ;;  %v639_v59 = vld [vmem:[%s7085_s3 + $0x8] sm:$0xff] }
  0x1a   : > { %v343_v12 = vadd.f32 %v3772_v8, %v342_v11  ;;  %v677_v11 = vld [vmem:[%s7085_s3 + $0x138] sm:$0xff]  ;;  %v644_v56 = vld [vmem:[%s7085_s3 + $0x30] sm:$0xff] }
  0x1b   : > { %v645_v57 = vld [vmem:[%s7085_s3 + $0x38] sm:$0xff]  ;;  %v640_v60 = vld [vmem:[%s7085_s3 + $0x10] sm:$0xff] }
  0x1c   : > { %315 = vadd.xlane.f32.xlu0 %v299_v3  ;;  %319 = vadd.xlane.f32.xlu1 %v301_v4  ;;  %v4012_v13 = vsel %vm344_vm0, %v3772_v8, %v343_v12  ;;  %v674_v8 = vld [vmem:[%s7085_s3 + $0x120] sm:$0xff]  ;;  %v641_v61 = vld [vmem:[%s7085_s3 + $0x18] sm:$0xff] }
  0x1d   : > { %323 = vadd.xlane.f32.xlu2 %v303_v5  ;;  %v670_v12 = vld [vmem:[%s7085_s3 + $0x100] sm:$0xff] }
  0x24   : > { %325 = vadd.xlane.f32.xlu1 %v4009_v6 }
  0x87   : > { %v318_v14 = vpop.xlane.xlu1 %317  ;;  %v314_v15 = vpop.xlane.xlu0 %313 }
  0x88   : > { %v348_v16 = vmul.f32 %v4012_v13, %v318_v14  ;;  %v346_v17 = vmul.f32 %v4012_v13, %v314_v15  ;;  %v322_v18 = vpop.xlane.xlu2 %321  ;;  %v671_v14 = vld [vmem:[%s7085_s3 + $0x108] sm:$0xff]  ;;  %v672_v15 = vld [vmem:[%s7085_s3 + $0x110] sm:$0xff] }
  0x89   : > { %v350_v45 = vmul.f32 %v4012_v13, %v322_v18  ;;  %v667_v18 = vld [vmem:[%s7085_s3 + $0xe8] sm:$0xff] }
  0x8a   : > { %v4016_v19 = vsub.f32 %v300_v0, %v348_v16  ;;  %v4018_v20 = vsub.f32 %v298_v1, %v346_v17  ;;  %v682_v0 = vld [vmem:[%s7085_s3 + $0x160] sm:$0xff]  ;;  %v683_v1 = vld [vmem:[%s7085_s3 + $0x168] sm:$0xff]  ;;  %v673_v16 = vld [vmem:[%s7085_s3 + $0x118] sm:$0xff] }
  0x8b   : > { %v4076_v47 = vsub.f32 %v4002_v2, %v350_v45  ;;  %v684_v2 = vld [vmem:[%s7085_s3 + $0x170] sm:$0xff]  ;;  %716 = vmatpush.msra.mxu0 %v682_v0  ;;  %772 = vmatpush.msra.mxu1 %v683_v1  ;;  %v666_v17 = vld [vmem:[%s7085_s3 + $0xe0] sm:$0xff]  ;;  %v647_v45 = vld [vmem:[%s7085_s3 + $0x48] sm:$0xff] }
  0x8c   : > { %v374_v21 = vmul.f32 %v4016_v19, %v4016_v19  ;;  %v372_v22 = vmul.f32 %v4018_v20, %v4018_v20  ;;  %828 = vmatpush.msra.mxu2 %v684_v2 }
  0x8d   : > { %v376_v52 = vmul.f32 %v4076_v47, %v4076_v47 }
  0x8e   : > { %389 = vadd.xlane.f32.xlu1 %v374_v21  ;;  %385 = vadd.xlane.f32.xlu0 %v372_v22  ;;  %v668_v21 = vld [vmem:[%s7085_s3 + $0xf0] sm:$0xff]  ;;  %v669_v22 = vld [vmem:[%s7085_s3 + $0xf8] sm:$0xff] }
  0x8f   : > { %v316_v23 = vpop.xlane.xlu0 %315  ;;  %v320_v24 = vpop.xlane.xlu1 %319 }
  0x90   : > { %v347_v28 = vmul.f32 %v4012_v13, %v316_v23  ;;  %v324_v29 = vpop.xlane.xlu2 %323  ;;  %v349_v37 = vmul.f32 %v4012_v13, %v320_v24  ;;  %v662_v23 = vld [vmem:[%s7085_s3 + $0xc0] sm:$0xff]  ;;  %v663_v24 = vld [vmem:[%s7085_s3 + $0xc8] sm:$0xff] }
  0x91   : > { %v351_v36 = vmul.f32 %v4012_v13, %v324_v29  ;;  %v660_v29 = vld [vmem:[%s7085_s3 + $0xb0] sm:$0xff] }
  0x92   : > { %v4049_v35 = vsub.f32 %v299_v3, %v347_v28  ;;  %v4065_v42 = vsub.f32 %v301_v4, %v349_v37  ;;  %v685_v3 = vld [vmem:[%s7085_s3 + $0x178] sm:$0xff]  ;;  %v678_v4 = vld [vmem:[%s7085_s3 + $0x140] sm:$0xff]  ;;  %v659_v28 = vld [vmem:[%s7085_s3 + $0xa8] sm:$0xff] }
  0x93   : > { %v4063_v41 = vsub.f32 %v303_v5, %v351_v36  ;;  %884 = vmatpush.msra.mxu3 %v685_v3  ;;  %v679_v5 = vld [vmem:[%s7085_s3 + $0x148] sm:$0xff]  ;;  %717 = vmatpush.msra.mxu0 %v678_v4  ;;  %v650_v36 = vld [vmem:[%s7085_s3 + $0x60] sm:$0xff] }
  0x94   : > { %v373_v40 = vmul.f32 %v4049_v35, %v4049_v35  ;;  %v375_v44 = vmul.f32 %v4065_v42, %v4065_v42  ;;  %773 = vmatpush.msra.mxu1 %v679_v5  ;;  %v651_v37 = vld [vmem:[%s7085_s3 + $0x68] sm:$0xff] }
  0x95   : > { %v377_v43 = vmul.f32 %v4063_v41, %v4063_v41  ;;  %885 = vmatpush.msra.mxu3 %v681_v7  ;;  %718 = vmatpush.msra.mxu0 %v674_v8 }
  0x96   : > { %331 = vadd.xlane.f32.xlu1 %v4054_v38  ;;  %327 = vadd.xlane.f32.xlu0 %v4057_v39 }
  0x97   : > { %387 = vadd.xlane.f32.xlu2 %v373_v40  ;;  %v326_v48 = vpop.xlane.xlu1 %325  ;;  %774 = vmatpush.msra.mxu1 %v675_v9  ;;  %v652_v40 = vld [vmem:[%s7085_s3 + $0x70] sm:$0xff] }
  0x98   : > { %v352_v49 = vmul.f32 %v4012_v13, %v326_v48  ;;  %886 = vmatpush.msra.mxu3 %v677_v11  ;;  %719 = vmatpush.msra.mxu0 %v670_v12  ;;  %v648_v48 = vld [vmem:[%s7085_s3 + $0x50] sm:$0xff] }
  0x99   : > { %775 = vmatpush.msra.mxu1 %v671_v14 }
  0x9a   : > { %v4091_v53 = vsub.f32 %v4009_v6, %v352_v49  ;;  %v680_v6 = vld [vmem:[%s7085_s3 + $0x150] sm:$0xff]  ;;  %887 = vmatpush.msra.mxu3 %v673_v16  ;;  %720 = vmatpush.msra.mxu0 %v666_v17  ;;  %v649_v49 = vld [vmem:[%s7085_s3 + $0x58] sm:$0xff] }
  0x9b   : > { %829 = vmatpush.msra.mxu2 %v680_v6  ;;  %776 = vmatpush.msra.mxu1 %v667_v18 }
  0x9c   : > { %v378_v54 = vmul.f32 %v4091_v53, %v4091_v53  ;;  %888 = vmatpush.msra.mxu3 %v669_v22  ;;  %721 = vmatpush.msra.mxu0 %v662_v23 }
  0x9d   : > { %830 = vmatpush.msra.mxu2 %v676_v10  ;;  %777 = vmatpush.msra.mxu1 %v663_v24 }
  0x9e   : > { %395 = vadd.xlane.f32.xlu1 %v377_v43  ;;  %391 = vadd.xlane.f32.xlu0 %v375_v44  ;;  %v653_v43 = vld [vmem:[%s7085_s3 + $0x78] sm:$0xff]  ;;  %v646_v44 = vld [vmem:[%s7085_s3 + $0x40] sm:$0xff] }
  0x9f   : > { %329 = vadd.xlane.f32.xlu2 %v4073_v46  ;;  %831 = vmatpush.msra.mxu2 %v672_v15 }
  0xa0   : > { %889 = vmatpush.msra.mxu3 %v665_v26  ;;  %722 = vmatpush.msra.mxu0 %v658_v27 }
  0xa1   : > { %832 = vmatpush.msra.mxu2 %v668_v21  ;;  %778 = vmatpush.msra.mxu1 %v659_v28 }
  0xa2   : > { %890 = vmatpush.msra.mxu3 %v661_v30  ;;  %723 = vmatpush.msra.mxu0 %v654_v31 }
  0xa3   : > { %833 = vmatpush.msra.mxu2 %v664_v25  ;;  %779 = vmatpush.msra.mxu1 %v655_v32 }
  0xa4   : > { %891 = vmatpush.msra.mxu3 %v657_v34  ;;  %724 = vmatpush.msra.mxu0 %v650_v36 }
  0xa5   : > { %834 = vmatpush.msra.mxu2 %v660_v29  ;;  %780 = vmatpush.msra.mxu1 %v651_v37  ;;  %v4302_v37 = vld [vmem:[%s7083_s1] ss:$0 sm:$0xff] }
  0xa6   : > { %337 = vadd.xlane.f32.xlu1 %v4081_v50  ;;  %333 = vadd.xlane.f32.xlu0 %v4084_v51 }
  0xa7   : > { %393 = vadd.xlane.f32.xlu2 %v376_v52  ;;  %835 = vmatpush.msra.mxu2 %v656_v33  ;;  %v642_v52 = vld [vmem:[%s7085_s3 + $0x20] sm:$0xff] }
  0xa8   : > { %892 = vmatpush.msra.mxu3 %v653_v43  ;;  %725 = vmatpush.msra.mxu0 %v646_v44 }
  0xa9   : > { %836 = vmatpush.msra.mxu2 %v652_v40  ;;  %781 = vmatpush.msra.mxu1 %v647_v45 }
  0xaa   : > { %893 = vmatpush.msra.mxu3 %v649_v49  ;;  %726 = vmatpush.msra.mxu0 %v642_v52  ;;  %v4313_v52 = vld [vmem:[%s7084_s2] ss:$0 sm:$0xff] }
  0xab   : > { %837 = vmatpush.msra.mxu2 %v648_v48 }
  0xac   : > { %894 = vmatpush.msra.mxu3 %v645_v57  ;;  %727 = vmatpush.msra.mxu0 %v638_v58 }
  0xad   : > { %838 = vmatpush.msra.mxu2 %v644_v56 }
  0xae   : > { %397 = vadd.xlane.f32.xlu0 %v378_v54  ;;  %v643_v54 = vld [vmem:[%s7085_s3 + $0x28] sm:$0xff]  ;;  %895 = vmatpush.msra.mxu3 %v641_v61 }
  0xaf   : > { %335 = vadd.xlane.f32.xlu2 %v4096_v55  ;;  %782 = vmatpush.msra.mxu1 %v643_v54 }
  0xb0   : > { %839 = vmatpush.msra.mxu2 %v640_v60 }
  0xb1   : > { %783 = vmatpush.msra.mxu1 %v639_v59 }
 0x101   : > { %v390_v62 = vpop.xlane.xlu1 %389  ;;  %v386_v63 = vpop.xlane.xlu0 %385 }
 0x102   : > { %v413_v0 = vmul.f32 %v390_v62, %v4012_v13  ;;  %v411_v1 = vmul.f32 %v386_v63, %v4012_v13 }
 0x104   : > { %v4269_v2 = vadd.f32 1e-05, %v413_v0  ;;  %v424_v3 = vadd.f32 1e-05, %v411_v1 }
 0x106   : > { %3773 = vrsqrt.f32 %v4269_v2  ;;  %vm443_vm2 = vweird.f32 %v424_v3  ;;  %vm463_vm4 = vweird.f32 %v4269_v2 }
 0x107   : > { %3775 = vrsqrt.f32 %v424_v3 }
 0x109   : > { %v332_v4 = vpop.xlane.xlu1 %331  ;;  %v328_v5 = vpop.xlane.xlu0 %327 }
 0x10a   : > { %v355_v6 = vmul.f32 %v4012_v13, %v332_v4  ;;  %v388_v7 = vpop.xlane.xlu2 %387  ;;  %v353_v8 = vmul.f32 %v4012_v13, %v328_v5 }
 0x10b   : > { %v412_v9 = vmul.f32 %v388_v7, %v4012_v13 }
 0x10c   : > { %v4275_v10 = vpop.eup %3773  ;;  %v4278_v11 = vsub.f32 %v4054_v38, %v355_v6  ;;  %v4281_v12 = vsub.f32 %v4057_v39, %v353_v8 }
 0x10d   : > { %v3776_v14 = vpop.eup %3775  ;;  %v425_v15 = vadd.f32 1e-05, %v412_v9  ;;  %v458_v16 = vmul.f32 %v4275_v10, %v4269_v2  ;;  %vm464_vm5 = vweird.f32 %v4275_v10 }
 0x10e   : > { %v438_v17 = vmul.f32 %v3776_v14, %v424_v3  ;;  %v381_v18 = vmul.f32 %v4278_v11, %v4278_v11  ;;  %v379_v21 = vmul.f32 %v4281_v12, %v4281_v12  ;;  %vm444_vm1 = vweird.f32 %v3776_v14  ;;  %vm4333_vm8 = vmor %vm463_vm4, %vm464_vm5 }
 0x10f   : > { %3777 = vrsqrt.f32 %v425_v15  ;;  %v459_v39 = vmul.f32 %v4275_v10, %v458_v16  ;;  %vm445_vm3 = vmor %vm443_vm2, %vm444_vm1  ;;  %vm453_vm7 = vweird.f32 %v425_v15 }
 0x110   : > { %v439_v22 = vmul.f32 %v3776_v14, %v438_v17  ;;  %403 = vadd.xlane.f32.xlu1 %v381_v18  ;;  %399 = vadd.xlane.f32.xlu2 %v379_v21 }
 0x111   : > { %v396_v38 = vpop.xlane.xlu1 %395  ;;  %v392_v23 = vpop.xlane.xlu0 %391  ;;  %v460_v33 = vmul.f32 0.5, %v459_v39 }
 0x112   : > { %v440_v24 = vmul.f32 0.5, %v439_v22  ;;  %v330_v25 = vpop.xlane.xlu2 %329  ;;  %v414_v26 = vmul.f32 %v392_v23, %v4012_v13  ;;  %v416_v29 = vmul.f32 %v396_v38, %v4012_v13 }
 0x113   : > { %v354_v27 = vmul.f32 %v4012_v13, %v330_v25  ;;  %v461_v54 = vsub.f32 1.5, %v460_v33 }
 0x114   : > { %v441_v28 = vsub.f32 1.5, %v440_v24  ;;  %v4293_v30 = vadd.f32 1e-05, %v414_v26  ;;  %v4304_v44 = vadd.f32 1e-05, %v416_v29 }
 0x115   : > { %v3778_v31 = vpop.eup %3777  ;;  %v4296_v32 = vsub.f32 %v4073_v46, %v354_v27  ;;  %v462_v4 = vmul.f32 %v4275_v10, %v461_v54 }
 0x116   : > { %v442_v34 = vmul.f32 %v3776_v14, %v441_v28  ;;  %v448_v36 = vmul.f32 %v3778_v31, %v425_v15  ;;  %3779 = vrsqrt.f32 %v4293_v30  ;;  %vm454_vm6 = vweird.f32 %v3778_v31 }
 0x117   : > { %v380_v46 = vmul.f32 %v4296_v32, %v4296_v32  ;;  %3781 = vrsqrt.f32 %v4304_v44  ;;  %vm455_vm9 = vmor %vm453_vm7, %vm454_vm6  ;;  %v466_v16 = vsel %vm4333_vm8, %v4275_v10, %v462_v4  ;;  %vm473_vm10 = vweird.f32 %v4293_v30 }
 0x118   : > { %v446_v40 = vsel %vm445_vm3, %v3776_v14, %v442_v34  ;;  %v449_v43 = vmul.f32 %v3778_v31, %v448_v36  ;;  %v569_v24 = vmul.f32 %v466_v16, %v4016_v19  ;;  %vm493_vm0 = vweird.f32 %v4304_v44 }
 0x119   : > { %v567_v45 = vmul.f32 %v446_v40, %v4018_v20  ;;  %v338_v48 = vpop.xlane.xlu1 %337  ;;  %v334_v49 = vpop.xlane.xlu0 %333  ;;  %401 = vadd.xlane.f32.xlu0 %v380_v46 }
 0x11a   : > { %v450_v56 = vmul.f32 0.5, %v449_v43  ;;  %v358_v57 = vmul.f32 %v4012_v13, %v338_v48  ;;  %v394_v58 = vpop.xlane.xlu2 %393  ;;  %v356_v59 = vmul.f32 %v4012_v13, %v334_v49  ;;  %v585_v19 = vmul.f32 %v4302_v37, %v569_v24 }
 0x11b   : > { %v415_v20 = vmul.f32 %v394_v58, %v4012_v13  ;;  %v583_v60 = vmul.f32 %v4302_v37, %v567_v45 }
 0x11c   : > { %v451_v61 = vsub.f32 1.5, %v450_v56  ;;  %v4322_v62 = vsub.f32 %v4081_v50, %v358_v57  ;;  %v4325_v63 = vsub.f32 %v4084_v51, %v356_v59  ;;  %v3780_v0 = vpop.eup %3779  ;;  %v601_v46 = vadd.f32 %v4313_v52, %v585_v19 }
 0x11d   : > { %v4327_v1 = vadd.f32 1e-05, %v415_v20  ;;  %v599_v3 = vadd.f32 %v4313_v52, %v583_v60  ;;  %v468_v50 = vmul.f32 %v3780_v0, %v4293_v30  ;;  %v4345_v15 = vpop.eup %3781  ;;  %vm474_vm11 = vweird.f32 %v3780_v0 }
 0x11e   : > { %v452_v6 = vmul.f32 %v3778_v31, %v451_v61  ;;  %v384_v51 = vmul.f32 %v4322_v62, %v4322_v62  ;;  %v382_v7 = vmul.f32 %v4325_v63, %v4325_v63  ;;  %v488_v25 = vmul.f32 %v4345_v15, %v4304_v44  ;;  %vm475_vm12 = vmor %vm473_vm10, %vm474_vm11 }
 0x11f   : > { %3783 = vrsqrt.f32 %v4327_v1  ;;  %728 = vmatmul.f32.vlgmr.msra.gmra.mxu0 %v599_v3  ;;  %784 = vmatmul.f32.vlgmr.msra.gmra.mxu1 %v599_v3  ;;  %v469_v8 = vmul.f32 %v3780_v0, %v468_v50  ;;  %vm483_vm13 = vweird.f32 %v4327_v1  ;;  %vm494_vm1 = vweird.f32 %v4345_v15 }
 0x120   : > { %v456_v2 = vsel %vm455_vm9, %v3778_v31, %v452_v6  ;;  %840 = vmatmul.f32.vlgmr.msra.gmra.mxu2 %v599_v3  ;;  %896 = vmatmul.f32.vlgmr.msra.gmra.mxu3 %v599_v3  ;;  %vm495_vm2 = vmor %vm493_vm0, %vm494_vm1 }
 0x121   : > { %v568_v9 = vmul.f32 %v456_v2, %v4049_v35  ;;  %409 = vadd.xlane.f32.xlu1 %v384_v51  ;;  %405 = vadd.xlane.f32.xlu2 %v382_v7  ;;  %v398_v14 = vpop.xlane.xlu0 %397  ;;  %v470_v17 = vmul.f32 0.5, %v469_v8 }
 0x122   : > { %v336_v18 = vpop.xlane.xlu2 %335  ;;  %v417_v21 = vmul.f32 %v398_v14, %v4012_v13 }
 0x123   : > { %v357_v22 = vmul.f32 %v4012_v13, %v336_v18  ;;  %v584_v38 = vmul.f32 %v4302_v37, %v568_v9  ;;  %v471_v23 = vsub.f32 1.5, %v470_v17 }
 0x124   : > { %v430_v35 = vadd.f32 1e-05, %v417_v21 }
 0x125   : > { %v3784_v39 = vpop.eup %3783  ;;  %v4358_v10 = vsub.f32 %v4096_v55, %v357_v22  ;;  %v600_v26 = vadd.f32 %v4313_v52, %v584_v38  ;;  %v472_v27 = vmul.f32 %v3780_v0, %v471_v23  ;;  %v489_v55 = vmul.f32 %v4345_v15, %v488_v25 }
 0x126   : > { %v478_v28 = vmul.f32 %v3784_v39, %v4327_v1  ;;  %3785 = vrsqrt.f32 %v430_v35  ;;  %vm484_vm14 = vweird.f32 %v3784_v39  ;;  %vm503_vm3 = vweird.f32 %v430_v35 }
 0x127   : > { %731 = vmatmul.f32.gmra.mxu0 %v600_v26  ;;  %787 = vmatmul.f32.gmra.mxu1 %v600_v26  ;;  %v383_v29 = vmul.f32 %v4358_v10, %v4358_v10  ;;  %v476_v33 = vsel %vm475_vm12, %v3780_v0, %v472_v27  ;;  %v490_v45 = vmul.f32 0.5, %v489_v55  ;;  %vm485_vm15 = vmor %vm483_vm13, %vm484_vm14 }
 0x128   : > { %v479_v31 = vmul.f32 %v3784_v39, %v478_v28  ;;  %843 = vmatmul.f32.gmra.mxu2 %v600_v26  ;;  %899 = vmatmul.f32.gmra.mxu3 %v600_v26  ;;  %v570_v43 = vmul.f32 %v476_v33, %v4065_v42 }
 0x129   : > { %407 = vadd.xlane.f32.xlu0 %v383_v29  ;;  %v491_v54 = vsub.f32 1.5, %v490_v45 }
 0x12a   : > { %v480_v34 = vmul.f32 0.5, %v479_v31  ;;  %v586_v49 = vmul.f32 %v4302_v37, %v570_v43 }
 0x12b   : > { %v492_v59 = vmul.f32 %v4345_v15, %v491_v54 }
 0x12c   : > { %v3786_v36 = vpop.eup %3785  ;;  %v481_v40 = vsub.f32 1.5, %v480_v34  ;;  %v602_v58 = vadd.f32 %v4313_v52, %v586_v49 }
 0x12d   : > { %v498_v30 = vmul.f32 %v3786_v36, %v430_v35  ;;  %v496_v61 = vsel %vm495_vm2, %v4345_v15, %v492_v59  ;;  %vm504_vm4 = vweird.f32 %v3786_v36 }
 0x12e   : > { %v482_v48 = vmul.f32 %v3784_v39, %v481_v40  ;;  %v572_v44 = vmul.f32 %v496_v61, %v4063_v41  ;;  %vm505_vm5 = vmor %vm503_vm3, %vm504_vm4 }
 0x12f   : > { %734 = vmatmul.f32.gmra.mxu0 %v601_v46  ;;  %790 = vmatmul.f32.gmra.mxu1 %v601_v46  ;;  %v499_v57 = vmul.f32 %v3786_v36, %v498_v30 }
 0x130   : > { %846 = vmatmul.f32.gmra.mxu2 %v601_v46  ;;  %902 = vmatmul.f32.gmra.mxu3 %v601_v46  ;;  %v486_v56 = vsel %vm485_vm15, %v3784_v39, %v482_v48  ;;  %v588_v3 = vmul.f32 %v4302_v37, %v572_v44  ;;  %v702_v39 = vld [vmem:[%s7086_s4] sm:$0xf] }
 0x131   : > { %v571_v42 = vmul.f32 %v486_v56, %v4076_v47  ;;  %v500_v20 = vmul.f32 0.5, %v499_v57  ;;  %v4407_v31 = vperm.slane %v702_v39, 0  ;;  %v4409_v19 = vperm.slane %v702_v39, 1 }
 0x132   : > { %v604_v6 = vadd.f32 %v4313_v52, %v588_v3 }
 0x133   : > { %v587_v60 = vmul.f32 %v4302_v37, %v571_v42  ;;  %v501_v0 = vsub.f32 1.5, %v500_v20  ;;  %7152 = vst [vmem:[#allocation4_spill] sm:$0xff] %v4407_v31  ;;  %v4427_v42 = vperm.slane %v702_v39, 2 }
 0x134   : > { %7153 = vst [vmem:[#allocation5_spill] sm:$0xff] %v4409_v19 }
 0x135   : > { %v603_v47 = vadd.f32 %v4313_v52, %v587_v60  ;;  %v502_v1 = vmul.f32 %v3786_v36, %v501_v0  ;;  %7154 = vst [vmem:[#allocation6_spill] sm:$0xff] %v4427_v42  ;;  %v4438_v0 = vperm.slane %v702_v39, 3 }
 0x137   : > { %737 = vmatmul.f32.gmra.mxu0 %v602_v58  ;;  %793 = vmatmul.f32.gmra.mxu1 %v602_v58  ;;  %v506_v4 = vsel %vm505_vm5, %v3786_v36, %v502_v1  ;;  %7155 = vst [vmem:[#allocation7_spill] sm:$0xff] %v4438_v0 }
 0x138   : > { %849 = vmatmul.f32.gmra.mxu2 %v602_v58  ;;  %905 = vmatmul.f32.gmra.mxu3 %v602_v58  ;;  %v573_v5 = vmul.f32 %v506_v4, %v4091_v53 }
 0x13a   : > { %v589_v41 = vmul.f32 %v4302_v37, %v573_v5 }
 0x13c   : > { %v605_v50 = vadd.f32 %v4313_v52, %v589_v41 }
 0x13f   : > { %740 = vmatmul.f32.gmra.mxu0 %v603_v47  ;;  %796 = vmatmul.f32.gmra.mxu1 %v603_v47 }
 0x140   : > { %852 = vmatmul.f32.gmra.mxu2 %v603_v47  ;;  %908 = vmatmul.f32.gmra.mxu3 %v603_v47 }
 0x147   : > { %743 = vmatmul.f32.gmra.mxu0 %v604_v6  ;;  %799 = vmatmul.f32.gmra.mxu1 %v604_v6 }
 0x148   : > { %855 = vmatmul.f32.gmra.mxu2 %v604_v6  ;;  %911 = vmatmul.f32.gmra.mxu3 %v604_v6 }
 0x14f   : > { %746 = vmatmul.f32.gmra.mxu0 %v605_v50  ;;  %802 = vmatmul.f32.gmra.mxu1 %v605_v50 }
 0x150   : > { %858 = vmatmul.f32.gmra.mxu2 %v605_v50  ;;  %914 = vmatmul.f32.gmra.mxu3 %v605_v50 }
 0x183   : > { %v400_v51 = vpop.xlane.xlu2 %399  ;;  %v404_v7 = vpop.xlane.xlu1 %403 }
 0x184   : > { %v418_v2 = vmul.f32 %v400_v51, %v4012_v13  ;;  %v420_v53 = vmul.f32 %v404_v7, %v4012_v13  ;;  %v3239_v51 = vld [vmem:[%s7087_s5 + $0x78] sm:$0xff] }
 0x185   : > { %v3255_v7 = vld [vmem:[%s7087_s5 + $0xf8] sm:$0xff]  ;;  %3288 = vmatpush.msrb.mxu0 %v3239_v51 }
 0x186   : > { %v431_v8 = vadd.f32 1e-05, %v418_v2  ;;  %v4388_v9 = vadd.f32 1e-05, %v420_v53  ;;  %3344 = vmatpush.msrb.mxu1 %v3255_v7  ;;  %v3237_v7 = vld [vmem:[%s7087_s5 + $0x68] sm:$0xff] }
 0x188   : > { %3787 = vrsqrt.f32 %v431_v8  ;;  %vm513_vm7 = vweird.f32 %v431_v8  ;;  %vm533_vm11 = vweird.f32 %v4388_v9 }
 0x189   : > { %3789 = vrsqrt.f32 %v4388_v9 }
 0x18c   : > { %v402_v14 = vpop.xlane.xlu0 %401 }
 0x18d   : > { %v419_v15 = vmul.f32 %v402_v14, %v4012_v13 }
 0x18e   : > { %v3788_v16 = vpop.eup %3787 }
 0x18f   : > { %v508_v17 = vmul.f32 %v3788_v16, %v431_v8  ;;  %v4392_v18 = vadd.f32 1e-05, %v419_v15  ;;  %v4395_v38 = vpop.eup %3789  ;;  %vm514_vm6 = vweird.f32 %v3788_v16 }
 0x190   : > { %v528_v25 = vmul.f32 %v4395_v38, %v4388_v9  ;;  %vm515_vm8 = vmor %vm513_vm7, %vm514_vm6  ;;  %vm534_vm12 = vweird.f32 %v4395_v38 }
 0x191   : > { %v509_v21 = vmul.f32 %v3788_v16, %v508_v17  ;;  %3791 = vrsqrt.f32 %v4392_v18  ;;  %vm523_vm9 = vweird.f32 %v4392_v18  ;;  %vm4496_vm14 = vmor %vm533_vm11, %vm534_vm12 }
 0x192   : > { %v529_v36 = vmul.f32 %v4395_v38, %v528_v25 }
 0x193   : > { %v510_v22 = vmul.f32 0.5, %v509_v21 }
 0x194   : > { %v406_v23 = vpop.xlane.xlu2 %405  ;;  %v410_v29 = vpop.xlane.xlu1 %409  ;;  %v530_v58 = vmul.f32 0.5, %v529_v36 }
 0x195   : > { %v511_v35 = vsub.f32 1.5, %v510_v22  ;;  %v421_v27 = vmul.f32 %v406_v23, %v4012_v13  ;;  %v423_v40 = vmul.f32 %v410_v29, %v4012_v13 }
 0x196   : > { %v531_v6 = vsub.f32 1.5, %v530_v58 }
 0x197   : > { %v4400_v24 = vpop.eup %3791  ;;  %v512_v26 = vmul.f32 %v3788_v16, %v511_v35  ;;  %v4415_v43 = vadd.f32 1e-05, %v421_v27  ;;  %v4429_v59 = vadd.f32 1e-05, %v423_v40 }
 0x198   : > { %v518_v28 = vmul.f32 %v4400_v24, %v4392_v18  ;;  %vm524_vm10 = vweird.f32 %v4400_v24  ;;  %v532_v18 = vmul.f32 %v4395_v38, %v531_v6 }
 0x199   : > { %v516_v55 = vsel %vm515_vm8, %v3788_v16, %v512_v26  ;;  %3793 = vrsqrt.f32 %v4415_v43  ;;  %vm4477_vm13 = vmor %vm523_vm9, %vm524_vm10  ;;  %vm563_vm15 = vweird.f32 %v4429_v59  ;;  %vm543_vm0 = vweird.f32 %v4415_v43 }
 0x19a   : > { %v574_v33 = vmul.f32 %v516_v55, %v4281_v12  ;;  %v519_v34 = vmul.f32 %v4400_v24, %v518_v28  ;;  %3795 = vrsqrt.f32 %v4429_v59  ;;  %v536_v40 = vsel %vm4496_vm14, %v4395_v38, %v532_v18  ;;  %v3254_v38 = vld [vmem:[%s7087_s5 + $0xf0] sm:$0xff] }
 0x19b   : > { %3345 = vmatpush.msrb.mxu1 %v3254_v38 }
 0x19c   : > { %v729_v46 = vpop.f32.mrf.mxu0  ;;  %v785_v45 = vpop.f32.mrf.mxu1  ;;  %v520_v48 = vmul.f32 0.5, %v519_v34  ;;  %v590_v57 = vmul.f32 %v4302_v37, %v574_v33 }
 0x19d   : > { %v4418_v30 = vadd.f32 %v729_v46, %v4407_v31  ;;  %v4421_v49 = vadd.f32 %v785_v45, %v4409_v19  ;;  %v408_v54 = vpop.xlane.xlu0 %407 }
 0x19e   : > { %v521_v56 = vsub.f32 1.5, %v520_v48  ;;  %v422_v61 = vmul.f32 %v408_v54, %v4012_v13  ;;  %v606_v3 = vadd.f32 %v4313_v52, %v590_v57 }
 0x19f   : > { %v4424_v12 = vmul.f32 0.70710677, %v4418_v30  ;;  %v4433_v20 = vmul.f32 0.70710677, %v4421_v49  ;;  %v4469_v15 = vpop.eup %3793 }
 0x1a0   : > { %v522_v47 = vmul.f32 %v4400_v24, %v521_v56  ;;  %v4461_v8 = vadd.f32 1e-05, %v422_v61  ;;  %749 = vmatmul.f32.gmra.mxu0 %v606_v3  ;;  %805 = vmatmul.f32.gmra.mxu1 %v606_v3  ;;  %v4506_v28 = vpop.eup %3795  ;;  %v3238_v56 = vld [vmem:[%s7087_s5 + $0x70] sm:$0xff]  ;;  %vm544_vm1 = vweird.f32 %v4469_v15 }
 0x1a1   : > { %v1040_v60 = vmul.f32 %v4424_v12, %v4424_v12  ;;  %v1080_v44 = vmul.f32 %v4433_v20, %v4433_v20  ;;  %861 = vmatmul.f32.gmra.mxu2 %v606_v3  ;;  %917 = vmatmul.f32.gmra.mxu3 %v606_v3  ;;  %vm564_vm2 = vweird.f32 %v4506_v28  ;;  %vm4618_vm3 = vmor %vm543_vm0, %vm544_vm1 }
 0x1a2   : > { %v526_v22 = vsel %vm4477_vm13, %v4400_v24, %v522_v47  ;;  %v538_v24 = vmul.f32 %v4469_v15, %v4415_v43  ;;  %3797 = vrsqrt.f32 %v4461_v8  ;;  %3289 = vmatpush.msrb.mxu0 %v3238_v56  ;;  %v576_v47 = vmul.f32 %v536_v40, %v4278_v11  ;;  %v3287_v43 = vld [vmem:[%s7087_s5 + $0x1f8] sm:$0xff]  ;;  %vm4651_vm4 = vmor %vm563_vm15, %vm564_vm2 }
 0x1a3   : > { %v4445_v1 = vmin.f32 %v1040_v60, 16.0  ;;  %v841_v4 = vpop.f32.mrf.mxu2  ;;  %v897_v5 = vpop.f32.mrf.mxu3  ;;  %v4449_v13 = vmin.f32 %v1080_v44, 16.0  ;;  %v575_v29 = vmul.f32 %v526_v22, %v4296_v32  ;;  %v558_v32 = vmul.f32 %v4506_v28, %v4429_v59  ;;  %3456 = vmatpush.msrb.mxu3 %v3287_v43 }
 0x1a4   : > { %v4452_v41 = vadd.f32 %v841_v4, %v4427_v42  ;;  %v732_v50 = vpop.f32.mrf.mxu0  ;;  %v4464_v53 = vadd.f32 %v897_v5, %v4438_v0  ;;  %v788_v34 = vpop.f32.mrf.mxu1  ;;  %v539_v57 = vmul.f32 %v4469_v15, %v538_v24  ;;  %3290 = vmatpush.msrb.mxu0 %v3237_v7  ;;  %v4587_v7 = vmul.f32 0.5, %v4418_v30 }
 0x1a5   : > { %7156 = vst [vmem:[#allocation8_spill] sm:$0xff] %v4445_v1  ;;  %v1042_v2 = vmul.f32 2.1237322e-06, %v4445_v1  ;;  %v4467_v14 = vadd.f32 %v732_v50, %v4407_v31  ;;  %v1082_v17 = vmul.f32 2.1237322e-06, %v4449_v13  ;;  %v4526_v54 = vadd.f32 %v788_v34, %v4409_v19 }
 0x1a6   : > { %7157 = vst [vmem:[#allocation9_spill] sm:$0xff] %v4449_v13  ;;  %v4483_v21 = vmul.f32 0.70710677, %v4452_v41  ;;  %v4489_v35 = vmul.f32 0.70710677, %v4464_v53  ;;  %v591_v61 = vmul.f32 %v4302_v37, %v575_v29  ;;  %v559_v11 = vmul.f32 %v4506_v28, %v558_v32 }
 0x1a7   : > { %7158 = vst [vmem:[#allocation10_spill] sm:$0xff] %v4467_v14  ;;  %v1043_v23 = vadd.f32 0.00028619796, %v1042_v2  ;;  %v1083_v39 = vadd.f32 0.00028619796, %v1082_v17  ;;  %v3253_v2 = vld [vmem:[%s7087_s5 + $0xe8] sm:$0xff]  ;;  %vm553_vm5 = vweird.f32 %v4461_v8 }
 0x1a8   : > { %v1120_v25 = vmul.f32 %v4483_v21, %v4483_v21  ;;  %v4504_v27 = vmul.f32 0.70710677, %v4467_v14  ;;  %v1160_v9 = vmul.f32 %v4489_v35, %v4489_v35  ;;  %7164 = vst [vmem:[#allocation12_spill] sm:$0xff] %v4526_v54  ;;  %v4537_v44 = vpop.eup %3797  ;;  %v4543_v5 = vmul.f32 0.70710677, %v4526_v54  ;;  %3346 = vmatpush.msrb.mxu1 %v3253_v2 }
 0x1a9   : > { %v1044_v55 = vmul.f32 %v1043_v23, %v4445_v1  ;;  %v1084_v36 = vmul.f32 %v1083_v39, %v4449_v13  ;;  %v607_v51 = vadd.f32 %v4313_v52, %v591_v61  ;;  %v540_v22 = vmul.f32 0.5, %v539_v57  ;;  %7168 = vst [vmem:[#allocation16_spill] sm:$0xff] %v4587_v7 }
 0x1aa   : > { %v4510_v33 = vmin.f32 %v1120_v25, 16.0  ;;  %v4519_v45 = vmin.f32 %v1160_v9, 16.0  ;;  %v1200_v48 = vmul.f32 %v4504_v27, %v4504_v27  ;;  %v1240_v17 = vmul.f32 %v4543_v5, %v4543_v5 }
 0x1ab   : > { %v1045_v58 = vadd.f32 0.0036580483, %v1044_v55  ;;  %v1085_v3 = vadd.f32 0.0036580483, %v1084_v36  ;;  %v844_v6 = vpop.f32.mrf.mxu2  ;;  %v548_v23 = vmul.f32 %v4537_v44, %v4461_v8  ;;  %752 = vmatmul.f32.gmra.mxu0 %v607_v51  ;;  %808 = vmatmul.f32.gmra.mxu1 %v607_v51  ;;  %v900_v29 = vpop.f32.mrf.mxu3  ;;  %v592_v55 = vmul.f32 %v4302_v37, %v576_v47 }
 0x1ac   : > { %7163 = vst [vmem:[#allocation11_spill] sm:$0xff] %v4510_v33  ;;  %v1122_v46 = vmul.f32 2.1237322e-06, %v4510_v33  ;;  %v1162_v60 = vmul.f32 2.1237322e-06, %v4519_v45  ;;  %v4540_v4 = vmin.f32 %v1200_v48, 16.0  ;;  %v4559_v39 = vadd.f32 %v844_v6, %v4427_v42  ;;  %864 = vmatmul.f32.gmra.mxu2 %v607_v51  ;;  %920 = vmatmul.f32.gmra.mxu3 %v607_v51 }
 0x1ad   : > { %v1046_v25 = vmul.f32 %v1045_v58, %v4445_v1  ;;  %v1086_v26 = vmul.f32 %v1085_v3, %v4449_v13  ;;  %v4565_v34 = vmin.f32 %v1240_v17, 16.0  ;;  %v560_v36 = vmul.f32 0.5, %v559_v11 }
 0x1ae   : > { %v1123_v50 = vadd.f32 0.00028619796, %v1122_v46  ;;  %v1202_v16 = vmul.f32 2.1237322e-06, %v4540_v4  ;;  %v1163_v18 = vadd.f32 0.00028619796, %v1162_v60  ;;  %v549_v32 = vmul.f32 %v4537_v44, %v548_v23 }
 0x1af   : > { %7165 = vst [vmem:[#allocation13_spill] sm:$0xff] %v4559_v39  ;;  %v4569_v40 = vmul.f32 0.70710677, %v4559_v39  ;;  %v541_v46 = vsub.f32 1.5, %v540_v22  ;;  %v4574_v56 = vadd.f32 %v900_v29, %v4438_v0  ;;  %v1047_v38 = vadd.f32 0.05243302, %v1046_v25  ;;  %v791_v22 = vpop.f32.mrf.mxu1 }
 0x1b0   : > { %v1203_v24 = vadd.f32 0.00028619796, %v1202_v16  ;;  %v1124_v9 = vmul.f32 %v1123_v50, %v4510_v33  ;;  %7166 = vst [vmem:[#allocation14_spill] sm:$0xff] %v4565_v34  ;;  %v1164_v48 = vmul.f32 %v1163_v18, %v4519_v45  ;;  %v1087_v57 = vadd.f32 0.05243302, %v1086_v26  ;;  %v735_v50 = vpop.f32.mrf.mxu0 }
 0x1b1   : > { %7167 = vst [vmem:[#allocation15_spill] sm:$0xff] %v4574_v56  ;;  %v608_v60 = vadd.f32 %v4313_v52, %v592_v55  ;;  %v1242_v47 = vmul.f32 2.1237322e-06, %v4565_v34  ;;  %v1280_v3 = vmul.f32 %v4569_v40, %v4569_v40  ;;  %v4582_v6 = vmul.f32 0.70710677, %v4574_v56  ;;  %v3236_v55 = vld [vmem:[%s7087_s5 + $0x60] sm:$0xff] }
 0x1b2   : > { %v1204_v58 = vmul.f32 %v1203_v24, %v4540_v4  ;;  %v1125_v61 = vadd.f32 0.0036580483, %v1124_v9  ;;  %v561_v51 = vsub.f32 1.5, %v560_v36  ;;  %v4590_v2 = vmul.f32 %v4469_v15, %v541_v46  ;;  %v3252_v9 = vld [vmem:[%s7087_s5 + $0xe0] sm:$0xff]  ;;  %v3271_v36 = vld [vmem:[%s7087_s5 + $0x178] sm:$0xff]  ;;  %3291 = vmatpush.msrb.mxu0 %v3236_v55  ;;  %v3234_v55 = vld [vmem:[%s7087_s5 + $0x50] sm:$0xff] }
 0x1b3   : > { %v4592_v11 = vmul.f32 0.5, %v549_v32  ;;  %v1165_v16 = vadd.f32 0.0036580483, %v1164_v48  ;;  %v1320_v17 = vmul.f32 %v4582_v6, %v4582_v6  ;;  %755 = vmatmul.f32.gmra.mxu0 %v608_v60  ;;  %811 = vmatmul.f32.gmra.mxu1 %v608_v60  ;;  %v1048_v23 = vmul.f32 %v1047_v38, %v4445_v1 }
 0x1b4   : > { %v1088_v18 = vmul.f32 %v1087_v57, %v4449_v13  ;;  %v1205_v25 = vadd.f32 0.0036580483, %v1204_v58  ;;  %v4599_v30 = vadd.f32 %v735_v50, %v4407_v31  ;;  %867 = vmatmul.f32.gmra.mxu2 %v608_v60  ;;  %923 = vmatmul.f32.gmra.mxu3 %v608_v60  ;;  %v1126_v26 = vmul.f32 %v1125_v61, %v4510_v33  ;;  %v3231_v61 = vld [vmem:[%s7087_s5 + $0x38] sm:$0xff] }
 0x1b5   : > { %v1243_v24 = vadd.f32 0.00028619796, %v1242_v47  ;;  %v4603_v29 = vmin.f32 %v1280_v3, 16.0  ;;  %v4623_v32 = vmul.f32 0.5, %v4421_v49  ;;  %v4626_v48 = vmul.f32 0.5, %v4452_v41  ;;  %3347 = vmatpush.msrb.mxu1 %v3252_v9  ;;  %3400 = vmatpush.msrb.mxu2 %v3271_v36 }
 0x1b6   : > { %v4628_v38 = vmin.f32 %v1320_v17, 16.0  ;;  %v4631_v57 = vadd.f32 %v791_v22, %v4409_v19  ;;  %v4637_v58 = vmul.f32 %v4506_v28, %v561_v51  ;;  %v546_v49 = vsel %vm4618_vm3, %v4469_v15, %v4590_v2  ;;  %v847_v51 = vpop.f32.mrf.mxu2  ;;  %v3235_v2 = vld [vmem:[%s7087_s5 + $0x58] sm:$0xff] }
 0x1b7   : > { %7169 = vst [vmem:[#allocation17_spill] sm:$0xff] %v4603_v29  ;;  %v1166_v41 = vmul.f32 %v1165_v16, %v4519_v45  ;;  %v4645_v60 = vmul.f32 0.70710677, %v4599_v30  ;;  %v1049_v47 = vadd.f32 0.18741608, %v1048_v23  ;;  %v551_v50 = vsub.f32 1.5, %v4592_v11  ;;  %3292 = vmatpush.msrb.mxu0 %v3235_v2  ;;  %v794_v39 = vpop.f32.mrf.mxu1 }
 0x1b8   : > { %7172 = vst [vmem:[#allocation18_spill] sm:$0xff] %v4623_v32  ;;  %v1089_v3 = vadd.f32 0.18741608, %v1088_v18  ;;  %v1206_v15 = vmul.f32 %v1205_v25, %v4540_v4  ;;  %v1127_v16 = vadd.f32 0.05243302, %v1126_v26  ;;  %v1244_v17 = vmul.f32 %v1243_v24, %v4565_v34  ;;  %v3251_v11 = vld [vmem:[%s7087_s5 + $0xd8] sm:$0xff]  ;;  %v903_v26 = vpop.f32.mrf.mxu3 }
 0x1b9   : > { %7173 = vst [vmem:[#allocation19_spill] sm:$0xff] %v4626_v48  ;;  %v1282_v59 = vmul.f32 2.1237322e-06, %v4603_v29  ;;  %v1360_v22 = vmul.f32 %v4645_v60, %v4645_v60  ;;  %v3270_v23 = vld [vmem:[%s7087_s5 + $0x170] sm:$0xff]  ;;  %v1322_v18 = vmul.f32 2.1237322e-06, %v4628_v38  ;;  %3348 = vmatpush.msrb.mxu1 %v3251_v11  ;;  %v4687_v43 = vadd.f32 %v847_v51, %v4427_v42  ;;  %3293 = vmatpush.msrb.mxu0 %v3234_v55 }
 0x1ba   : > { %7174 = vst [vmem:[#allocation20_spill] sm:$0xff] %v4628_v38  ;;  %v4672_v25 = vmul.f32 0.70710677, %v4631_v57  ;;  %3401 = vmatpush.msrb.mxu2 %v3270_v23  ;;  %v3286_v24 = vld [vmem:[%s7087_s5 + $0x1f0] sm:$0xff]  ;;  %v1167_v36 = vadd.f32 0.05243302, %v1166_v41  ;;  %v4699_v41 = vmul.f32 %v546_v49, %v4325_v63  ;;  %v1050_v51 = vmul.f32 %v1049_v47, %v4445_v1 }
 0x1bb   : > { %v4684_v46 = vmin.f32 %v1360_v22, 16.0  ;;  %3457 = vmatpush.msrb.mxu3 %v3286_v24  ;;  %v3250_v2 = vld [vmem:[%s7087_s5 + $0xd0] sm:$0xff]  ;;  %v3269_v11 = vld [vmem:[%s7087_s5 + $0x168] sm:$0xff]  ;;  %vm554_vm6 = vweird.f32 %v4537_v44  ;;  %v1207_v22 = vadd.f32 0.05243302, %v1206_v15  ;;  %v1128_v49 = vmul.f32 %v1127_v16, %v4510_v33  ;;  %v738_v16 = vpop.f32.mrf.mxu0 }
 0x1bc   : > { %v3285_v23 = vld [vmem:[%s7087_s5 + $0x1e8] sm:$0xff]  ;;  %v1400_v24 = vmul.f32 %v4672_v25, %v4672_v25  ;;  %3349 = vmatpush.msrb.mxu1 %v3250_v2  ;;  %3402 = vmatpush.msrb.mxu2 %v3269_v11  ;;  %v1245_v47 = vadd.f32 0.0036580483, %v1244_v17  ;;  %v4715_v15 = vadd.f32 %v903_v26, %v4438_v0  ;;  %v3268_v2 = vld [vmem:[%s7087_s5 + $0x160] sm:$0xff]  ;;  %v4721_v11 = vmul.f32 %v4537_v44, %v551_v50  ;;  %vm4773_vm7 = vmor %vm553_vm5, %vm554_vm6 }
 0x1bd   : > { %7177 = vst [vmem:[#allocation21_spill] sm:$0xff] %v4684_v46  ;;  %v3233_v55 = vld [vmem:[%s7087_s5 + $0x48] sm:$0xff]  ;;  %v1362_v9 = vmul.f32 2.1237322e-06, %v4684_v46  ;;  %3458 = vmatpush.msrb.mxu3 %v3285_v23  ;;  %v1283_v56 = vadd.f32 0.00028619796, %v1282_v59  ;;  %v1090_v26 = vmul.f32 %v1089_v3, %v4449_v13  ;;  %v1168_v23 = vmul.f32 %v1167_v36, %v4519_v45 }
 0x1be   : > { %v3249_v63 = vld [vmem:[%s7087_s5 + $0xc8] sm:$0xff]  ;;  %3294 = vmatpush.msrb.mxu0 %v3233_v55  ;;  %v1323_v48 = vadd.f32 0.00028619796, %v1322_v18  ;;  %v4723_v32 = vmin.f32 %v1400_v24, 16.0  ;;  %3403 = vmatpush.msrb.mxu2 %v3268_v2  ;;  %v3284_v17 = vld [vmem:[%s7087_s5 + $0x1e0] sm:$0xff]  ;;  %v1208_v59 = vmul.f32 %v1207_v22, %v4540_v4  ;;  %v1246_v2 = vmul.f32 %v1245_v47, %v4565_v34 }
 0x1bf   : > { %3350 = vmatpush.msrb.mxu1 %v3249_v63  ;;  %v1363_v55 = vadd.f32 0.00028619796, %v1362_v9  ;;  %v4731_v7 = vmul.f32 0.70710677, %v4687_v43  ;;  %3459 = vmatpush.msrb.mxu3 %v3284_v17  ;;  %v4733_v50 = vadd.f32 1.1283791, %v1050_v51  ;;  %v4744_v9 = vadd.f32 %v738_v16, %v4407_v31 }
 0x1c0   : > { %7178 = vst [vmem:[#allocation22_spill] sm:$0xff] %v4723_v32  ;;  %v1402_v18 = vmul.f32 2.1237322e-06, %v4723_v32  ;;  %v4738_v24 = vmul.f32 0.70710677, %v4715_v15  ;;  %v1284_v36 = vmul.f32 %v1283_v56, %v4603_v29  ;;  %v1324_v51 = vmul.f32 %v1323_v48, %v4628_v38 }
 0x1c1   : > { %v1129_v63 = vadd.f32 0.18741608, %v1128_v49  ;;  %v1440_v3 = vmul.f32 %v4731_v7, %v4731_v7  ;;  %v4750_v54 = vadd.f32 1.1283791, %v1090_v26  ;;  %v1169_v49 = vadd.f32 0.18741608, %v1168_v23 }
 0x1c2   : > { %7179 = vst [vmem:[#allocation23_spill] sm:$0xff] %v4738_v24  ;;  %v1403_v17 = vadd.f32 0.00028619796, %v1402_v18  ;;  %v1480_v22 = vmul.f32 %v4738_v24, %v4738_v24  ;;  %v1364_v47 = vmul.f32 %v1363_v55, %v4684_v46  ;;  %v1209_v13 = vadd.f32 0.18741608, %v1208_v59 }
 0x1c3   : > { %v4753_v14 = vmin.f32 %v1440_v3, 16.0  ;;  %v4759_v56 = vmul.f32 0.70710677, %v4744_v9  ;;  %v1130_v48 = vmul.f32 %v1129_v63, %v4510_v33  ;;  %v1247_v18 = vadd.f32 0.05243302, %v1246_v2 }
 0x1c4   : > { %v1404_v16 = vmul.f32 %v1403_v17, %v4723_v32  ;;  %v4756_v1 = vmin.f32 %v1480_v22, 16.0  ;;  %v4764_v26 = vadd.f32 %v794_v39, %v4409_v19  ;;  %v1285_v23 = vadd.f32 0.0036580483, %v1284_v36  ;;  %v3282_v17 = vld [vmem:[%s7087_s5 + $0x1d0] sm:$0xff] }
 0x1c5   : > { %v1442_v24 = vmul.f32 2.1237322e-06, %v4753_v14  ;;  %v1325_v55 = vadd.f32 0.0036580483, %v1324_v51  ;;  %v1520_v59 = vmul.f32 %v4759_v56, %v4759_v56  ;;  %v4778_v63 = vmul.f32 0.5, %v4464_v53  ;;  %v3232_v51 = vld [vmem:[%s7087_s5 + $0x40] sm:$0xff] }
 0x1c6   : > { %v1482_v3 = vmul.f32 2.1237322e-06, %v4756_v1  ;;  %v1170_v39 = vmul.f32 %v1169_v49, %v4519_v45  ;;  %v1365_v2 = vadd.f32 0.0036580483, %v1364_v47  ;;  %v1405_v36 = vadd.f32 0.0036580483, %v1404_v16  ;;  %3295 = vmatpush.msrb.mxu0 %v3232_v51 }
 0x1c7   : > { %7182 = vst [vmem:[#allocation24_spill] sm:$0xff] %v4778_v63  ;;  %v1210_v22 = vmul.f32 %v1209_v13, %v4540_v4  ;;  %v4786_v33 = vmul.f32 0.5, %v4599_v30  ;;  %v1443_v8 = vadd.f32 0.00028619796, %v1442_v24  ;;  %v3248_v53 = vld [vmem:[%s7087_s5 + $0xc0] sm:$0xff]  ;;  %v3267_v49 = vld [vmem:[%s7087_s5 + $0x158] sm:$0xff]  ;;  %v7184_v13 = vsel %vm4651_vm4, %v4506_v28, %v4637_v58 }
 0x1c8   : > { %v3283_v47 = vld [vmem:[%s7087_s5 + $0x1d8] sm:$0xff]  ;;  %v4803_v30 = vmul.f32 %v7184_v13, %v4322_v62  ;;  %v556_v24 = vsel %vm4773_vm7, %v4537_v44, %v4721_v11  ;;  %v1483_v16 = vadd.f32 0.00028619796, %v1482_v3  ;;  %v4810_v51 = vmul.f32 0.70710677, %v4764_v26  ;;  %3351 = vmatpush.msrb.mxu1 %v3248_v53  ;;  %3404 = vmatpush.msrb.mxu2 %v3267_v49  ;;  %v850_v11 = vpop.f32.mrf.mxu2  ;;  %v3266_v3 = vld [vmem:[%s7087_s5 + $0x150] sm:$0xff] }
 0x1c9   : > { %7183 = vst [vmem:[#allocation25_spill] sm:$0xff] %v4786_v33  ;;  %v3247_v62 = vld [vmem:[%s7087_s5 + $0xb8] sm:$0xff]  ;;  %v1131_v28 = vadd.f32 1.1283791, %v1130_v48  ;;  %v1248_v58 = vmul.f32 %v1247_v18, %v4565_v34  ;;  %v4819_v13 = vmin.f32 %v1520_v59, 16.0  ;;  %v593_v44 = vmul.f32 %v4302_v37, %v4699_v41  ;;  %3460 = vmatpush.msrb.mxu3 %v3283_v47  ;;  %3296 = vmatpush.msrb.mxu0 %v3231_v61  ;;  %v3230_v41 = vld [vmem:[%s7087_s5 + $0x30] sm:$0xff]  ;;  %v906_v47 = vpop.f32.mrf.mxu3 }
 0x1ca   : > { %v4829_v53 = vadd.f32 1.1283791, %v1170_v39  ;;  %v1286_v48 = vmul.f32 %v1285_v23, %v4603_v29  ;;  %v1326_v18 = vmul.f32 %v1325_v55, %v4628_v38  ;;  %v1560_v37 = vmul.f32 %v4810_v51, %v4810_v51  ;;  %3352 = vmatpush.msrb.mxu1 %v3247_v62  ;;  %3405 = vmatpush.msrb.mxu2 %v3266_v3  ;;  %v3246_v59 = vld [vmem:[%s7087_s5 + $0xb0] sm:$0xff]  ;;  %v3265_v61 = vld [vmem:[%s7087_s5 + $0x148] sm:$0xff] }
 0x1cb   : > { %v4841_v49 = vadd.f32 1.1283791, %v1210_v22  ;;  %v1366_v39 = vmul.f32 %v1365_v2, %v4684_v46  ;;  %v1444_v23 = vmul.f32 %v1443_v8, %v4753_v14  ;;  %v609_v55 = vadd.f32 %v4313_v52, %v593_v44  ;;  %3461 = vmatpush.msrb.mxu3 %v3282_v17  ;;  %3297 = vmatpush.msrb.mxu0 %v3230_v41  ;;  %v3281_v52 = vld [vmem:[%s7087_s5 + $0x1c8] sm:$0xff]  ;;  %v3264_v17 = vld [vmem:[%s7087_s5 + $0x140] sm:$0xff] }
 0x1cc   : > { %v1406_v62 = vmul.f32 %v1405_v36, %v4723_v32  ;;  %v1484_v3 = vmul.f32 %v1483_v16, %v4756_v1  ;;  %v4851_v33 = vmin.f32 %v1560_v37, 16.0  ;;  %v4854_v22 = vadd.f32 %v850_v11, %v4427_v42  ;;  %3353 = vmatpush.msrb.mxu1 %v3246_v59  ;;  %3406 = vmatpush.msrb.mxu2 %v3265_v61  ;;  %v3229_v2 = vld [vmem:[%s7087_s5 + $0x28] sm:$0xff] }
 0x1cd   : > { %v4864_v36 = vmul.f32 %v4733_v50, %v4424_v12  ;;  %v4867_v8 = vmul.f32 %v556_v24, %v4358_v10  ;;  %v1249_v16 = vadd.f32 0.18741608, %v1248_v58  ;;  %v1522_v44 = vmul.f32 2.1237322e-06, %v4819_v13  ;;  %758 = vmatmul.f32.gmra.mxu0 %v609_v55  ;;  %814 = vmatmul.f32.gmra.mxu1 %v609_v55  ;;  %v3245_v11 = vld [vmem:[%s7087_s5 + $0xa8] sm:$0xff]  ;;  %v741_v24 = vpop.f32.mrf.mxu0  ;;  %v3280_v58 = vld [vmem:[%s7087_s5 + $0x1c0] sm:$0xff] }
 0x1ce   : > { %v1287_v37 = vadd.f32 0.05243302, %v1286_v48  ;;  %v4877_v12 = vmul.f32 0.5, %v4631_v57  ;;  %v1562_v10 = vmul.f32 2.1237322e-06, %v4851_v33  ;;  %870 = vmatmul.f32.gmra.mxu2 %v609_v55  ;;  %926 = vmatmul.f32.gmra.mxu3 %v609_v55  ;;  %v4881_v50 = vadd.f32 %v906_v47, %v4438_v0 }
 0x1cf   : > { %7185 = vst [vmem:[#allocation26_spill] sm:$0xff] %v4864_v36  ;;  %v4888_v41 = vmul.f32 %v4750_v54, %v4433_v20  ;;  %v1327_v48 = vadd.f32 0.05243302, %v1326_v18  ;;  %v1367_v59 = vadd.f32 0.05243302, %v1366_v39  ;;  %3462 = vmatpush.msrb.mxu3 %v3281_v52  ;;  %3298 = vmatpush.msrb.mxu0 %v3229_v2  ;;  %v4891_v61 = vmul.f32 %v1131_v28, %v4483_v21 }
 0x1d0   : > { %7186 = vst [vmem:[#allocation27_spill] sm:$0xff] %v4877_v12  ;;  %v1445_v57 = vadd.f32 0.0036580483, %v1444_v23  ;;  %v1407_v55 = vadd.f32 0.05243302, %v1406_v62  ;;  %3354 = vmatpush.msrb.mxu1 %v3245_v11  ;;  %3407 = vmatpush.msrb.mxu2 %v3264_v17  ;;  %v1250_v63 = vmul.f32 %v1249_v16, %v4565_v34  ;;  %v4898_v20 = vmul.f32 0.5, %v4687_v43  ;;  %v797_v62 = vpop.f32.mrf.mxu1 }
 0x1d1   : > { %7187 = vst [vmem:[#allocation28_spill] sm:$0xff] %v4888_v41  ;;  %v1485_v47 = vadd.f32 0.0036580483, %v1484_v3  ;;  %v4894_v12 = vmul.f32 0.70710677, %v4854_v22  ;;  %v4901_v18 = vadd.f32 %v741_v24, %v4407_v31  ;;  %3463 = vmatpush.msrb.mxu3 %v3280_v58  ;;  %v1288_v21 = vmul.f32 %v1287_v37, %v4603_v29 }
 0x1d2   : > { %7188 = vst [vmem:[#allocation29_spill] sm:$0xff] %v4891_v61  ;;  %v1523_v54 = vadd.f32 0.00028619796, %v1522_v44  ;;  %v1563_v28 = vadd.f32 0.00028619796, %v1562_v10  ;;  %v1328_v3 = vmul.f32 %v1327_v48, %v4628_v38  ;;  %v1368_v43 = vmul.f32 %v1367_v59, %v4684_v46 }
 0x1d3   : > { %7189 = vst [vmem:[#allocation30_spill] sm:$0xff] %v4898_v20  ;;  %v1600_v39 = vmul.f32 %v4894_v12, %v4894_v12  ;;  %v4907_v23 = vmul.f32 0.70710677, %v4881_v50  ;;  %v1446_v52 = vmul.f32 %v1445_v57, %v4753_v14  ;;  %v4913_v2 = vmul.f32 0.5, %v4715_v15  ;;  %v853_v20 = vpop.f32.mrf.mxu2 }
 0x1d4   : > { %v1408_v16 = vmul.f32 %v1407_v55, %v4723_v32  ;;  %v1486_v44 = vmul.f32 %v1485_v47, %v4756_v1  ;;  %v4921_v37 = vadd.f32 1.1283791, %v1250_v63  ;;  %v1524_v10 = vmul.f32 %v1523_v54, %v4819_v13 }
 0x1d5   : > { %7190 = vst [vmem:[#allocation31_spill] sm:$0xff] %v4913_v2  ;;  %v4917_v11 = vmin.f32 %v1600_v39, 16.0  ;;  %v1640_v17 = vmul.f32 %v4907_v23, %v4907_v23  ;;  %v4925_v24 = vmul.f32 0.70710677, %v4901_v18  ;;  %v4928_v58 = vadd.f32 %v797_v62, %v4409_v19 }
 0x1d6   : > { %v1289_v15 = vadd.f32 0.18741608, %v1288_v21  ;;  %v1564_v48 = vmul.f32 %v1563_v28, %v4851_v33  ;;  %v1329_v55 = vadd.f32 0.18741608, %v1328_v3  ;;  %v1369_v47 = vadd.f32 0.18741608, %v1368_v43 }
 0x1d7   : > { %v1602_v59 = vmul.f32 2.1237322e-06, %v4917_v11  ;;  %v4932_v57 = vmin.f32 %v1640_v17, 16.0  ;;  %v1447_v39 = vadd.f32 0.05243302, %v1446_v52  ;;  %v1680_v63 = vmul.f32 %v4925_v24, %v4925_v24 }
 0x1d8   : > { %v4938_v54 = vmul.f32 %v4829_v53, %v4489_v35  ;;  %v1409_v2 = vadd.f32 0.18741608, %v1408_v16  ;;  %v1487_v62 = vadd.f32 0.05243302, %v1486_v44  ;;  %v4942_v28 = vmul.f32 0.5, %v4744_v9 }
 0x1d9   : > { %v1642_v21 = vmul.f32 2.1237322e-06, %v4932_v57  ;;  %v1525_v17 = vadd.f32 0.0036580483, %v1524_v10  ;;  %v4944_v61 = vmin.f32 %v1680_v63, 16.0  ;;  %v1290_v43 = vmul.f32 %v1289_v15, %v4603_v29 }
 0x1da   : > { %7191 = vst [vmem:[#allocation32_spill] sm:$0xff] %v4938_v54  ;;  %v4947_v3 = vmul.f32 0.70710677, %v4928_v58  ;;  %v1565_v52 = vadd.f32 0.0036580483, %v1564_v48  ;;  %v1448_v9 = vmul.f32 %v1447_v39, %v4753_v14  ;;  %v4962_v10 = vadd.f32 %v853_v20, %v4427_v42  ;;  %v909_v39 = vpop.f32.mrf.mxu3 }
 0x1db   : > { %7192 = vst [vmem:[#allocation33_spill] sm:$0xff] %v4942_v28  ;;  %v1603_v41 = vadd.f32 0.00028619796, %v1602_v59  ;;  %v4953_v35 = vld [vmem:[%s7083_s1] ss:$0 sm:$0xff]  ;;  %v1330_v15 = vmul.f32 %v1329_v55, %v4628_v38  ;;  %v1370_v48 = vmul.f32 %v1369_v47, %v4684_v46  ;;  %v744_v28 = vpop.f32.mrf.mxu0  ;;  %v1410_v54 = vmul.f32 %v1409_v2, %v4723_v32 }
 0x1dc   : > { %v594_v53 = vmul.f32 %v4953_v35, %v4867_v8  ;;  %v1682_v16 = vmul.f32 2.1237322e-06, %v4944_v61  ;;  %v1720_v44 = vmul.f32 %v4947_v3, %v4947_v3  ;;  %v1643_v59 = vadd.f32 0.00028619796, %v1642_v21  ;;  %v4969_v63 = vld [vmem:[%s7084_s2] ss:$0 sm:$0xff] }
 0x1dd   : > { %v1488_v36 = vmul.f32 %v1487_v62, %v4756_v1  ;;  %v1526_v20 = vmul.f32 %v1525_v17, %v4819_v13  ;;  %v1566_v55 = vmul.f32 %v1565_v52, %v4851_v33  ;;  %v1604_v47 = vmul.f32 %v1603_v41, %v4917_v11 }
 0x1de   : > { %v610_v8 = vadd.f32 %v4969_v63, %v594_v53  ;;  %v4975_v29 = vmin.f32 %v1720_v44, 16.0  ;;  %v1683_v21 = vadd.f32 0.00028619796, %v1682_v16  ;;  %v4980_v46 = vmul.f32 0.70710677, %v4962_v10 }
 0x1df   : > { %v1291_v53 = vadd.f32 1.1283791, %v1290_v43  ;;  %v1449_v38 = vadd.f32 0.18741608, %v1448_v9  ;;  %v4983_v2 = vadd.f32 %v909_v39, %v4438_v0  ;;  %v4986_v62 = vadd.f32 %v744_v28, %v4407_v31  ;;  %v800_v39 = vpop.f32.mrf.mxu1 }
 0x1e0   : > { %761 = vmatmul.f32.gmra.mxu0 %v610_v8  ;;  %817 = vmatmul.f32.gmra.mxu1 %v610_v8  ;;  %v1331_v17 = vadd.f32 1.1283791, %v1330_v15  ;;  %v1371_v52 = vadd.f32 1.1283791, %v1370_v48  ;;  %v1644_v41 = vmul.f32 %v1643_v59, %v4932_v57  ;;  %v1760_v16 = vmul.f32 %v4980_v46, %v4980_v46 }
 0x1e1   : > { %873 = vmatmul.f32.gmra.mxu2 %v610_v8  ;;  %929 = vmatmul.f32.gmra.mxu3 %v610_v8  ;;  %v4993_v44 = vmul.f32 %v4841_v49, %v4504_v27  ;;  %v1489_v43 = vadd.f32 0.18741608, %v1488_v36  ;;  %v1527_v9 = vadd.f32 0.05243302, %v1526_v20  ;;  %v1722_v8 = vmul.f32 2.1237322e-06, %v4975_v29 }
 0x1e2   : > { %v4996_v32 = vadd.f32 1.1283791, %v1410_v54  ;;  %v1567_v28 = vadd.f32 0.05243302, %v1566_v55  ;;  %v1605_v34 = vadd.f32 0.0036580483, %v1604_v47  ;;  %v1684_v15 = vmul.f32 %v1683_v21, %v4944_v61 }
 0x1e3   : > { %v5001_v48 = vmul.f32 %v4921_v37, %v4543_v5  ;;  %v1450_v59 = vmul.f32 %v1449_v38, %v4753_v14  ;;  %v5005_v27 = vmul.f32 0.70710677, %v4983_v2  ;;  %v5008_v49 = vmul.f32 0.70710677, %v4986_v62  ;;  %v3228_v36 = vld [vmem:[%s7087_s5 + $0x20] sm:$0xff]  ;;  %v3263_v55 = vld [vmem:[%s7087_s5 + $0x138] sm:$0xff] }
 0x1e4   : > { %v3244_v54 = vld [vmem:[%s7087_s5 + $0xa0] sm:$0xff]  ;;  %v5017_v20 = vmul.f32 0.5, %v4764_v26  ;;  %v1645_v5 = vadd.f32 0.0036580483, %v1644_v41  ;;  %v5019_v37 = vmin.f32 %v1760_v16, 16.0  ;;  %v5022_v38 = vadd.f32 %v800_v39, %v4409_v19  ;;  %3299 = vmatpush.msrb.mxu0 %v3228_v36  ;;  %v3279_v47 = vld [vmem:[%s7087_s5 + $0x1b8] sm:$0xff]  ;;  %3408 = vmatpush.msrb.mxu2 %v3263_v55 }
 0x1e5   : > { %7193 = vst [vmem:[#allocation34_spill] sm:$0xff] %v5001_v48  ;;  %3355 = vmatpush.msrb.mxu1 %v3244_v54  ;;  %v1490_v21 = vmul.f32 %v1489_v43, %v4756_v1  ;;  %v1528_v26 = vmul.f32 %v1527_v9, %v4819_v13  ;;  %v1723_v41 = vadd.f32 0.00028619796, %v1722_v8  ;;  %v1800_v16 = vmul.f32 %v5005_v27, %v5005_v27  ;;  %v3227_v55 = vld [vmem:[%s7087_s5 + $0x18] sm:$0xff] }
 0x1e6   : > { %7194 = vst [vmem:[#allocation35_spill] sm:$0xff] %v5017_v20  ;;  %3464 = vmatpush.msrb.mxu3 %v3279_v47  ;;  %v1568_v39 = vmul.f32 %v1567_v28, %v4851_v33  ;;  %v1606_v36 = vmul.f32 %v1605_v34, %v4917_v11  ;;  %v1685_v54 = vadd.f32 0.0036580483, %v1684_v15  ;;  %v1840_v20 = vmul.f32 %v5008_v49, %v5008_v49  ;;  %v3243_v34 = vld [vmem:[%s7087_s5 + $0x98] sm:$0xff]  ;;  %v3262_v28 = vld [vmem:[%s7087_s5 + $0x130] sm:$0xff] }
 0x1e7   : > { %v5039_v48 = vmul.f32 %v1291_v53, %v4569_v40  ;;  %v5042_v43 = vmul.f32 %v1331_v17, %v4582_v6  ;;  %v1451_v9 = vadd.f32 1.1283791, %v1450_v59  ;;  %v5044_v8 = vmin.f32 %v1800_v16, 16.0  ;;  %3300 = vmatpush.msrb.mxu0 %v3227_v55  ;;  %3356 = vmatpush.msrb.mxu1 %v3243_v34  ;;  %v3278_v15 = vld [vmem:[%s7087_s5 + $0x1b0] sm:$0xff] }
 0x1e8   : > { %v5056_v40 = vmul.f32 0.5, %v4854_v22  ;;  %v1646_v6 = vmul.f32 %v1645_v5, %v4932_v57  ;;  %v1762_v53 = vmul.f32 2.1237322e-06, %v5019_v37  ;;  %v5061_v17 = vmul.f32 0.70710677, %v5022_v38  ;;  %3409 = vmatpush.msrb.mxu2 %v3262_v28  ;;  %3465 = vmatpush.msrb.mxu3 %v3278_v15  ;;  %v3277_v28 = vld [vmem:[%s7087_s5 + $0x1a8] sm:$0xff] }
 0x1e9   : > { %7195 = vst [vmem:[#allocation36_spill] sm:$0xff] %v5039_v48  ;;  %v1491_v59 = vadd.f32 1.1283791, %v1490_v21  ;;  %v1529_v47 = vadd.f32 0.18741608, %v1528_v26  ;;  %v1724_v16 = vmul.f32 %v1723_v41, %v4975_v29  ;;  %v595_v22 = vmul.f32 %v4953_v35, %v4803_v30  ;;  %v856_v35 = vpop.f32.mrf.mxu2  ;;  %v912_v41 = vpop.f32.mrf.mxu3 }
 0x1ea   : > { %7196 = vst [vmem:[#allocation37_spill] sm:$0xff] %v5042_v43  ;;  %v5069_v5 = vadd.f32 0.18741608, %v1568_v39  ;;  %v1686_v43 = vmul.f32 %v1685_v54, %v4944_v61  ;;  %v5072_v55 = vmin.f32 %v1840_v20, 16.0  ;;  %v5075_v34 = vmul.f32 %v1371_v52, %v4645_v60  ;;  %v3226_v39 = vld [vmem:[%s7087_s5 + $0x10] sm:$0xff]  ;;  %v3261_v60 = vld [vmem:[%s7087_s5 + $0x128] sm:$0xff]  ;;  %3466 = vmatpush.msrb.mxu3 %v3277_v28 }
 0x1eb   : > { %7197 = vst [vmem:[#allocation38_spill] sm:$0xff] %v5056_v40  ;;  %v1607_v40 = vadd.f32 0.05243302, %v1606_v36  ;;  %v5078_v21 = vmul.f32 0.5, %v4881_v50  ;;  %v1802_v26 = vmul.f32 2.1237322e-06, %v5044_v8  ;;  %v1880_v30 = vmul.f32 %v5061_v17, %v5061_v17  ;;  %3301 = vmatpush.msrb.mxu0 %v3226_v39  ;;  %3410 = vmatpush.msrb.mxu2 %v3261_v60 }
 0x1ec   : > { %7198 = vst [vmem:[#allocation39_spill] sm:$0xff] %v5075_v34  ;;  %v3242_v20 = vld [vmem:[%s7087_s5 + $0x90] sm:$0xff]  ;;  %v1647_v50 = vadd.f32 0.05243302, %v1646_v6  ;;  %v5093_v52 = vmul.f32 0.5, %v4901_v18  ;;  %v611_v54 = vadd.f32 %v4969_v63, %v595_v22  ;;  %v1530_v15 = vmul.f32 %v1529_v47, %v4819_v13  ;;  %v3225_v18 = vld [vmem:[%s7087_s5 + $0x8] sm:$0xff] }
 0x1ed   : > { %7199 = vst [vmem:[#allocation40_spill] sm:$0xff] %v5078_v21  ;;  %v1763_v36 = vadd.f32 0.00028619796, %v1762_v53  ;;  %3357 = vmatpush.msrb.mxu1 %v3242_v20  ;;  %v5101_v21 = vmul.f32 0.5, %v4928_v58  ;;  %v1725_v34 = vadd.f32 0.0036580483, %v1724_v16  ;;  %v5113_v58 = vadd.f32 %v856_v35, %v4427_v42  ;;  %3302 = vmatpush.msrb.mxu0 %v3225_v18 }
 0x1ee   : > { %7200 = vst [vmem:[#allocation41_spill] sm:$0xff] %v5093_v52  ;;  %v5103_v48 = vmin.f32 %v1880_v30, 16.0  ;;  %v3241_v63 = vld [vmem:[%s7087_s5 + $0x88] sm:$0xff]  ;;  %v1687_v6 = vadd.f32 0.05243302, %v1686_v43  ;;  %764 = vmatmul.f32.gmra.mxu0 %v611_v54  ;;  %820 = vmatmul.f32.gmra.mxu1 %v611_v54  ;;  %v5116_v47 = vadd.f32 %v912_v41, %v4438_v0  ;;  %v3260_v16 = vld [vmem:[%s7087_s5 + $0x120] sm:$0xff]  ;;  %v5126_v43 = vmul.f32 %v4996_v32, %v4672_v25 }
 0x1ef   : > { %7201 = vst [vmem:[#allocation42_spill] sm:$0xff] %v5101_v21  ;;  %v1842_v53 = vmul.f32 2.1237322e-06, %v5072_v55  ;;  %v3276_v22 = vld [vmem:[%s7087_s5 + $0x1a0] sm:$0xff]  ;;  %v5129_v30 = vmul.f32 %v1451_v9, %v4731_v7  ;;  %v1803_v35 = vadd.f32 0.00028619796, %v1802_v26  ;;  %876 = vmatmul.f32.gmra.mxu2 %v611_v54  ;;  %932 = vmatmul.f32.gmra.mxu3 %v611_v54  ;;  %v1608_v32 = vmul.f32 %v1607_v40, %v4917_v11  ;;  %v747_v9 = vpop.f32.mrf.mxu0 }
 0x1f0   : > { %v1882_v39 = vmul.f32 2.1237322e-06, %v5103_v48  ;;  %v3224_v41 = vld [vmem:[%s7087_s5] sm:$0xff]  ;;  %v7202_v60 = vld [vmem:[#allocation23_spill] sm:$0xff]  ;;  %v1764_v7 = vmul.f32 %v1763_v36, %v5019_v37  ;;  %v5144_v25 = vmul.f32 0.70710677, %v5113_v58  ;;  %3358 = vmatpush.msrb.mxu1 %v3241_v63  ;;  %v1726_v40 = vmul.f32 %v1725_v34, %v4975_v29  ;;  %3411 = vmatpush.msrb.mxu2 %v3260_v16 }
 0x1f1   : > { %v3240_v20 = vld [vmem:[%s7087_s5 + $0x80] sm:$0xff]  ;;  %v5139_v28 = vmul.f32 %v1491_v59, %v7202_v60  ;;  %v3259_v26 = vld [vmem:[%s7087_s5 + $0x118] sm:$0xff]  ;;  %v1531_v59 = vadd.f32 1.1283791, %v1530_v15  ;;  %v1648_v60 = vmul.f32 %v1647_v50, %v4932_v57  ;;  %v5155_v36 = vmul.f32 0.5, %v4962_v10  ;;  %3467 = vmatpush.msrb.mxu3 %v3276_v22  ;;  %3303 = vmatpush.msrb.mxu0 %v3224_v41  ;;  %v803_v41 = vpop.f32.mrf.mxu1 }
 0x1f2   : > { %v3275_v54 = vld [vmem:[%s7087_s5 + $0x198] sm:$0xff]  ;;  %v1688_v18 = vmul.f32 %v1687_v6, %v4944_v61  ;;  %v1843_v63 = vadd.f32 0.00028619796, %v1842_v53  ;;  %v1920_v21 = vmul.f32 %v5144_v25, %v5144_v25  ;;  %v5161_v52 = vmul.f32 0.70710677, %v5116_v47  ;;  %3359 = vmatpush.msrb.mxu1 %v3240_v20  ;;  %3412 = vmatpush.msrb.mxu2 %v3259_v26 }
 0x1f3   : > { %7203 = vst [vmem:[#allocation23_spill] sm:$0xff] %v5155_v36  ;;  %v1570_v50 = vmul.f32 %v5069_v5, %v4851_v33  ;;  %v1804_v34 = vmul.f32 %v1803_v35, %v5044_v8  ;;  %v1883_v10 = vadd.f32 0.00028619796, %v1882_v39  ;;  %v5167_v15 = vadd.f32 %v747_v9, %v4407_v31  ;;  %3468 = vmatpush.msrb.mxu3 %v3275_v54 }
 0x1f4   : > { %v1609_v6 = vadd.f32 0.18741608, %v1608_v32  ;;  %v1765_v53 = vadd.f32 0.0036580483, %v1764_v7  ;;  %v5169_v16 = vmin.f32 %v1920_v21, 16.0  ;;  %v1960_v22 = vmul.f32 %v5161_v52, %v5161_v52 }
 0x1f5   : > { %7204 = vst [vmem:[#allocation43_spill] sm:$0xff] %v5167_v15  ;;  %v5174_v20 = vmul.f32 %v1531_v59, %v4759_v56  ;;  %v1649_v5 = vadd.f32 0.18741608, %v1648_v60  ;;  %v1727_v36 = vadd.f32 0.05243302, %v1726_v40  ;;  %v1844_v9 = vmul.f32 %v1843_v63, %v5072_v55 }
 0x1f6   : > { %v5177_v35 = vmul.f32 0.70710677, %v5167_v15  ;;  %v1689_v39 = vadd.f32 0.18741608, %v1688_v18  ;;  %v1922_v32 = vmul.f32 2.1237322e-06, %v5169_v16  ;;  %v1884_v26 = vmul.f32 %v1883_v10, %v5103_v48 }
 0x1f7   : > { %7205 = vst [vmem:[#allocation44_spill] sm:$0xff] %v5174_v20  ;;  %v5181_v7 = vmin.f32 %v1960_v22, 16.0  ;;  %v1805_v21 = vadd.f32 0.0036580483, %v1804_v34  ;;  %v5187_v56 = vadd.f32 %v803_v41, %v4409_v19  ;;  %v1571_v59 = vadd.f32 1.1283791, %v1570_v50  ;;  %v859_v19 = vpop.f32.mrf.mxu2 }
 0x1f8   : > { %7206 = vst [vmem:[#allocation45_spill] sm:$0xff] %v5177_v35  ;;  %v2000_v54 = vmul.f32 %v5177_v35, %v5177_v35  ;;  %v1766_v60 = vmul.f32 %v1765_v53, %v5019_v37  ;;  %v1923_v40 = vadd.f32 0.00028619796, %v1922_v32  ;;  %v1610_v63 = vmul.f32 %v1609_v6, %v4917_v11 }
 0x1f9   : > { %7207 = vst [vmem:[#allocation46_spill] sm:$0xff] %v5187_v56  ;;  %v1962_v18 = vmul.f32 2.1237322e-06, %v5181_v7  ;;  %v1650_v22 = vmul.f32 %v1649_v5, %v4932_v57  ;;  %v1728_v34 = vmul.f32 %v1727_v36, %v4975_v29  ;;  %v1845_v10 = vadd.f32 0.0036580483, %v1844_v9 }
 0x1fa   : > { %v5194_v31 = vmin.f32 %v2000_v54, 16.0  ;;  %v1924_v15 = vmul.f32 %v1923_v40, %v5169_v16  ;;  %v5198_v41 = vmul.f32 0.70710677, %v5187_v56  ;;  %v1690_v50 = vmul.f32 %v1689_v39, %v4944_v61 }
 0x1fb   : > { %v1963_v35 = vadd.f32 0.00028619796, %v1962_v18  ;;  %v1806_v53 = vmul.f32 %v1805_v21, %v5044_v8  ;;  %v1885_v32 = vadd.f32 0.0036580483, %v1884_v26  ;;  %v1767_v5 = vadd.f32 0.05243302, %v1766_v60 }
 0x1fc   : > { %7208 = vst [vmem:[#allocation47_spill] sm:$0xff] %v5194_v31  ;;  %v2002_v6 = vmul.f32 2.1237322e-06, %v5194_v31  ;;  %v5204_v36 = vmul.f32 0.5, %v4983_v2  ;;  %v1925_v54 = vadd.f32 0.0036580483, %v1924_v15  ;;  %v2040_v39 = vmul.f32 %v5198_v41, %v5198_v41 }
 0x1fd   : > { %7209 = vst [vmem:[#allocation48_spill] sm:$0xff] %v5198_v41  ;;  %v1964_v9 = vmul.f32 %v1963_v35, %v5181_v7  ;;  %v1611_v40 = vadd.f32 1.1283791, %v1610_v63  ;;  %v1651_v18 = vadd.f32 1.1283791, %v1650_v22  ;;  %v5208_v56 = vmul.f32 0.5, %v4986_v62 }
 0x1fe   : > { %7210 = vst [vmem:[#allocation49_spill] sm:$0xff] %v5204_v36  ;;  %v1729_v21 = vadd.f32 0.18741608, %v1728_v34  ;;  %v1846_v26 = vmul.f32 %v1845_v10, %v5072_v55  ;;  %v2003_v20 = vadd.f32 0.00028619796, %v2002_v6  ;;  %v5214_v60 = vadd.f32 %v859_v19, %v4427_v42  ;;  %v7213_v41 = vld [vmem:[#allocation8_spill] sm:$0xff] }
 0x1ff   : > { %7211 = vst [vmem:[#allocation50_spill] sm:$0xff] %v5208_v56  ;;  %v5217_v2 = vmul.f32 %v1571_v59, %v4810_v51  ;;  %v1691_v15 = vadd.f32 1.1283791, %v1690_v50  ;;  %v1807_v35 = vadd.f32 0.05243302, %v1806_v53  ;;  %v1886_v63 = vmul.f32 %v1885_v32, %v5103_v48 }
 0x200   : > { %7212 = vst [vmem:[#allocation51_spill] sm:$0xff] %v5214_v60  ;;  %v1768_v62 = vmul.f32 %v1767_v5, %v5019_v37  ;;  %v1926_v22 = vmul.f32 %v1925_v54, %v5169_v16  ;;  %v1965_v56 = vadd.f32 0.0036580483, %v1964_v9  ;;  %v1053_v34 = vmul.f32 3.8918573e-05, %v7213_v41  ;;  %v915_v5 = vpop.f32.mrf.mxu3 }
 0x201   : > { %v5224_v10 = vmul.f32 %v1611_v40, %v4894_v12  ;;  %v5227_v19 = vmul.f32 %v1651_v18, %v4907_v23  ;;  %v5230_v51 = vmul.f32 0.5, %v5022_v38  ;;  %v5232_v59 = vmin.f32 %v2040_v39, 16.0 }
 0x202   : > { %v1730_v50 = vmul.f32 %v1729_v21, %v4975_v29  ;;  %v1847_v53 = vadd.f32 0.05243302, %v1846_v26  ;;  %v2004_v32 = vmul.f32 %v2003_v20, %v5194_v31  ;;  %v5237_v6 = vmul.f32 0.70710677, %v5214_v60 }
 0x203   : > { %7214 = vst [vmem:[#allocation8_spill] sm:$0xff] %v5230_v51  ;;  %v5240_v12 = vmul.f32 %v1691_v15, %v4925_v24  ;;  %v1808_v23 = vmul.f32 %v1807_v35, %v5044_v8  ;;  %v1887_v54 = vadd.f32 0.05243302, %v1886_v63  ;;  %v1054_v9 = vadd.f32 0.001143296, %v1053_v34  ;;  %v7218_v24 = vld [vmem:[#allocation9_spill] sm:$0xff] }
 0x204   : > { %7215 = vst [vmem:[#allocation52_spill] sm:$0xff] %v5237_v6  ;;  %v1769_v38 = vadd.f32 0.18741608, %v1768_v62  ;;  %v5244_v40 = vmul.f32 0.5, %v5113_v58  ;;  %v1927_v18 = vadd.f32 0.05243302, %v1926_v22  ;;  %v1966_v39 = vmul.f32 %v1965_v56, %v5181_v7 }
 0x205   : > { %v2042_v20 = vmul.f32 2.1237322e-06, %v5232_v59  ;;  %v5249_v21 = vadd.f32 %v915_v5, %v4438_v0  ;;  %v1055_v26 = vmul.f32 %v1054_v9, %v7213_v41  ;;  %v1093_v15 = vmul.f32 3.8918573e-05, %v7218_v24 }
 0x206   : > { %7216 = vst [vmem:[#allocation53_spill] sm:$0xff] %v5244_v40  ;;  %v1731_v60 = vadd.f32 1.1283791, %v1730_v50  ;;  %v1848_v35 = vmul.f32 %v1847_v53, %v5072_v55  ;;  %v2005_v63 = vadd.f32 0.0036580483, %v2004_v32  ;;  %v2080_v58 = vmul.f32 %v5237_v6, %v5237_v6 }
 0x207   : > { %7217 = vst [vmem:[#allocation54_spill] sm:$0xff] %v5249_v21  ;;  %v1809_v62 = vadd.f32 0.18741608, %v1808_v23  ;;  %v1888_v22 = vmul.f32 %v1887_v54, %v5103_v48  ;;  %v1056_v56 = vadd.f32 0.014752088, %v1055_v26  ;;  %v1770_v42 = vmul.f32 %v1769_v38, %v5019_v37 }
 0x208   : > { %v1094_v34 = vadd.f32 0.001143296, %v1093_v15  ;;  %v1928_v5 = vmul.f32 %v1927_v18, %v5169_v16  ;;  %v5260_v9 = vmul.f32 0.5, %v5116_v47  ;;  %v1967_v0 = vadd.f32 0.05243302, %v1966_v39 }
 0x209   : > { %v2043_v50 = vadd.f32 0.00028619796, %v2042_v20  ;;  %v5263_v53 = vmul.f32 0.70710677, %v5249_v21  ;;  %v1057_v32 = vmul.f32 %v1056_v56, %v7213_v41  ;;  %v5268_v54 = vmul.f32 %v1731_v60, %v4947_v3  ;;  %v7223_v56 = vld [vmem:[#allocation11_spill] sm:$0xff] }
 0x20a   : > { %7219 = vst [vmem:[#allocation9_spill] sm:$0xff] %v5260_v9  ;;  %v1095_v23 = vmul.f32 %v1094_v34, %v7218_v24  ;;  %v1849_v26 = vadd.f32 0.18741608, %v1848_v35  ;;  %v2006_v38 = vmul.f32 %v2005_v63, %v5194_v31  ;;  %v5271_v15 = vmin.f32 %v2080_v58, 16.0 }
 0x20b   : > { %7220 = vst [vmem:[#allocation55_spill] sm:$0xff] %v5263_v53  ;;  %v1810_v47 = vmul.f32 %v1809_v62, %v5044_v8  ;;  %v1889_v18 = vadd.f32 0.18741608, %v1888_v22  ;;  %v1058_v39 = vadd.f32 0.112945676, %v1057_v32  ;;  %v1968_v9 = vmul.f32 %v1967_v0, %v5181_v7 }
 0x20c   : > { %7221 = vst [vmem:[#allocation56_spill] sm:$0xff] %v5268_v54  ;;  %v1096_v20 = vadd.f32 0.014752088, %v1095_v23  ;;  %v1771_v6 = vadd.f32 1.1283791, %v1770_v42  ;;  %v2044_v34 = vmul.f32 %v2043_v50, %v5232_v59  ;;  %v2120_v3 = vmul.f32 %v5263_v53, %v5263_v53 }
 0x20d   : > { %7222 = vst [vmem:[#allocation57_spill] sm:$0xff] %v5271_v15  ;;  %v1929_v21 = vadd.f32 0.18741608, %v1928_v5  ;;  %v1133_v40 = vmul.f32 3.8918573e-05, %v7223_v56  ;;  %v1059_v60 = vmul.f32 %v1058_v39, %v7213_v41  ;;  %v1850_v63 = vmul.f32 %v1849_v26, %v5072_v55 }
 0x20e   : > { %v1097_v35 = vmul.f32 %v1096_v20, %v7218_v24  ;;  %v2007_v58 = vadd.f32 0.05243302, %v2006_v38  ;;  %v2082_v62 = vmul.f32 2.1237322e-06, %v5271_v15  ;;  %v1811_v22 = vadd.f32 1.1283791, %v1810_v47 }
 0x20f   : > { %v1134_v42 = vadd.f32 0.001143296, %v1133_v40  ;;  %v1890_v0 = vmul.f32 %v1889_v18, %v5103_v48  ;;  %v1060_v5 = vadd.f32 0.4994258, %v1059_v60  ;;  %v1930_v50 = vmul.f32 %v1929_v21, %v5169_v16 }
 0x210   : > { %v1098_v32 = vadd.f32 0.112945676, %v1097_v35  ;;  %v1969_v23 = vadd.f32 0.18741608, %v1968_v9  ;;  %v1173_v39 = vmul.f32 3.8918573e-05, %v4519_v45  ;;  %v2008_v47 = vmul.f32 %v2007_v58, %v5194_v31 }
 0x211   : > { %v1135_v53 = vmul.f32 %v1134_v42, %v7223_v56  ;;  %v2045_v51 = vadd.f32 0.0036580483, %v2044_v34  ;;  %v5287_v20 = vmin.f32 %v2120_v3, 16.0  ;;  %v1061_v26 = vmul.f32 %v1060_v5, %v7213_v41  ;;  %v3258_v34 = vld [vmem:[%s7087_s5 + $0x110] sm:$0xff] }
 0x212   : > { %v1099_v38 = vmul.f32 %v1098_v32, %v7218_v24  ;;  %v1851_v40 = vadd.f32 1.1283791, %v1850_v63  ;;  %v2083_v18 = vadd.f32 0.00028619796, %v2082_v62  ;;  %v5293_v35 = vmul.f32 %v1771_v6, %v4980_v46  ;;  %3413 = vmatpush.msrb.mxu2 %v3258_v34  ;;  %v3257_v46 = vld [vmem:[%s7087_s5 + $0x108] sm:$0xff] }
 0x213   : > { %v1136_v60 = vadd.f32 0.014752088, %v1135_v53  ;;  %v1891_v21 = vadd.f32 1.1283791, %v1890_v0  ;;  %v5295_v9 = vadd.f32 1.0, %v1061_v26  ;;  %v5301_v41 = vmul.f32 %v1811_v22, %v5005_v27  ;;  %v3274_v53 = vld [vmem:[%s7087_s5 + $0x190] sm:$0xff] }
 0x214   : > { %7224 = vst [vmem:[#allocation11_spill] sm:$0xff] %v5293_v35  ;;  %v1100_v42 = vadd.f32 0.4994258, %v1099_v38  ;;  %v1970_v3 = vmul.f32 %v1969_v23, %v5181_v7  ;;  %v3273_v6 = vld [vmem:[%s7087_s5 + $0x188] sm:$0xff]  ;;  %v1174_v58 = vadd.f32 0.001143296, %v1173_v39  ;;  %v2046_v62 = vmul.f32 %v2045_v51, %v5232_v59  ;;  %3469 = vmatpush.msrb.mxu3 %v3274_v53  ;;  %3414 = vmatpush.msrb.mxu2 %v3257_v46 }
 0x215   : > { %7225 = vst [vmem:[#allocation58_spill] sm:$0xff] %v5301_v41  ;;  %v1137_v63 = vmul.f32 %v1136_v60, %v7223_v56  ;;  %v1931_v27 = vadd.f32 1.1283791, %v1930_v50  ;;  %v2122_v22 = vmul.f32 2.1237322e-06, %v5287_v20  ;;  %3799 = vrcp.f32 %v5295_v9  ;;  %v3256_v0 = vld [vmem:[%s7087_s5 + $0x100] sm:$0xff] }
 0x216   : > { %v2009_v5 = vadd.f32 0.18741608, %v2008_v47  ;;  %v2084_v32 = vmul.f32 %v2083_v18, %v5271_v15  ;;  %v1101_v23 = vmul.f32 %v1100_v42, %v7218_v24  ;;  %v3272_v50 = vld [vmem:[%s7087_s5 + $0x180] sm:$0xff]  ;;  %v5326_v39 = vmul.f32 %v1851_v40, %v5008_v49  ;;  %3470 = vmatpush.msrb.mxu3 %v3273_v6  ;;  %3415 = vmatpush.msrb.mxu2 %v3256_v0  ;;  %v7240_v35 = vld [vmem:[#allocation26_spill] sm:$0xff] }
 0x217   : > { %v1138_v51 = vadd.f32 0.112945676, %v1137_v63  ;;  %v5329_v26 = vmul.f32 %v1891_v21, %v5061_v17  ;;  %v1175_v38 = vmul.f32 %v1174_v58, %v4519_v45  ;;  %v1213_v47 = vmul.f32 3.8918573e-05, %v4540_v4  ;;  %v7239_v41 = vld [vmem:[#allocation20_spill] sm:$0xff] }
 0x218   : > { %7226 = vst [vmem:[#allocation59_spill] sm:$0xff] %v5326_v39  ;;  %v5333_v18 = vadd.f32 1.1283791, %v1970_v3  ;;  %v1072_v24 = vand.u32 2147483647, %v5295_v9  ;;  %v5336_v60 = vadd.f32 1.0, %v1101_v23  ;;  %v5340_v49 = vmul.f32 %v1931_v27, %v5144_v25  ;;  %3471 = vmatpush.msrb.mxu3 %v3272_v50 }
 0x219   : > { %7227 = vst [vmem:[#allocation60_spill] sm:$0xff] %v5329_v26  ;;  %v1139_v42 = vmul.f32 %v1138_v51, %v7223_v56  ;;  %v5342_v40 = vadd.f32 0.05243302, %v2046_v62  ;;  %v1176_v17 = vadd.f32 0.014752088, %v1175_v38  ;;  %v5345_v34 = vmul.f32 %v2009_v5, %v5194_v31 }
 0x21a   : > { %7228 = vst [vmem:[#allocation61_spill] sm:$0xff] %v5340_v49  ;;  %v1214_v21 = vadd.f32 0.001143296, %v1213_v47  ;;  %v5347_v3 = vadd.f32 0.0036580483, %v2084_v32  ;;  %3801 = vrcp.f32 %v5336_v60  ;;  %v1074_v6 = vand.u32 2147483648, %v5295_v9 }
 0x21b   : > { %7229 = vst [vmem:[#allocation62_spill] sm:$0xff] %v5345_v34  ;;  %v5349_v53 = vadd.f32 0.00028619796, %v2122_v22  ;;  %v3800_v46 = vpop.eup %3799  ;;  %v1140_v63 = vadd.f32 0.4994258, %v1139_v42  ;;  %v1177_v25 = vmul.f32 %v1176_v17, %v4519_v45  ;;  %vm1068_vm8 = vweird.f32 %v5295_v9  ;;  %v7233_v22 = vld [vmem:[#allocation10_spill] sm:$0xff] }
 0x21c   : > { %7230 = vst [vmem:[#allocation63_spill] sm:$0xff] %v5347_v3  ;;  %v1215_v58 = vmul.f32 %v1214_v21, %v4540_v4  ;;  %v1064_v27 = vmul.f32 %v3800_v46, %v5295_v9  ;;  %vm5357_vm9 = vcmp.eq.f32.partialorder %v1072_v24, 8.507059e+37  ;;  %v5362_v0 = vmul.f32 0.5, %v7233_v22  ;;  %v7234_v47 = vld [vmem:[#allocation14_spill] sm:$0xff]  ;;  %v7235_v17 = vld [vmem:[#allocation17_spill] sm:$0xff] }
 0x21d   : > { %v1112_v5 = vand.u32 2147483647, %v5336_v60  ;;  %v1141_v32 = vmul.f32 %v1140_v63, %v7223_v56  ;;  %v1178_v23 = vadd.f32 0.112945676, %v1177_v25  ;;  %v1114_v38 = vand.u32 2147483648, %v5336_v60 }
 0x21e   : > { %v1216_v50 = vadd.f32 0.014752088, %v1215_v58  ;;  %v1065_v51 = vsub.f32 1.0, %v1064_v27  ;;  %v1253_v42 = vmul.f32 3.8918573e-05, %v7234_v47  ;;  %v1075_v24 = vor.u32 1.1754944e-38, %v1074_v6 }
 0x21f   : > { %v1293_v21 = vmul.f32 3.8918573e-05, %v7235_v17  ;;  %v5369_v49 = vadd.f32 1.0, %v1141_v32  ;;  %v1179_v26 = vmul.f32 %v1178_v23, %v4519_v45  ;;  %vm1069_vm10 = vweird.f32 %v3800_v46  ;;  %v7236_v58 = vld [vmem:[#allocation12_spill] sm:$0xff] }
 0x220   : > { %v1217_v22 = vmul.f32 %v1216_v50, %v4540_v4  ;;  %v3802_v39 = vpop.eup %3801  ;;  %v1066_v36 = vmul.f32 %v3800_v46, %v1065_v51  ;;  %v1254_v56 = vadd.f32 0.001143296, %v1253_v42  ;;  %vm1108_vm11 = vweird.f32 %v5336_v60  ;;  %vm1070_vm13 = vmor %vm1068_vm8, %vm1069_vm10 }
 0x221   : > { %v1294_v63 = vadd.f32 0.001143296, %v1293_v21  ;;  %v1104_v25 = vmul.f32 %v3802_v39, %v5336_v60  ;;  %3803 = vrcp.f32 %v5369_v49  ;;  %v5377_v27 = vmul.f32 0.5, %v7236_v58  ;;  %v7243_v60 = vld [vmem:[#allocation28_spill] sm:$0xff] }
 0x222   : > { %v1067_v6 = vadd.f32 %v3800_v46, %v1066_v36  ;;  %vm5379_vm12 = vcmp.eq.f32.partialorder %v1112_v5, 8.507059e+37  ;;  %v1115_v23 = vor.u32 1.1754944e-38, %v1114_v38  ;;  %v1180_v50 = vadd.f32 0.4994258, %v1179_v26 }
 0x223   : > { %v1105_v51 = vsub.f32 1.0, %v1104_v25  ;;  %v1218_v42 = vadd.f32 0.112945676, %v1217_v22  ;;  %v1255_v21 = vmul.f32 %v1254_v56, %v7234_v47  ;;  %v1333_v3 = vmul.f32 3.8918573e-05, %v7239_v41  ;;  %v7241_v56 = vld [vmem:[#allocation13_spill] sm:$0xff] }
 0x224   : > { %v1071_v15 = vsel %vm1070_vm13, %v3800_v46, %v1067_v6  ;;  %vm1109_vm14 = vweird.f32 %v3802_v39  ;;  %v1181_v58 = vmul.f32 %v1180_v50, %v4519_v45  ;;  %v1295_v36 = vmul.f32 %v1294_v63, %v7235_v17 }
 0x225   : > { %v1076_v5 = vsel %vm5357_vm9, %v1075_v24, %v1071_v15  ;;  %v1106_v38 = vmul.f32 %v3802_v39, %v1105_v51  ;;  %v1219_v26 = vmul.f32 %v1218_v42, %v4540_v4  ;;  %v1256_v9 = vadd.f32 0.014752088, %v1255_v21  ;;  %vm1110_vm0 = vmor %vm1108_vm11, %vm1109_vm14 }
 0x226   : > { %v1077_v25 = vmul.f32 %v1076_v5, %v7240_v35  ;;  %vm1148_vm15 = vweird.f32 %v5369_v49  ;;  %v5394_v22 = vadd.f32 1.0, %v1181_v58  ;;  %v5397_v46 = vmul.f32 0.5, %v7241_v56  ;;  %v7242_v58 = vld [vmem:[#allocation21_spill] sm:$0xff] }
 0x227   : > { %v3804_v6 = vpop.eup %3803  ;;  %v1107_v45 = vadd.f32 %v3802_v39, %v1106_v38  ;;  %v1152_v63 = vand.u32 2147483647, %v5369_v49  ;;  %v1220_v50 = vadd.f32 0.4994258, %v1219_v26  ;;  %v1257_v15 = vmul.f32 %v1256_v9, %v7234_v47 }
 0x228   : > { %v3689_v62 = vclamps-f32 %v1077_v25, 1.0  ;;  %v1144_v35 = vmul.f32 %v3804_v6, %v5369_v49  ;;  %3805 = vrcp.f32 %v5394_v22  ;;  %v1296_v24 = vadd.f32 0.014752088, %v1295_v36  ;;  %v7244_v36 = vld [vmem:[#allocation16_spill] sm:$0xff] }
 0x229   : > { %v1111_v51 = vsel %vm1110_vm0, %v3802_v39, %v1107_v45  ;;  %v1154_v42 = vand.u32 2147483648, %v5369_v49  ;;  %v1334_v21 = vadd.f32 0.001143296, %v1333_v3  ;;  %v1373_v5 = vmul.f32 3.8918573e-05, %v7242_v58 }
 0x22a   : > { %v3120_v38 = vadd.f32 1.0, %v3689_v62  ;;  %v1116_v26 = vsel %vm5379_vm12, %v1115_v23, %v1111_v51  ;;  %v1145_v9 = vsub.f32 1.0, %v1144_v35  ;;  %v1221_v25 = vmul.f32 %v1220_v50, %v4540_v4 }
 0x22b   : > { %v1117_v56 = vmul.f32 %v1116_v26, %v7243_v60  ;;  %vm1149_vm1 = vweird.f32 %v3804_v6  ;;  %v1192_v34 = vand.u32 2147483647, %v5394_v22  ;;  %v1258_v31 = vadd.f32 0.112945676, %v1257_v15 }
 0x22c   : > { %v3172_v39 = vmul.f32 %v3120_v38, %v7244_v36  ;;  %v1146_v45 = vmul.f32 %v3804_v6, %v1145_v9  ;;  %v5414_v54 = vadd.f32 1.0, %v1221_v25  ;;  %v1297_v3 = vmul.f32 %v1296_v24, %v7235_v17  ;;  %vm1150_vm4 = vmor %vm1148_vm15, %vm1149_vm1  ;;  %v7249_v25 = vld [vmem:[#allocation18_spill] sm:$0xff]  ;;  %v7250_v36 = vld [vmem:[#allocation29_spill] sm:$0xff] }
 0x22d   : > { %v3690_v62 = vclamps-f32 %v1117_v56, 1.0  ;;  %vm5417_vm2 = vcmp.eq.f32.partialorder %v1152_v63, 8.507059e+37  ;;  %v1155_v23 = vor.u32 1.1754944e-38, %v1154_v42  ;;  %v1259_v4 = vmul.f32 %v1258_v31, %v7234_v47 }
 0x22e   : > { %v3806_v50 = vpop.eup %3805  ;;  %3304 = vmatmul.f32.vlgmr.msrb.gmra.mxu0 %v3172_v39  ;;  %v1147_v35 = vadd.f32 %v3804_v6, %v1146_v45  ;;  %vm1188_vm3 = vweird.f32 %v5394_v22  ;;  %3807 = vrcp.f32 %v5414_v54  ;;  %v1335_v15 = vmul.f32 %v1334_v21, %v7239_v41 }
 0x22f   : > { %v3121_v51 = vadd.f32 1.0, %v3690_v62  ;;  %v1184_v63 = vmul.f32 %v3806_v50, %v5394_v22  ;;  %v1194_v24 = vand.u32 2147483648, %v5394_v22  ;;  %v1374_v42 = vadd.f32 0.001143296, %v1373_v5 }
 0x230   : > { %v1151_v31 = vsel %vm1150_vm4, %v3804_v6, %v1147_v35  ;;  %vm5430_vm5 = vcmp.eq.f32.partialorder %v1192_v34, 8.507059e+37  ;;  %v1260_v26 = vadd.f32 0.4994258, %v1259_v4  ;;  %v1298_v9 = vadd.f32 0.112945676, %v1297_v3 }
 0x231   : > { %v3173_v60 = vmul.f32 %v3121_v51, %v7249_v25  ;;  %v1156_v21 = vsel %vm5417_vm2, %v1155_v23, %v1151_v31  ;;  %v1185_v56 = vsub.f32 1.0, %v1184_v63  ;;  %v1232_v49 = vand.u32 2147483647, %v5414_v54 }
 0x232   : > { %v1157_v39 = vmul.f32 %v1156_v21, %v7250_v36  ;;  %v1261_v45 = vmul.f32 %v1260_v26, %v7234_v47  ;;  %v1299_v6 = vmul.f32 %v1298_v9, %v7235_v17  ;;  %v1336_v34 = vadd.f32 0.014752088, %v1335_v15 }
 0x233   : > { %3360 = vmatmul.f32.vlgmr.msrb.gmra.mxu1 %v3173_v60  ;;  %v1186_v5 = vmul.f32 %v3806_v50, %v1185_v56  ;;  %vm1189_vm6 = vweird.f32 %v3806_v50  ;;  %v1195_v62 = vor.u32 1.1754944e-38, %v1194_v24  ;;  %v1375_v3 = vmul.f32 %v1374_v42, %v7242_v58  ;;  %v7253_v42 = vld [vmem:[#allocation22_spill] sm:$0xff]  ;;  %v7254_v56 = vld [vmem:[#allocation19_spill] sm:$0xff] }
 0x234   : > { %v3808_v4 = vpop.eup %3807  ;;  %v3691_v35 = vclamps-f32 %v1157_v39, 1.0  ;;  %v5442_v32 = vadd.f32 1.0, %v1261_v45  ;;  %v1300_v23 = vadd.f32 0.4994258, %v1299_v6  ;;  %v1337_v51 = vmul.f32 %v1336_v34, %v7239_v41  ;;  %vm1190_vm8 = vmor %vm1188_vm3, %vm1189_vm6  ;;  %v7255_v45 = vld [vmem:[#allocation32_spill] sm:$0xff] }
 0x235   : > { %v1187_v63 = vadd.f32 %v3806_v50, %v1186_v5  ;;  %v1224_v31 = vmul.f32 %v3808_v4, %v5414_v54  ;;  %vm1228_vm7 = vweird.f32 %v5414_v54  ;;  %v1234_v47 = vand.u32 2147483648, %v5414_v54 }
 0x236   : > { %v3122_v15 = vadd.f32 1.0, %v3691_v35  ;;  %vm5450_vm9 = vcmp.eq.f32.partialorder %v1232_v49, 8.507059e+37  ;;  %3809 = vrcp.f32 %v5442_v32  ;;  %v1413_v26 = vmul.f32 3.8918573e-05, %v7253_v42 }
 0x237   : > { %v1191_v9 = vsel %vm1190_vm8, %v3806_v50, %v1187_v63  ;;  %v1225_v25 = vsub.f32 1.0, %v1224_v31  ;;  %v1301_v60 = vmul.f32 %v1300_v23, %v7235_v17  ;;  %v1376_v21 = vadd.f32 0.014752088, %v1375_v3 }
 0x238   : > { %v3174_v36 = vmul.f32 %v3122_v15, %v7254_v56  ;;  %v1196_v39 = vsel %vm5430_vm5, %v1195_v62, %v1191_v9  ;;  %v1338_v22 = vadd.f32 0.112945676, %v1337_v51  ;;  %v1453_v49 = vmul.f32 3.8918573e-05, %v4753_v14 }
 0x239   : > { %v1197_v6 = vmul.f32 %v1196_v39, %v7255_v45  ;;  %v1226_v34 = vmul.f32 %v3808_v4, %v1225_v25  ;;  %vm1229_vm10 = vweird.f32 %v3808_v4  ;;  %v5462_v5 = vadd.f32 1.0, %v1301_v60 }
 0x23a   : > { %3416 = vmatmul.f32.vlgmr.msrb.gmra.mxu2 %v3174_v36  ;;  %v1235_v50 = vor.u32 1.1754944e-38, %v1234_v47  ;;  %v1272_v35 = vand.u32 2147483647, %v5442_v32  ;;  %v1339_v17 = vmul.f32 %v1338_v22, %v7239_v41  ;;  %v1414_v3 = vadd.f32 0.001143296, %v1413_v26  ;;  %vm1230_vm11 = vmor %vm1228_vm7, %vm1229_vm10  ;;  %v7258_v36 = vld [vmem:[#allocation24_spill] sm:$0xff] }
 0x23b   : > { %v3692_v23 = vclamps-f32 %v1197_v6, 1.0  ;;  %v1227_v63 = vadd.f32 %v3808_v4, %v1226_v34  ;;  %3811 = vrcp.f32 %v5462_v5  ;;  %v1377_v38 = vmul.f32 %v1376_v21, %v7242_v58 }
 0x23c   : > { %v3810_v62 = vpop.eup %3809  ;;  %v1274_v51 = vand.u32 2147483648, %v5442_v32  ;;  %v1340_v31 = vadd.f32 0.4994258, %v1339_v17  ;;  %v1415_v47 = vmul.f32 %v1414_v3, %v7253_v42  ;;  %v1454_v15 = vadd.f32 0.001143296, %v1453_v49 }
 0x23d   : > { %v3123_v9 = vadd.f32 1.0, %v3692_v23  ;;  %v1231_v25 = vsel %vm1230_vm11, %v3808_v4, %v1227_v63  ;;  %v1264_v26 = vmul.f32 %v3810_v62, %v5442_v32  ;;  %vm1268_vm12 = vweird.f32 %v5442_v32  ;;  %v7261_v32 = vld [vmem:[#allocation34_spill] sm:$0xff] }
 0x23e   : > { %v1236_v60 = vsel %vm5450_vm9, %v1235_v50, %v1231_v25  ;;  %vm5476_vm13 = vcmp.eq.f32.partialorder %v1272_v35, 8.507059e+37  ;;  %v1312_v54 = vand.u32 2147483647, %v5462_v5  ;;  %v1341_v56 = vmul.f32 %v1340_v31, %v7239_v41 }
 0x23f   : > { %v3175_v39 = vmul.f32 %v3123_v9, %v7258_v36  ;;  %v1237_v22 = vmul.f32 %v1236_v60, %v4993_v44  ;;  %v1265_v4 = vsub.f32 1.0, %v1264_v26  ;;  %v1378_v49 = vadd.f32 0.112945676, %v1377_v38 }
 0x240   : > { %v1275_v45 = vor.u32 1.1754944e-38, %v1274_v51  ;;  %v5484_v6 = vadd.f32 1.0, %v1341_v56  ;;  %v1416_v34 = vadd.f32 0.014752088, %v1415_v47  ;;  %v1455_v24 = vmul.f32 %v1454_v15, %v4753_v14 }
 0x241   : > { %v3812_v50 = vpop.eup %3811  ;;  %3472 = vmatmul.f32.vlgmr.msrb.gmra.mxu3 %v3175_v39  ;;  %v3693_v35 = vclamps-f32 %v1237_v22, 1.0  ;;  %v1266_v17 = vmul.f32 %v3810_v62, %v1265_v4  ;;  %vm1269_vm14 = vweird.f32 %v3810_v62  ;;  %v1379_v3 = vmul.f32 %v1378_v49, %v7242_v58 }
 0x242   : > { %v1304_v41 = vmul.f32 %v3812_v50, %v5462_v5  ;;  %vm1308_vm15 = vweird.f32 %v5462_v5  ;;  %v1314_v44 = vand.u32 2147483648, %v5462_v5  ;;  %3813 = vrcp.f32 %v5484_v6  ;;  %vm1270_vm1 = vmor %vm1268_vm12, %vm1269_vm14 }
 0x243   : > { %v3124_v23 = vadd.f32 1.0, %v3693_v35  ;;  %v1267_v63 = vadd.f32 %v3810_v62, %v1266_v17  ;;  %vm5492_vm0 = vcmp.eq.f32.partialorder %v1312_v54, 8.507059e+37  ;;  %v1493_v51 = vmul.f32 3.8918573e-05, %v4756_v1 }
 0x244   : > { %v1305_v31 = vsub.f32 1.0, %v1304_v41  ;;  %v1380_v47 = vadd.f32 0.4994258, %v1379_v3  ;;  %v1417_v15 = vmul.f32 %v1416_v34, %v7253_v42  ;;  %v1456_v9 = vadd.f32 0.014752088, %v1455_v24 }
 0x245   : > { %v3176_v25 = vmul.f32 %v3124_v23, %v5362_v0  ;;  %v1271_v26 = vsel %vm1270_vm1, %v3810_v62, %v1267_v63  ;;  %vm1309_vm2 = vweird.f32 %v3812_v50  ;;  %v1533_v60 = vmul.f32 3.8918573e-05, %v4819_v13 }
 0x246   : > { %v1276_v54 = vsel %vm5476_vm13, %v1275_v45, %v1271_v26  ;;  %v1306_v56 = vmul.f32 %v3812_v50, %v1305_v31  ;;  %v1381_v36 = vmul.f32 %v1380_v47, %v7242_v58  ;;  %v1418_v39 = vadd.f32 0.112945676, %v1417_v15  ;;  %vm1310_vm4 = vmor %vm1308_vm15, %vm1309_vm2  ;;  %v7262_v15 = vld [vmem:[#allocation36_spill] sm:$0xff] }
 0x247   : > { %3307 = vmatmul.f32.gmra.mxu0 %v3176_v25  ;;  %v1277_v22 = vmul.f32 %v1276_v54, %v7261_v32  ;;  %v1315_v4 = vor.u32 1.1754944e-38, %v1314_v44  ;;  %vm1348_vm3 = vweird.f32 %v5484_v6  ;;  %v1457_v49 = vmul.f32 %v1456_v9, %v4753_v14 }
 0x248   : > { %v3814_v0 = vpop.eup %3813  ;;  %v1307_v62 = vadd.f32 %v3812_v50, %v1306_v56  ;;  %v1352_v34 = vand.u32 2147483647, %v5484_v6  ;;  %v5509_v24 = vadd.f32 1.0, %v1381_v36  ;;  %v1419_v21 = vmul.f32 %v1418_v39, %v7253_v42 }
 0x249   : > { %v3694_v45 = vclamps-f32 %v1277_v22, 1.0  ;;  %v1344_v58 = vmul.f32 %v3814_v0, %v5484_v6  ;;  %v1458_v35 = vadd.f32 0.112945676, %v1457_v49  ;;  %v1494_v17 = vadd.f32 0.001143296, %v1493_v51 }
 0x24a   : > { %v1311_v3 = vsel %vm1310_vm4, %v3812_v50, %v1307_v62  ;;  %v1354_v41 = vand.u32 2147483648, %v5484_v6  ;;  %3815 = vrcp.f32 %v5509_v24  ;;  %v1534_v44 = vadd.f32 0.001143296, %v1533_v60 }
 0x24b   : > { %v3125_v23 = vadd.f32 1.0, %v3694_v45  ;;  %v1316_v63 = vsel %vm5492_vm0, %v1315_v4, %v1311_v3  ;;  %v1345_v31 = vsub.f32 1.0, %v1344_v58  ;;  %v1573_v47 = vmul.f32 3.8918573e-05, %v4851_v33 }
 0x24c   : > { %v1317_v5 = vmul.f32 %v1316_v63, %v7262_v15  ;;  %vm5522_vm5 = vcmp.eq.f32.partialorder %v1352_v34, 8.507059e+37  ;;  %v1420_v51 = vadd.f32 0.4994258, %v1419_v21  ;;  %v1459_v50 = vmul.f32 %v1458_v35, %v4753_v14 }
 0x24d   : > { %v3177_v25 = vmul.f32 %v3125_v23, %v5377_v27  ;;  %v1346_v26 = vmul.f32 %v3814_v0, %v1345_v31  ;;  %vm1349_vm6 = vweird.f32 %v3814_v0  ;;  %v1495_v60 = vmul.f32 %v1494_v17, %v4756_v1 }
 0x24e   : > { %v3695_v38 = vclamps-f32 %v1317_v5, 1.0  ;;  %v1421_v54 = vmul.f32 %v1420_v51, %v7253_v42  ;;  %v1460_v56 = vadd.f32 0.4994258, %v1459_v50  ;;  %v1535_v36 = vmul.f32 %v1534_v44, %v4819_v13  ;;  %vm1350_vm7 = vmor %vm1348_vm3, %vm1349_vm6  ;;  %v7266_v51 = vld [vmem:[#allocation15_spill] sm:$0xff] }
 0x24f   : > { %3363 = vmatmul.f32.gmra.mxu1 %v3177_v25  ;;  %v1347_v39 = vadd.f32 %v3814_v0, %v1346_v26  ;;  %v1355_v32 = vor.u32 1.1754944e-38, %v1354_v41  ;;  %v1496_v22 = vadd.f32 0.014752088, %v1495_v60  ;;  %v1574_v4 = vadd.f32 0.001143296, %v1573_v47  ;;  %v7265_v41 = vld [vmem:[#allocation37_spill] sm:$0xff] }
 0x250   : > { %v3816_v49 = vpop.eup %3815  ;;  %v3126_v62 = vadd.f32 1.0, %v3695_v38  ;;  %v5533_v27 = vadd.f32 1.0, %v1421_v54  ;;  %v1461_v34 = vmul.f32 %v1460_v56, %v4753_v14  ;;  %v1536_v21 = vadd.f32 0.014752088, %v1535_v36 }
 0x251   : > { %v1351_v45 = vsel %vm1350_vm7, %v3814_v0, %v1347_v39  ;;  %v1384_v42 = vmul.f32 %v3816_v49, %v5509_v24  ;;  %v1392_v58 = vand.u32 2147483647, %v5509_v24  ;;  %v1497_v35 = vmul.f32 %v1496_v22, %v4756_v1 }
 0x252   : > { %v3178_v17 = vmul.f32 %v3126_v62, %v5397_v46  ;;  %v1356_v3 = vsel %vm5522_vm5, %v1355_v32, %v1351_v45  ;;  %v1394_v6 = vand.u32 2147483648, %v5509_v24  ;;  %3817 = vrcp.f32 %v5533_v27 }
 0x253   : > { %v1357_v44 = vmul.f32 %v1356_v3, %v7265_v41  ;;  %v1385_v14 = vsub.f32 1.0, %v1384_v42  ;;  %vm1389_vm8 = vweird.f32 %v3816_v49  ;;  %v1613_v0 = vmul.f32 3.8918573e-05, %v4917_v11 }
 0x254   : > { %3419 = vmatmul.f32.gmra.mxu2 %v3178_v17  ;;  %v5546_v23 = vadd.f32 1.0, %v1461_v34  ;;  %v1498_v63 = vadd.f32 0.112945676, %v1497_v35  ;;  %v1537_v31 = vmul.f32 %v1536_v21, %v4819_v13  ;;  %v1575_v46 = vmul.f32 %v1574_v4, %v4851_v33  ;;  %v7271_v35 = vld [vmem:[#allocation39_spill] sm:$0xff] }
 0x255   : > { %v3696_v47 = vclamps-f32 %v1357_v44, 1.0  ;;  %v1386_v15 = vmul.f32 %v3816_v49, %v1385_v14  ;;  %v1432_v5 = vand.u32 2147483647, %v5533_v27  ;;  %v1434_v9 = vand.u32 2147483648, %v5533_v27 }
 0x256   : > { %v943_v50 = vmul.f32 0.5, %v7266_v51  ;;  %vm1388_vm9 = vweird.f32 %v5509_v24  ;;  %vm5554_vm10 = vcmp.eq.f32.partialorder %v1392_v58, 8.507059e+37  ;;  %3819 = vrcp.f32 %v5546_v23 }
 0x257   : > { %v3127_v26 = vadd.f32 1.0, %v3696_v47  ;;  %v1387_v60 = vadd.f32 %v3816_v49, %v1386_v15  ;;  %v1499_v38 = vmul.f32 %v1498_v63, %v4756_v1  ;;  %v1538_v54 = vadd.f32 0.112945676, %v1537_v31  ;;  %vm1390_vm11 = vmor %vm1388_vm9, %vm1389_vm8 }
 0x258   : > { %v3818_v56 = vpop.eup %3817  ;;  %v1395_v36 = vor.u32 1.1754944e-38, %v1394_v6  ;;  %vm1428_vm12 = vweird.f32 %v5533_v27  ;;  %v1576_v39 = vadd.f32 0.014752088, %v1575_v46  ;;  %v1614_v32 = vadd.f32 0.001143296, %v1613_v0 }
 0x259   : > { %v3179_v24 = vmul.f32 %v3127_v26, %v943_v50  ;;  %v1391_v22 = vsel %vm1390_vm11, %v3816_v49, %v1387_v60  ;;  %v1424_v4 = vmul.f32 %v3818_v56, %v5533_v27  ;;  %vm5563_vm13 = vcmp.eq.f32.partialorder %v1432_v5, 8.507059e+37  ;;  %v7274_v60 = vld [vmem:[#allocation25_spill] sm:$0xff] }
 0x25a   : > { %v1435_v34 = vor.u32 1.1754944e-38, %v1434_v9  ;;  %v1396_v21 = vsel %vm5554_vm10, %v1395_v36, %v1391_v22  ;;  %v1500_v45 = vadd.f32 0.4994258, %v1499_v38  ;;  %v1539_v42 = vmul.f32 %v1538_v54, %v4819_v13 }
 0x25b   : > { %v1577_v58 = vmul.f32 %v1576_v39, %v4851_v33  ;;  %3475 = vmatmul.f32.gmra.mxu3 %v3179_v24  ;;  %v1397_v17 = vmul.f32 %v1396_v21, %v7271_v35  ;;  %v1425_v3 = vsub.f32 1.0, %v1424_v4  ;;  %vm1468_vm14 = vweird.f32 %v5546_v23 }
 0x25c   : > { %v1472_v49 = vand.u32 2147483647, %v5546_v23  ;;  %v3820_v6 = vpop.eup %3819  ;;  %v1501_v41 = vmul.f32 %v1500_v45, %v4756_v1  ;;  %v1540_v44 = vadd.f32 0.4994258, %v1539_v42  ;;  %v1615_v0 = vmul.f32 %v1614_v32, %v4917_v11 }
 0x25d   : > { %v1578_v14 = vadd.f32 0.112945676, %v1577_v58  ;;  %v3697_v63 = vclamps-f32 %v1397_v17, 1.0  ;;  %v1426_v31 = vmul.f32 %v3818_v56, %v1425_v3  ;;  %vm1429_vm15 = vweird.f32 %v3818_v56 }
 0x25e   : > { %v1464_v46 = vmul.f32 %v3820_v6, %v5546_v23  ;;  %v5577_v47 = vadd.f32 1.0, %v1501_v41  ;;  %v1541_v15 = vmul.f32 %v1540_v44, %v4819_v13  ;;  %v1653_v9 = vmul.f32 3.8918573e-05, %v4932_v57  ;;  %vm1430_vm0 = vmor %vm1428_vm12, %vm1429_vm15 }
 0x25f   : > { %v1579_v5 = vmul.f32 %v1578_v14, %v4851_v33  ;;  %v3128_v51 = vadd.f32 1.0, %v3697_v63  ;;  %v1427_v50 = vadd.f32 %v3818_v56, %v1426_v31  ;;  %v1474_v25 = vand.u32 2147483648, %v5546_v23 }
 0x260   : > { %v1465_v1 = vsub.f32 1.0, %v1464_v46  ;;  %vm1469_vm1 = vweird.f32 %v3820_v6  ;;  %vm5585_vm2 = vcmp.eq.f32.partialorder %v1472_v49, 8.507059e+37  ;;  %3821 = vrcp.f32 %v5577_v47 }
 0x261   : > { %v1616_v13 = vadd.f32 0.014752088, %v1615_v0  ;;  %v3180_v38 = vmul.f32 %v3128_v51, %v7274_v60  ;;  %v1431_v54 = vsel %vm1430_vm0, %v3818_v56, %v1427_v50  ;;  %v5591_v39 = vadd.f32 1.0, %v1541_v15  ;;  %vm1470_vm3 = vmor %vm1468_vm14, %vm1469_vm1  ;;  %v7277_v15 = vld [vmem:[#allocation27_spill] sm:$0xff] }
 0x262   : > { %v1466_v36 = vmul.f32 %v3820_v6, %v1465_v1  ;;  %v1436_v32 = vsel %vm5563_vm13, %v1435_v34, %v1431_v54  ;;  %v1514_v27 = vand.u32 2147483648, %v5577_v47  ;;  %v1580_v24 = vadd.f32 0.4994258, %v1579_v5 }
 0x263   : > { %v1654_v22 = vadd.f32 0.001143296, %v1653_v9  ;;  %3310 = vmatmul.f32.gmra.mxu0 %v3180_v38  ;;  %v1437_v4 = vmul.f32 %v1436_v32, %v5126_v43  ;;  %v1512_v45 = vand.u32 2147483647, %v5577_v47  ;;  %3823 = vrcp.f32 %v5591_v39 }
 0x264   : > { %v1467_v21 = vadd.f32 %v3820_v6, %v1466_v36  ;;  %v1475_v56 = vor.u32 1.1754944e-38, %v1474_v25  ;;  %v1554_v62 = vand.u32 2147483648, %v5591_v39  ;;  %v1581_v34 = vmul.f32 %v1580_v24, %v4851_v33 }
 0x265   : > { %v1693_v42 = vmul.f32 3.8918573e-05, %v4944_v61  ;;  %v3698_v58 = vclamps-f32 %v1437_v4, 1.0  ;;  %vm1508_vm4 = vweird.f32 %v5577_v47  ;;  %v1617_v43 = vmul.f32 %v1616_v13, %v4917_v11 }
 0x266   : > { %v1471_v35 = vsel %vm1470_vm3, %v3820_v6, %v1467_v21  ;;  %v3822_v17 = vpop.eup %3821  ;;  %v1515_v49 = vor.u32 1.1754944e-38, %v1514_v27  ;;  %v1552_v23 = vand.u32 2147483647, %v5591_v39  ;;  %v5610_v41 = vadd.f32 1.0, %v1581_v34 }
 0x267   : > { %v1476_v3 = vsel %vm5585_vm2, %v1475_v56, %v1471_v35  ;;  %v3129_v44 = vadd.f32 1.0, %v3698_v58  ;;  %v1504_v14 = vmul.f32 %v3822_v17, %v5577_v47  ;;  %vm5614_vm5 = vcmp.eq.f32.partialorder %v1512_v45, 8.507059e+37 }
 0x268   : > { %v1477_v33 = vmul.f32 %v1476_v3, %v5129_v30  ;;  %v1655_v0 = vmul.f32 %v1654_v22, %v4932_v57  ;;  %vm1548_vm6 = vweird.f32 %v5591_v39  ;;  %v1555_v63 = vor.u32 1.1754944e-38, %v1554_v62  ;;  %v7280_v22 = vld [vmem:[#allocation30_spill] sm:$0xff] }
 0x269   : > { %3825 = vrcp.f32 %v5610_v41  ;;  %v1694_v31 = vadd.f32 0.001143296, %v1693_v42  ;;  %v3824_v46 = vpop.eup %3823  ;;  %v3181_v5 = vmul.f32 %v3129_v44, %v7277_v15  ;;  %v1505_v51 = vsub.f32 1.0, %v1504_v14 }
 0x26a   : > { %v3699_v9 = vclamps-f32 %v1477_v33, 1.0  ;;  %v1618_v30 = vadd.f32 0.112945676, %v1617_v43  ;;  %vm1509_vm7 = vweird.f32 %v3822_v17  ;;  %v1544_v50 = vmul.f32 %v3824_v46, %v5591_v39  ;;  %v7281_v39 = vld [vmem:[#allocation44_spill] sm:$0xff] }
 0x26b   : > { %vm5623_vm8 = vcmp.eq.f32.partialorder %v1552_v23, 8.507059e+37  ;;  %v1592_v25 = vand.u32 2147483647, %v5610_v41  ;;  %v1594_v26 = vand.u32 2147483648, %v5610_v41  ;;  %3366 = vmatmul.f32.gmra.mxu1 %v3181_v5  ;;  %v1506_v60 = vmul.f32 %v3822_v17, %v1505_v51  ;;  %vm1510_vm9 = vmor %vm1508_vm4, %vm1509_vm7 }
 0x26c   : > { %v3130_v13 = vadd.f32 1.0, %v3699_v9  ;;  %v1619_v38 = vmul.f32 %v1618_v30, %v4917_v11  ;;  %v1656_v54 = vadd.f32 0.014752088, %v1655_v0  ;;  %v1545_v36 = vsub.f32 1.0, %v1544_v50 }
 0x26d   : > { %v1695_v32 = vmul.f32 %v1694_v31, %v4944_v61  ;;  %v1733_v27 = vmul.f32 3.8918573e-05, %v4975_v29  ;;  %v1773_v24 = vmul.f32 3.8918573e-05, %v5019_v37  ;;  %v1507_v21 = vadd.f32 %v3822_v17, %v1506_v60 }
 0x26e   : > { %v3182_v4 = vmul.f32 %v3130_v13, %v7280_v22  ;;  %v1620_v45 = vadd.f32 0.4994258, %v1619_v38  ;;  %v1657_v56 = vmul.f32 %v1656_v54, %v4932_v57  ;;  %v1546_v34 = vmul.f32 %v3824_v46, %v1545_v36  ;;  %v7282_v36 = vld [vmem:[#allocation31_spill] sm:$0xff] }
 0x26f   : > { %v3826_v62 = vpop.eup %3825  ;;  %vm1549_vm10 = vweird.f32 %v3824_v46  ;;  %v1696_v42 = vadd.f32 0.014752088, %v1695_v32  ;;  %v1734_v58 = vadd.f32 0.001143296, %v1733_v27  ;;  %v1511_v35 = vsel %vm1510_vm9, %v3822_v17, %v1507_v21 }
 0x270   : > { %3422 = vmatmul.f32.gmra.mxu2 %v3182_v4  ;;  %v1584_v43 = vmul.f32 %v3826_v62, %v5610_v41  ;;  %v1621_v3 = vmul.f32 %v1620_v45, %v4917_v11  ;;  %v1774_v23 = vadd.f32 0.001143296, %v1773_v24  ;;  %v1516_v44 = vsel %vm5614_vm5, %v1515_v49, %v1511_v35  ;;  %vm1550_vm11 = vmor %vm1548_vm6, %vm1549_vm10 }
 0x271   : > { %v1547_v33 = vadd.f32 %v3824_v46, %v1546_v34  ;;  %v1658_v14 = vadd.f32 0.112945676, %v1657_v56  ;;  %v1697_v0 = vmul.f32 %v1696_v42, %v4944_v61  ;;  %v1517_v47 = vmul.f32 %v1516_v44, %v5139_v28 }
 0x272   : > { %v1585_v31 = vsub.f32 1.0, %v1584_v43  ;;  %vm1589_vm12 = vweird.f32 %v3826_v62  ;;  %v5646_v17 = vadd.f32 1.0, %v1621_v3  ;;  %v1735_v6 = vmul.f32 %v1734_v58, %v4975_v29 }
 0x273   : > { %v1551_v15 = vsel %vm1550_vm11, %v3824_v46, %v1547_v33  ;;  %v1659_v11 = vmul.f32 %v1658_v14, %v4932_v57  ;;  %v1698_v5 = vadd.f32 0.112945676, %v1697_v0  ;;  %v3700_v49 = vclamps-f32 %v1517_v47, 1.0 }
 0x274   : > { %v1556_v9 = vsel %vm5623_vm8, %v1555_v63, %v1551_v15  ;;  %v1586_v51 = vmul.f32 %v3826_v62, %v1585_v31  ;;  %3827 = vrcp.f32 %v5646_v17  ;;  %v5655_v28 = vmul.f32 %v5333_v18, %v5161_v52  ;;  %v7284_v31 = vld [vmem:[#allocation35_spill] sm:$0xff] }
 0x275   : > { %v1557_v30 = vmul.f32 %v1556_v9, %v7281_v39  ;;  %vm1588_vm13 = vweird.f32 %v5610_v41  ;;  %v1775_v46 = vmul.f32 %v1774_v23, %v5019_v37  ;;  %v3131_v50 = vadd.f32 1.0, %v3700_v49 }
 0x276   : > { %v1587_v13 = vadd.f32 %v3826_v62, %v1586_v51  ;;  %v1660_v60 = vadd.f32 0.4994258, %v1659_v11  ;;  %v1699_v38 = vmul.f32 %v1698_v5, %v4944_v61  ;;  %vm1590_vm14 = vmor %vm1588_vm13, %vm1589_vm12  ;;  %vm1593_vm15 = vcmp.eq.f32.partialorder %v1592_v25, 8.507059e+37 }
 0x277   : > { %v3701_v1 = vclamps-f32 %v1557_v30, 1.0  ;;  %v1595_v63 = vor.u32 1.1754944e-38, %v1594_v26  ;;  %v1736_v54 = vadd.f32 0.014752088, %v1735_v6  ;;  %v3183_v52 = vmul.f32 %v3131_v50, %v7282_v36 }
 0x278   : > { %v1591_v18 = vsel %vm1590_vm14, %v3826_v62, %v1587_v13  ;;  %v1661_v32 = vmul.f32 %v1660_v60, %v4932_v57  ;;  %v1700_v27 = vadd.f32 0.4994258, %v1699_v38  ;;  %v1776_v4 = vadd.f32 0.014752088, %v1775_v46  ;;  %v7283_v57 = vld [vmem:[#allocation33_spill] sm:$0xff] }
 0x279   : > { %v3132_v41 = vadd.f32 1.0, %v3701_v1  ;;  %v1596_v24 = vsel %vm1593_vm15, %v1595_v63, %v1591_v18  ;;  %v1737_v22 = vmul.f32 %v1736_v54, %v4975_v29  ;;  %3478 = vmatmul.f32.gmra.mxu3 %v3183_v52  ;;  %v1813_v26 = vmul.f32 3.8918573e-05, %v5044_v8 }
 0x27a   : > { %v3828_v21 = vpop.eup %3827  ;;  %v1597_v45 = vmul.f32 %v1596_v24, %v5217_v2  ;;  %v5666_v56 = vadd.f32 1.0, %v1661_v32  ;;  %v1701_v25 = vmul.f32 %v1700_v27, %v4944_v61  ;;  %v5672_v62 = vmul.f32 %v5342_v40, %v5232_v59 }
 0x27b   : > { %v3184_v34 = vmul.f32 %v3132_v41, %v7283_v57  ;;  %v1624_v42 = vmul.f32 %v3828_v21, %v5646_v17  ;;  %v1738_v58 = vadd.f32 0.112945676, %v1737_v22  ;;  %v1632_v43 = vand.u32 2147483647, %v5646_v17 }
 0x27c   : > { %v3702_v35 = vclamps-f32 %v1597_v45, 1.0  ;;  %v1634_v2 = vand.u32 2147483648, %v5646_v17  ;;  %3829 = vrcp.f32 %v5666_v56  ;;  %vm1628_vm0 = vweird.f32 %v5646_v17 }
 0x27d   : > { %3313 = vmatmul.f32.gmra.mxu0 %v3184_v34  ;;  %v1625_v61 = vsub.f32 1.0, %v1624_v42  ;;  %v5680_v3 = vadd.f32 1.0, %v1701_v25  ;;  %v1739_v40 = vmul.f32 %v1738_v58, %v4975_v29  ;;  %v1674_v44 = vand.u32 2147483648, %v5666_v56 }
 0x27e   : > { %v3133_v23 = vadd.f32 1.0, %v3702_v35  ;;  %v1777_v33 = vmul.f32 %v1776_v4, %v5019_v37  ;;  %v1814_v14 = vadd.f32 0.001143296, %v1813_v26  ;;  %vm1629_vm1 = vweird.f32 %v3828_v21 }
 0x27f   : > { %v1626_v0 = vmul.f32 %v3828_v21, %v1625_v61  ;;  %v1672_v47 = vand.u32 2147483647, %v5666_v56  ;;  %3831 = vrcp.f32 %v5680_v3  ;;  %vm5688_vm2 = vcmp.eq.f32.partialorder %v1632_v43, 8.507059e+37  ;;  %vm1630_vm3 = vmor %vm1628_vm0, %vm1629_vm1 }
 0x280   : > { %v3185_v15 = vmul.f32 %v3133_v23, %v7284_v31  ;;  %v1635_v5 = vor.u32 1.1754944e-38, %v1634_v2  ;;  %v1740_v6 = vadd.f32 0.4994258, %v1739_v40  ;;  %v1778_v9 = vadd.f32 0.112945676, %v1777_v33  ;;  %v7291_v23 = vld [vmem:[#allocation38_spill] sm:$0xff] }
 0x281   : > { %v1627_v49 = vadd.f32 %v3828_v21, %v1626_v0  ;;  %v1815_v51 = vmul.f32 %v1814_v14, %v5044_v8  ;;  %v1853_v39 = vmul.f32 3.8918573e-05, %v5072_v55  ;;  %vm1668_vm4 = vweird.f32 %v5666_v56 }
 0x282   : > { %v3830_v30 = vpop.eup %3829  ;;  %3369 = vmatmul.f32.gmra.mxu1 %v3185_v15  ;;  %v1675_v46 = vor.u32 1.1754944e-38, %v1674_v44  ;;  %v1712_v50 = vand.u32 2147483647, %v5680_v3  ;;  %v1741_v13 = vmul.f32 %v1740_v6, %v4975_v29  ;;  %vm5700_vm5 = vcmp.eq.f32.partialorder %v1672_v47, 8.507059e+37 }
 0x283   : > { %v1631_v60 = vsel %vm1630_vm3, %v3828_v21, %v1627_v49  ;;  %v1664_v38 = vmul.f32 %v3830_v30, %v5666_v56  ;;  %v1779_v63 = vmul.f32 %v1778_v9, %v5019_v37  ;;  %v1893_v54 = vmul.f32 3.8918573e-05, %v5103_v48  ;;  %v7298_v49 = vld [vmem:[#allocation62_spill] sm:$0xff] }
 0x284   : > { %v1636_v17 = vsel %vm5688_vm2, %v1635_v5, %v1631_v60  ;;  %v5708_v36 = vadd.f32 1.0, %v1741_v13  ;;  %v1816_v52 = vadd.f32 0.014752088, %v1815_v51  ;;  %v1854_v18 = vadd.f32 0.001143296, %v1853_v39 }
 0x285   : > { %v3832_v32 = vpop.eup %3831  ;;  %v1637_v29 = vmul.f32 %v1636_v17, %v5224_v10  ;;  %v1665_v27 = vsub.f32 1.0, %v1664_v38  ;;  %vm1708_vm6 = vweird.f32 %v5680_v3  ;;  %v1780_v41 = vadd.f32 0.4994258, %v1779_v63 }
 0x286   : > { %v1704_v24 = vmul.f32 %v3832_v32, %v5680_v3  ;;  %vm5713_vm7 = vcmp.eq.f32.partialorder %v1712_v50, 8.507059e+37  ;;  %v1714_v4 = vand.u32 2147483648, %v5680_v3  ;;  %3833 = vrcp.f32 %v5708_v36 }
 0x287   : > { %v3703_v21 = vclamps-f32 %v1637_v29, 1.0  ;;  %v1666_v45 = vmul.f32 %v3830_v30, %v1665_v27  ;;  %vm1669_vm8 = vweird.f32 %v3830_v30  ;;  %v1894_v25 = vadd.f32 0.001143296, %v1893_v54  ;;  %v7294_v29 = vld [vmem:[#allocation40_spill] sm:$0xff] }
 0x288   : > { %v1705_v26 = vsub.f32 1.0, %v1704_v24  ;;  %v1781_v10 = vmul.f32 %v1780_v41, %v5019_v37  ;;  %v1817_v57 = vmul.f32 %v1816_v52, %v5044_v8  ;;  %v1855_v34 = vmul.f32 %v1854_v18, %v5072_v55  ;;  %vm1670_vm10 = vmor %vm1668_vm4, %vm1669_vm8 }
 0x289   : > { %v3134_v42 = vadd.f32 1.0, %v3703_v21  ;;  %v1667_v58 = vadd.f32 %v3830_v30, %v1666_v45  ;;  %vm1709_vm9 = vweird.f32 %v3832_v32  ;;  %v1752_v35 = vand.u32 2147483647, %v5708_v36 }
 0x28a   : > { %v1706_v43 = vmul.f32 %v3832_v32, %v1705_v26  ;;  %v5725_v2 = vadd.f32 1.0, %v1781_v10  ;;  %v1818_v61 = vadd.f32 0.112945676, %v1817_v57  ;;  %v1856_v40 = vadd.f32 0.014752088, %v1855_v34  ;;  %vm1710_vm12 = vmor %vm1708_vm6, %vm1709_vm9  ;;  %v7295_v57 = vld [vmem:[#allocation41_spill] sm:$0xff] }
 0x28b   : > { %v3186_v44 = vmul.f32 %v3134_v42, %v7291_v23  ;;  %v1671_v37 = vsel %vm1670_vm10, %v3830_v30, %v1667_v58  ;;  %v1715_v33 = vor.u32 1.1754944e-38, %v1714_v4  ;;  %v1754_v14 = vand.u32 2147483648, %v5708_v36 }
 0x28c   : > { %v3834_v0 = vpop.eup %3833  ;;  %v1676_v47 = vsel %vm5700_vm5, %v1675_v46, %v1671_v37  ;;  %v1707_v31 = vadd.f32 %v3832_v32, %v1706_v43  ;;  %vm1748_vm11 = vweird.f32 %v5708_v36  ;;  %3835 = vrcp.f32 %v5725_v2 }
 0x28d   : > { %3425 = vmatmul.f32.gmra.mxu2 %v3186_v44  ;;  %v1677_v56 = vmul.f32 %v1676_v47, %v5227_v19  ;;  %v1744_v15 = vmul.f32 %v3834_v0, %v5708_v36  ;;  %v1895_v11 = vmul.f32 %v1894_v25, %v5103_v48  ;;  %v1933_v5 = vmul.f32 3.8918573e-05, %v5169_v16 }
 0x28e   : > { %v1711_v6 = vsel %vm1710_vm12, %v3832_v32, %v1707_v31  ;;  %vm5740_vm13 = vcmp.eq.f32.partialorder %v1752_v35, 8.507059e+37  ;;  %v1819_v9 = vmul.f32 %v1818_v61, %v5044_v8  ;;  %v1857_v51 = vmul.f32 %v1856_v40, %v5072_v55  ;;  %v7296_v35 = vld [vmem:[#allocation56_spill] sm:$0xff] }
 0x28f   : > { %v3704_v19 = vclamps-f32 %v1677_v56, 1.0  ;;  %v1716_v3 = vsel %vm5713_vm7, %v1715_v33, %v1711_v6  ;;  %v1745_v39 = vsub.f32 1.0, %v1744_v15  ;;  %v1755_v30 = vor.u32 1.1754944e-38, %v1754_v14 }
 0x290   : > { %v1717_v46 = vmul.f32 %v1716_v3, %v5240_v12  ;;  %vm1749_vm14 = vweird.f32 %v3834_v0  ;;  %v1820_v50 = vadd.f32 0.4994258, %v1819_v9  ;;  %v1858_v13 = vadd.f32 0.112945676, %v1857_v51 }
 0x291   : > { %v3135_v60 = vadd.f32 1.0, %v3704_v19  ;;  %v1746_v38 = vmul.f32 %v3834_v0, %v1745_v39  ;;  %v1896_v1 = vadd.f32 0.014752088, %v1895_v11  ;;  %v1934_v63 = vadd.f32 0.001143296, %v1933_v5  ;;  %vm1750_vm15 = vmor %vm1748_vm11, %vm1749_vm14  ;;  %v7297_v11 = vld [vmem:[#allocation47_spill] sm:$0xff] }
 0x292   : > { %v3836_v54 = vpop.eup %3835  ;;  %v3705_v17 = vclamps-f32 %v1717_v46, 1.0  ;;  %v1821_v52 = vmul.f32 %v1820_v50, %v5044_v8  ;;  %v1859_v18 = vmul.f32 %v1858_v13, %v5072_v55  ;;  %v1973_v32 = vmul.f32 3.8918573e-05, %v5181_v7  ;;  %v7299_v19 = vld [vmem:[#allocation42_spill] sm:$0xff]  ;;  %v7300_v39 = vld [vmem:[#allocation11_spill] sm:$0xff]  ;;  %v7301_v13 = vld [vmem:[#allocation57_spill] sm:$0xff] }
 0x293   : > { %v3187_v27 = vmul.f32 %v3135_v60, %v7294_v29  ;;  %v1747_v41 = vadd.f32 %v3834_v0, %v1746_v38  ;;  %v1784_v12 = vmul.f32 %v3836_v54, %v5725_v2  ;;  %v1792_v24 = vand.u32 2147483647, %v5725_v2  ;;  %v7302_v60 = vld [vmem:[#allocation63_spill] sm:$0xff] }
 0x294   : > { %v3136_v22 = vadd.f32 1.0, %v3705_v17  ;;  %v5758_v4 = vadd.f32 1.0, %v1821_v52  ;;  %v1860_v21 = vadd.f32 0.4994258, %v1859_v18  ;;  %v1897_v8 = vmul.f32 %v1896_v1, %v5103_v48 }
 0x295   : > { %3481 = vmatmul.f32.gmra.mxu3 %v3187_v27  ;;  %v1751_v45 = vsel %vm1750_vm15, %v3834_v0, %v1747_v41  ;;  %v1785_v25 = vsub.f32 1.0, %v1784_v12  ;;  %v1935_v26 = vmul.f32 %v1934_v63, %v5169_v16  ;;  %v1974_v10 = vadd.f32 0.001143296, %v1973_v32 }
 0x296   : > { %v3188_v34 = vmul.f32 %v3136_v22, %v7295_v57  ;;  %v1756_v42 = vsel %vm5740_vm13, %v1755_v30, %v1751_v45  ;;  %v1794_v58 = vand.u32 2147483648, %v5725_v2  ;;  %3837 = vrcp.f32 %v5758_v4 }
 0x297   : > { %v5769_v36 = vmul.f32 %v5349_v53, %v5287_v20  ;;  %v1757_v43 = vmul.f32 %v1756_v42, %v7296_v35  ;;  %v1786_v61 = vmul.f32 %v3836_v54, %v1785_v25  ;;  %vm1789_vm0 = vweird.f32 %v3836_v54 }
 0x298   : > { %3316 = vmatmul.f32.gmra.mxu0 %v3188_v34  ;;  %v1861_v40 = vmul.f32 %v1860_v21, %v5072_v55  ;;  %v1898_v23 = vadd.f32 0.112945676, %v1897_v8  ;;  %v1936_v44 = vadd.f32 0.014752088, %v1935_v26  ;;  %v1975_v37 = vmul.f32 %v1974_v10, %v5181_v7  ;;  %v7303_v26 = vld [vmem:[#allocation23_spill] sm:$0xff] }
 0x299   : > { %v3706_v33 = vclamps-f32 %v1757_v43, 1.0  ;;  %v1787_v14 = vadd.f32 %v3836_v54, %v1786_v61  ;;  %vm1788_vm1 = vweird.f32 %v5725_v2  ;;  %vm1793_vm2 = vcmp.eq.f32.partialorder %v1792_v24, 8.507059e+37 }
 0x29a   : > { %vm1790_vm3 = vmor %vm1788_vm1, %vm1789_vm0  ;;  %v1795_v0 = vor.u32 1.1754944e-38, %v1794_v58  ;;  %v5775_v53 = vadd.f32 1.0, %v1861_v40  ;;  %v1899_v47 = vmul.f32 %v1898_v23, %v5103_v48  ;;  %v1937_v31 = vmul.f32 %v1936_v44, %v5169_v16 }
 0x29b   : > { %v3137_v56 = vadd.f32 1.0, %v3706_v33  ;;  %v1791_v15 = vsel %vm1790_vm3, %v3836_v54, %v1787_v14  ;;  %v1976_v55 = vadd.f32 0.014752088, %v1975_v37  ;;  %v2013_v5 = vmul.f32 3.8918573e-05, %v7297_v11  ;;  %v7304_v37 = vld [vmem:[#allocation58_spill] sm:$0xff] }
 0x29c   : > { %v3838_v6 = vpop.eup %3837  ;;  %v5781_v9 = vadd.f32 1.1283791, %v7298_v49  ;;  %v5784_v2 = vadd.f32 0.18741608, %v5672_v62  ;;  %v1796_v51 = vsel %vm1793_vm2, %v1795_v0, %v1791_v15  ;;  %3839 = vrcp.f32 %v5775_v53 }
 0x29d   : > { %v3189_v3 = vmul.f32 %v3137_v56, %v7299_v19  ;;  %v1797_v30 = vmul.f32 %v1796_v51, %v7300_v39  ;;  %v1824_v46 = vmul.f32 %v3838_v6, %v5758_v4  ;;  %v1832_v50 = vand.u32 2147483647, %v5758_v4 }
 0x29e   : > { %v5793_v38 = vmul.f32 %v7302_v60, %v7301_v13  ;;  %v1900_v1 = vadd.f32 0.4994258, %v1899_v47  ;;  %v1938_v63 = vadd.f32 0.112945676, %v1937_v31  ;;  %v2053_v62 = vmul.f32 3.8918573e-05, %v5232_v59 }
 0x29f   : > { %3372 = vmatmul.f32.gmra.mxu1 %v3189_v3  ;;  %v3707_v54 = vclamps-f32 %v1797_v30, 1.0  ;;  %v1825_v17 = vsub.f32 1.0, %v1824_v46  ;;  %v1977_v52 = vmul.f32 %v1976_v55, %v5181_v7  ;;  %v2014_v18 = vadd.f32 0.001143296, %v2013_v5 }
 0x2a0   : > { %vm1828_vm4 = vweird.f32 %v5758_v4  ;;  %v1834_v32 = vand.u32 2147483648, %v5758_v4  ;;  %v1901_v29 = vmul.f32 %v1900_v1, %v5103_v48  ;;  %v1939_v27 = vmul.f32 %v1938_v63, %v5169_v16 }
 0x2a1   : > { %v3138_v41 = vadd.f32 1.0, %v3707_v54  ;;  %v1826_v12 = vmul.f32 %v3838_v6, %v1825_v17  ;;  %vm1829_vm5 = vweird.f32 %v3838_v6  ;;  %v1978_v24 = vadd.f32 0.112945676, %v1977_v52 }
 0x2a2   : > { %v3840_v22 = vpop.eup %3839  ;;  %v5801_v21 = vadd.f32 1.0, %v1901_v29  ;;  %v1940_v8 = vadd.f32 0.4994258, %v1939_v27  ;;  %v2015_v45 = vmul.f32 %v2014_v18, %v7297_v11  ;;  %v2054_v25 = vadd.f32 0.001143296, %v2053_v62  ;;  %vm1830_vm7 = vmor %vm1828_vm4, %vm1829_vm5  ;;  %v7310_v62 = vld [vmem:[#allocation59_spill] sm:$0xff] }
 0x2a3   : > { %v3190_v10 = vmul.f32 %v3138_v41, %v7303_v26  ;;  %v1827_v57 = vadd.f32 %v3838_v6, %v1826_v12  ;;  %vm1833_vm6 = vcmp.eq.f32.partialorder %v1832_v50, 8.507059e+37  ;;  %v1864_v34 = vmul.f32 %v3840_v22, %v5775_v53 }
 0x2a4   : > { %v1835_v48 = vor.u32 1.1754944e-38, %v1834_v32  ;;  %v1872_v42 = vand.u32 2147483647, %v5775_v53  ;;  %v1874_v58 = vand.u32 2147483648, %v5775_v53  ;;  %3841 = vrcp.f32 %v5801_v21 }
 0x2a5   : > { %3428 = vmatmul.f32.gmra.mxu2 %v3190_v10  ;;  %v1831_v35 = vsel %vm1830_vm7, %v3838_v6, %v1827_v57  ;;  %v1865_v43 = vsub.f32 1.0, %v1864_v34  ;;  %v1941_v61 = vmul.f32 %v1940_v8, %v5169_v16  ;;  %v1979_v40 = vmul.f32 %v1978_v24, %v5181_v7 }
 0x2a6   : > { %v1836_v23 = vsel %vm1833_vm6, %v1835_v48, %v1831_v35  ;;  %vm1869_vm8 = vweird.f32 %v3840_v22  ;;  %v2016_v44 = vadd.f32 0.014752088, %v2015_v45  ;;  %v2055_v4 = vmul.f32 %v2054_v25, %v5232_v59  ;;  %v7311_v35 = vld [vmem:[#allocation50_spill] sm:$0xff] }
 0x2a7   : > { %v1837_v33 = vmul.f32 %v1836_v23, %v7304_v37  ;;  %v1866_v14 = vmul.f32 %v3840_v22, %v1865_v43  ;;  %v5815_v0 = vadd.f32 1.0, %v1941_v61  ;;  %v1980_v47 = vadd.f32 0.4994258, %v1979_v40 }
 0x2a8   : > { %vm1868_vm9 = vweird.f32 %v5775_v53  ;;  %vm5818_vm10 = vcmp.eq.f32.partialorder %v1872_v42, 8.507059e+37  ;;  %v1912_v16 = vand.u32 2147483647, %v5801_v21  ;;  %v2017_v56 = vmul.f32 %v2016_v44, %v7297_v11 }
 0x2a9   : > { %v3708_v15 = vclamps-f32 %v1837_v33, 1.0  ;;  %v1867_v55 = vadd.f32 %v3840_v22, %v1866_v14  ;;  %v1875_v5 = vor.u32 1.1754944e-38, %v1874_v58  ;;  %3843 = vrcp.f32 %v5815_v0  ;;  %vm1870_vm11 = vmor %vm1868_vm9, %vm1869_vm8  ;;  %v7312_v33 = vld [vmem:[#allocation60_spill] sm:$0xff] }
 0x2aa   : > { %v3842_v6 = vpop.eup %3841  ;;  %vm1908_vm12 = vweird.f32 %v5801_v21  ;;  %v1981_v53 = vmul.f32 %v1980_v47, %v5181_v7  ;;  %v2018_v49 = vadd.f32 0.112945676, %v2017_v56  ;;  %v2093_v51 = vmul.f32 3.8918573e-05, %v7301_v13  ;;  %v7309_v7 = vld [vmem:[#allocation49_spill] sm:$0xff] }
 0x2ab   : > { %v3139_v19 = vadd.f32 1.0, %v3708_v15  ;;  %v1871_v3 = vsel %vm1870_vm11, %v3840_v22, %v1867_v55  ;;  %v1904_v39 = vmul.f32 %v3842_v6, %v5801_v21  ;;  %v2056_v30 = vadd.f32 0.014752088, %v2055_v4 }
 0x2ac   : > { %v1876_v46 = vsel %vm5818_vm10, %v1875_v5, %v1871_v3  ;;  %vm5832_vm13 = vcmp.eq.f32.partialorder %v1912_v16, 8.507059e+37  ;;  %v1914_v60 = vand.u32 2147483648, %v5801_v21  ;;  %v5837_v1 = vadd.f32 1.0, %v1981_v53 }
 0x2ad   : > { %v3191_v63 = vmul.f32 %v3139_v19, %v7309_v7  ;;  %v1877_v54 = vmul.f32 %v1876_v46, %v7310_v62  ;;  %v1905_v17 = vsub.f32 1.0, %v1904_v39  ;;  %v2019_v52 = vmul.f32 %v2018_v49, %v7297_v11  ;;  %v7313_v46 = vld [vmem:[#allocation61_spill] sm:$0xff] }
 0x2ae   : > { %vm1909_vm14 = vweird.f32 %v3842_v6  ;;  %3845 = vrcp.f32 %v5837_v1  ;;  %v2094_v18 = vadd.f32 0.001143296, %v2093_v51  ;;  %v2133_v32 = vmul.f32 3.8918573e-05, %v5287_v20 }
 0x2af   : > { %v3844_v29 = vpop.eup %3843  ;;  %3484 = vmatmul.f32.gmra.mxu3 %v3191_v63  ;;  %v3709_v27 = vclamps-f32 %v1877_v54, 1.0  ;;  %v1906_v41 = vmul.f32 %v3842_v6, %v1905_v17  ;;  %v2020_v12 = vadd.f32 0.4994258, %v2019_v52  ;;  %v2057_v24 = vmul.f32 %v2056_v30, %v5232_v59  ;;  %vm1910_vm15 = vmor %vm1908_vm12, %vm1909_vm14  ;;  %v7314_v63 = vld [vmem:[#allocation8_spill] sm:$0xff] }
 0x2b0   : > { %v1915_v22 = vor.u32 1.1754944e-38, %v1914_v60  ;;  %v1944_v8 = vmul.f32 %v3844_v29, %v5815_v0  ;;  %v1952_v45 = vand.u32 2147483647, %v5815_v0  ;;  %v1954_v25 = vand.u32 2147483648, %v5815_v0 }
 0x2b1   : > { %v3140_v26 = vadd.f32 1.0, %v3709_v27  ;;  %v1907_v10 = vadd.f32 %v3842_v6, %v1906_v41  ;;  %v2021_v57 = vmul.f32 %v2020_v12, %v7297_v11  ;;  %v2058_v34 = vadd.f32 0.112945676, %v2057_v24 }
 0x2b2   : > { %v1945_v48 = vsub.f32 1.0, %v1944_v8  ;;  %vm1949_vm0 = vweird.f32 %v3844_v29  ;;  %v2095_v42 = vmul.f32 %v2094_v18, %v7301_v13  ;;  %v2134_v58 = vadd.f32 0.001143296, %v2133_v32 }
 0x2b3   : > { %v3192_v43 = vmul.f32 %v3140_v26, %v7311_v35  ;;  %v1911_v61 = vsel %vm1910_vm15, %v3842_v6, %v1907_v10  ;;  %v5854_v40 = vadd.f32 1.0, %v2021_v57  ;;  %v2059_v23 = vmul.f32 %v2058_v34, %v5232_v59  ;;  %v7315_v10 = vld [vmem:[#allocation53_spill] sm:$0xff] }
 0x2b4   : > { %v3846_v44 = vpop.eup %3845  ;;  %v1916_v11 = vsel %vm5832_vm13, %v1915_v22, %v1911_v61  ;;  %v1946_v4 = vmul.f32 %v3844_v29, %v1945_v48  ;;  %v2096_v37 = vadd.f32 0.014752088, %v2095_v42  ;;  %v2135_v21 = vmul.f32 %v2134_v58, %v5287_v20 }
 0x2b5   : > { %3319 = vmatmul.f32.gmra.mxu0 %v3192_v43  ;;  %v1917_v14 = vmul.f32 %v1916_v11, %v7312_v33  ;;  %vm1948_vm1 = vweird.f32 %v5815_v0  ;;  %v1984_v47 = vmul.f32 %v3846_v44, %v5837_v1  ;;  %3847 = vrcp.f32 %v5854_v40  ;;  %v7316_v43 = vld [vmem:[#allocation45_spill] sm:$0xff] }
 0x2b6   : > { %v1947_v31 = vadd.f32 %v3844_v29, %v1946_v4  ;;  %vm1953_vm2 = vcmp.eq.f32.partialorder %v1952_v45, 8.507059e+37  ;;  %v1955_v16 = vor.u32 1.1754944e-38, %v1954_v25  ;;  %v1992_v56 = vand.u32 2147483647, %v5837_v1  ;;  %vm1950_vm3 = vmor %vm1948_vm1, %vm1949_vm0 }
 0x2b7   : > { %v3710_v15 = vclamps-f32 %v1917_v14, 1.0  ;;  %v1985_v55 = vsub.f32 1.0, %v1984_v47  ;;  %v2060_v5 = vadd.f32 0.4994258, %v2059_v23  ;;  %v2097_v6 = vmul.f32 %v2096_v37, %v7301_v13 }
 0x2b8   : > { %v1951_v53 = vsel %vm1950_vm3, %v3844_v29, %v1947_v31  ;;  %vm1989_vm4 = vweird.f32 %v3846_v44  ;;  %v1994_v0 = vand.u32 2147483648, %v5837_v1  ;;  %v2136_v49 = vadd.f32 0.014752088, %v2135_v21  ;;  %v7317_v31 = vld [vmem:[#allocation9_spill] sm:$0xff] }
 0x2b9   : > { %v3141_v51 = vadd.f32 1.0, %v3710_v15  ;;  %v1956_v19 = vsel %vm1953_vm2, %v1955_v16, %v1951_v53  ;;  %v1986_v3 = vmul.f32 %v3846_v44, %v1985_v55  ;;  %v2061_v39 = vmul.f32 %v2060_v5, %v5232_v59  ;;  %v750_v15 = vpop.f32.mrf.mxu0  ;;  %v7318_v55 = vld [vmem:[#allocation43_spill] sm:$0xff] }
 0x2ba   : > { %v2125_v30 = vadd.f32 0.0036580483, %v5769_v36  ;;  %v1957_v50 = vmul.f32 %v1956_v19, %v7313_v46  ;;  %vm1988_vm5 = vweird.f32 %v5837_v1  ;;  %v2098_v60 = vadd.f32 0.112945676, %v2097_v6  ;;  %v806_v19 = vpop.f32.mrf.mxu1 }
 0x2bb   : > { %v3848_v7 = vpop.eup %3847  ;;  %v3193_v62 = vmul.f32 %v3141_v51, %v7314_v63  ;;  %v1987_v54 = vadd.f32 %v3846_v44, %v1986_v3  ;;  %v5873_v17 = vadd.f32 1.0, %v2061_v39  ;;  %v2137_v52 = vmul.f32 %v2136_v49, %v5287_v20  ;;  %vm1990_vm6 = vmor %vm1988_vm5, %vm1989_vm4  ;;  %v862_v3 = vpop.f32.mrf.mxu2 }
 0x2bc   : > { %v3711_v18 = vclamps-f32 %v1957_v50, 1.0  ;;  %v1995_v32 = vor.u32 1.1754944e-38, %v1994_v0  ;;  %v2024_v29 = vmul.f32 %v3848_v7, %v5854_v40  ;;  %v2099_v36 = vmul.f32 %v2098_v60, %v7301_v13  ;;  %v7319_v50 = vld [vmem:[#allocation4_spill] sm:$0xff] }
 0x2bd   : > { %v2087_v27 = vadd.f32 0.05243302, %v5793_v38  ;;  %3375 = vmatmul.f32.gmra.mxu1 %v3193_v62  ;;  %v1991_v1 = vsel %vm1990_vm6, %v3846_v44, %v1987_v54  ;;  %vm1993_vm7 = vcmp.eq.f32.partialorder %v1992_v56, 8.507059e+37  ;;  %3849 = vrcp.f32 %v5873_v17 }
 0x2be   : > { %v2126_v41 = vmul.f32 %v2125_v30, %v5287_v20  ;;  %v3142_v12 = vadd.f32 1.0, %v3711_v18  ;;  %v1996_v24 = vsel %vm1993_vm7, %v1995_v32, %v1991_v1  ;;  %v2025_v22 = vsub.f32 1.0, %v2024_v29  ;;  %v7321_v32 = vld [vmem:[#allocation5_spill] sm:$0xff]  ;;  %v7322_v29 = vld [vmem:[#allocation6_spill] sm:$0xff] }
 0x2bf   : > { %v1997_v8 = vmul.f32 %v1996_v24, %v5655_v28  ;;  %v2034_v45 = vand.u32 2147483648, %v5854_v40  ;;  %v2100_v25 = vadd.f32 0.4994258, %v2099_v36  ;;  %v2138_v26 = vadd.f32 0.112945676, %v2137_v52 }
 0x2c0   : > { %v3194_v57 = vmul.f32 %v3142_v12, %v7315_v10  ;;  %v2026_v34 = vmul.f32 %v3848_v7, %v2025_v22  ;;  %vm2029_vm8 = vweird.f32 %v3848_v7  ;;  %v2032_v38 = vand.u32 2147483647, %v5854_v40  ;;  %v7323_v10 = vld [vmem:[#allocation46_spill] sm:$0xff] }
 0x2c1   : > { %v2088_v48 = vmul.f32 %v2087_v27, %v7301_v13  ;;  %v3712_v42 = vclamps-f32 %v1997_v8, 1.0  ;;  %v2101_v58 = vmul.f32 %v2100_v25, %v7301_v13  ;;  %v2139_v35 = vmul.f32 %v2138_v26, %v5287_v20  ;;  %v918_v8 = vpop.f32.mrf.mxu3 }
 0x2c2   : > { %v2012_v28 = vmul.f32 %v5781_v9, %v7316_v43  ;;  %v2050_v61 = vmul.f32 %v5784_v2, %v5232_v59  ;;  %3431 = vmatmul.f32.gmra.mxu2 %v3194_v57  ;;  %v2027_v23 = vadd.f32 %v3848_v7, %v2026_v34  ;;  %vm2028_vm9 = vweird.f32 %v5854_v40 }
 0x2c3   : > { %v3850_v44 = vpop.eup %3849  ;;  %v3143_v11 = vadd.f32 1.0, %v3712_v42  ;;  %vm2030_vm10 = vmor %vm2028_vm9, %vm2029_vm8  ;;  %v2035_v4 = vor.u32 1.1754944e-38, %v2034_v45  ;;  %v5894_v37 = vadd.f32 1.0, %v2101_v58  ;;  %v2140_v21 = vadd.f32 0.4994258, %v2139_v35  ;;  %v7324_v35 = vld [vmem:[#allocation7_spill] sm:$0xff] }
 0x2c4   : > { %v2127_v33 = vadd.f32 0.05243302, %v2126_v41  ;;  %v2031_v14 = vsel %vm2030_vm10, %v3848_v7, %v2027_v23  ;;  %vm2033_vm11 = vcmp.eq.f32.partialorder %v2032_v38, 8.507059e+37  ;;  %v2064_v47 = vmul.f32 %v3850_v44, %v5873_v17  ;;  %v7320_v7 = vld [vmem:[#allocation48_spill] sm:$0xff] }
 0x2c5   : > { %v2089_v9 = vadd.f32 0.18741608, %v2088_v48  ;;  %v3195_v16 = vmul.f32 %v3143_v11, %v7317_v31  ;;  %v2036_v59 = vsel %vm2033_vm11, %v2035_v4, %v2031_v14  ;;  %3851 = vrcp.f32 %v5894_v37  ;;  %v7325_v23 = vld [vmem:[#allocation52_spill] sm:$0xff] }
 0x2c6   : > { %v2051_v2 = vadd.f32 1.1283791, %v2050_v61  ;;  %v2037_v40 = vmul.f32 %v2036_v59, %v2012_v28  ;;  %v2065_v56 = vsub.f32 1.0, %v2064_v47  ;;  %v960_v5 = vmul.f32 0.5, %v7318_v55  ;;  %v753_v28 = vpop.f32.mrf.mxu0 }
 0x2c7   : > { %3487 = vmatmul.f32.gmra.mxu3 %v3195_v16  ;;  %v2074_v6 = vand.u32 2147483648, %v5873_v17  ;;  %v2141_v53 = vmul.f32 %v2140_v21, %v5287_v20  ;;  %vm2069_vm12 = vweird.f32 %v3850_v44  ;;  %v2072_v51 = vand.u32 2147483647, %v5873_v17 }
 0x2c8   : > { %v3713_v0 = vclamps-f32 %v2037_v40, 1.0  ;;  %v2066_v49 = vmul.f32 %v3850_v44, %v2065_v56  ;;  %v2090_v39 = vmul.f32 %v2089_v9, %v7301_v13  ;;  %v2128_v30 = vmul.f32 %v2127_v33, %v5287_v20 }
 0x2c9   : > { %v5905_v46 = vadd.f32 1.0, %v2141_v53  ;;  %v5908_v60 = vadd.f32 %v750_v15, %v7319_v50  ;;  %v2052_v63 = vmul.f32 %v2051_v2, %v7320_v7  ;;  %vm2068_vm13 = vweird.f32 %v5873_v17 }
 0x2ca   : > { %v3144_v62 = vadd.f32 1.0, %v3713_v0  ;;  %v2067_v54 = vadd.f32 %v3850_v44, %v2066_v49  ;;  %vm2070_vm14 = vmor %vm2068_vm13, %vm2069_vm12  ;;  %v2075_v18 = vor.u32 1.1754944e-38, %v2074_v6  ;;  %v5914_v13 = vadd.f32 %v806_v19, %v7321_v32 }
 0x2cb   : > { %v3852_v52 = vpop.eup %3851  ;;  %3853 = vrcp.f32 %v5905_v46  ;;  %v5917_v36 = vadd.f32 %v862_v3, %v7322_v29  ;;  %vm2073_vm15 = vcmp.eq.f32.partialorder %v2072_v51, 8.507059e+37  ;;  %v2091_v12 = vadd.f32 1.1283791, %v2090_v39 }
 0x2cc   : > { %v3196_v27 = vmul.f32 %v3144_v62, %v960_v5  ;;  %v2071_v1 = vsel %vm2070_vm14, %v3850_v44, %v2067_v54  ;;  %v2104_v41 = vmul.f32 %v3852_v52, %v5894_v37  ;;  %v2129_v24 = vadd.f32 0.18741608, %v2128_v30  ;;  %v7326_v30 = vld [vmem:[#allocation51_spill] sm:$0xff] }
 0x2cd   : > { %v2076_v22 = vsel %vm2073_vm15, %v2075_v18, %v2071_v1  ;;  %v5921_v17 = vmul.f32 0.70710677, %v5908_v60  ;;  %v2112_v26 = vand.u32 2147483647, %v5894_v37  ;;  %v961_v57 = vmul.f32 0.5, %v7323_v10  ;;  %v7327_v54 = vld [vmem:[#allocation55_spill] sm:$0xff] }
 0x2ce   : > { %3322 = vmatmul.f32.gmra.mxu0 %v3196_v27  ;;  %v2077_v45 = vmul.f32 %v2076_v22, %v2052_v63  ;;  %v2105_v25 = vsub.f32 1.0, %v2104_v41  ;;  %v2114_v34 = vand.u32 2147483648, %v5894_v37  ;;  %v5927_v38 = vmul.f32 0.70710677, %v5914_v13  ;;  %v865_v22 = vpop.f32.mrf.mxu2 }
 0x2cf   : > { %v5930_v48 = vmul.f32 0.70710677, %v5917_v36  ;;  %vm2109_vm0 = vweird.f32 %v3852_v52  ;;  %v5933_v43 = vadd.f32 %v918_v8, %v7324_v35  ;;  %v2092_v44 = vmul.f32 %v2091_v12, %v7325_v23 }
 0x2d0   : > { %v3714_v42 = vclamps-f32 %v2077_v45, 1.0  ;;  %v2106_v58 = vmul.f32 %v3852_v52, %v2105_v25  ;;  %v2130_v11 = vmul.f32 %v2129_v24, %v5287_v20  ;;  %vm2108_vm1 = vweird.f32 %v5894_v37  ;;  %v809_v24 = vpop.f32.mrf.mxu1 }
 0x2d1   : > { %v3854_v61 = vpop.eup %3853  ;;  %v2160_v4 = vmul.f32 %v5921_v17, %v5921_v17  ;;  %vm2113_vm2 = vcmp.eq.f32.partialorder %v2112_v26, 8.507059e+37  ;;  %vm2110_vm3 = vmor %vm2108_vm1, %vm2109_vm0  ;;  %v2115_v47 = vor.u32 1.1754944e-38, %v2114_v34  ;;  %v2200_v9 = vmul.f32 %v5927_v38, %v5927_v38 }
 0x2d2   : > { %v3145_v21 = vadd.f32 1.0, %v3714_v42  ;;  %v2107_v33 = vadd.f32 %v3852_v52, %v2106_v58  ;;  %v2144_v14 = vmul.f32 %v3854_v61, %v5905_v46  ;;  %v2240_v31 = vmul.f32 %v5930_v48, %v5930_v48 }
 0x2d3   : > { %v5946_v20 = vadd.f32 %v753_v28, %v7319_v50  ;;  %v5949_v2 = vmul.f32 0.70710677, %v5933_v43  ;;  %v2131_v40 = vadd.f32 1.1283791, %v2130_v11  ;;  %v2154_v15 = vand.u32 2147483648, %v5905_v46 }
 0x2d4   : > { %v3197_v37 = vmul.f32 %v3145_v21, %v961_v57  ;;  %v2111_v16 = vsel %vm2110_vm3, %v3852_v52, %v2107_v33  ;;  %v2145_v59 = vsub.f32 1.0, %v2144_v14  ;;  %v5952_v55 = vmin.f32 %v2160_v4, 16.0  ;;  %v921_v21 = vpop.f32.mrf.mxu3 }
 0x2d5   : > { %v2116_v56 = vsel %vm2113_vm2, %v2115_v47, %v2111_v16  ;;  %vm2149_vm4 = vweird.f32 %v3854_v61  ;;  %v2152_v53 = vand.u32 2147483647, %v5905_v46  ;;  %v5955_v0 = vmin.f32 %v2200_v9, 16.0 }
 0x2d6   : > { %3378 = vmatmul.f32.gmra.mxu1 %v3197_v37  ;;  %v2117_v5 = vmul.f32 %v2116_v56, %v2092_v44  ;;  %v2146_v6 = vmul.f32 %v3854_v61, %v2145_v59  ;;  %v5957_v49 = vmin.f32 %v2240_v31, 16.0  ;;  %v5960_v51 = vmul.f32 0.70710677, %v5946_v20 }
 0x2d7   : > { %vm2148_vm5 = vweird.f32 %v5905_v46  ;;  %v2280_v39 = vmul.f32 %v5949_v2, %v5949_v2  ;;  %v962_v7 = vmul.f32 0.5, %v7326_v30  ;;  %v2155_v63 = vor.u32 1.1754944e-38, %v2154_v15  ;;  %v756_v30 = vpop.f32.mrf.mxu0 }
 0x2d8   : > { %v3715_v19 = vclamps-f32 %v2117_v5, 1.0  ;;  %v2147_v3 = vadd.f32 %v3854_v61, %v2146_v6  ;;  %vm2150_vm6 = vmor %vm2148_vm5, %vm2149_vm4  ;;  %v2162_v62 = vmul.f32 2.1237322e-06, %v5952_v55  ;;  %v2132_v52 = vmul.f32 %v2131_v40, %v7327_v54 }
 0x2d9   : > { %vm2153_vm7 = vcmp.eq.f32.partialorder %v2152_v53, 8.507059e+37  ;;  %v2202_v41 = vmul.f32 2.1237322e-06, %v5955_v0  ;;  %v2242_v12 = vmul.f32 2.1237322e-06, %v5957_v49  ;;  %v2320_v46 = vmul.f32 %v5960_v51, %v5960_v51 }
 0x2da   : > { %v3146_v18 = vadd.f32 1.0, %v3715_v19  ;;  %v2151_v27 = vsel %vm2150_vm6, %v3854_v61, %v2147_v3  ;;  %v5972_v25 = vmin.f32 %v2280_v39, 16.0  ;;  %v2163_v26 = vadd.f32 0.00028619796, %v2162_v62  ;;  %v7328_v61 = vld [vmem:[#allocation54_spill] sm:$0xff] }
 0x2db   : > { %v2156_v1 = vsel %vm2153_vm7, %v2155_v63, %v2151_v27  ;;  %v5975_v57 = vadd.f32 %v809_v24, %v7321_v32  ;;  %v5978_v34 = vadd.f32 %v865_v22, %v7322_v29  ;;  %v2203_v42 = vadd.f32 0.00028619796, %v2202_v41 }
 0x2dc   : > { %v3198_v8 = vmul.f32 %v3146_v18, %v962_v7  ;;  %v2157_v45 = vmul.f32 %v2156_v1, %v2132_v52  ;;  %v2243_v58 = vadd.f32 0.00028619796, %v2242_v12  ;;  %v5980_v28 = vmin.f32 %v2320_v46, 16.0  ;;  %v812_v12 = vpop.f32.mrf.mxu1 }
 0x2dd   : > { %v963_v23 = vmul.f32 0.5, %v7328_v61  ;;  %v2282_v11 = vmul.f32 2.1237322e-06, %v5972_v25  ;;  %v2164_v4 = vmul.f32 %v2163_v26, %v5952_v55  ;;  %v5986_v14 = vmul.f32 0.70710677, %v5975_v57 }
 0x2de   : > { %3434 = vmatmul.f32.gmra.mxu2 %v3198_v8  ;;  %v3716_v10 = vclamps-f32 %v2157_v45, 1.0  ;;  %v5989_v47 = vmul.f32 0.70710677, %v5978_v34  ;;  %v2204_v9 = vmul.f32 %v2203_v42, %v5955_v0  ;;  %v2244_v31 = vmul.f32 %v2243_v58, %v5957_v49 }
 0x2df   : > { %v2322_v37 = vmul.f32 2.1237322e-06, %v5980_v28  ;;  %v2283_v16 = vadd.f32 0.00028619796, %v2282_v11  ;;  %v5995_v59 = vadd.f32 %v921_v21, %v7324_v35  ;;  %v2165_v40 = vadd.f32 0.0036580483, %v2164_v4  ;;  %v868_v11 = vpop.f32.mrf.mxu2 }
 0x2e0   : > { %v3147_v44 = vadd.f32 1.0, %v3716_v10  ;;  %v2360_v56 = vmul.f32 %v5986_v14, %v5986_v14  ;;  %v2400_v15 = vmul.f32 %v5989_v47, %v5989_v47  ;;  %v2205_v5 = vadd.f32 0.0036580483, %v2204_v9 }
 0x2e1   : > { %v2245_v6 = vadd.f32 0.0036580483, %v2244_v31  ;;  %v2323_v53 = vadd.f32 0.00028619796, %v2322_v37  ;;  %v2284_v19 = vmul.f32 %v2283_v16, %v5972_v25  ;;  %v6003_v3 = vmul.f32 0.70710677, %v5995_v59 }
 0x2e2   : > { %v3199_v33 = vmul.f32 %v3147_v44, %v963_v23  ;;  %v2166_v39 = vmul.f32 %v2165_v40, %v5952_v55  ;;  %v6006_v7 = vmin.f32 %v2360_v56, 16.0  ;;  %v6008_v63 = vmin.f32 %v2400_v15, 16.0 }
 0x2e3   : > { %v2206_v62 = vmul.f32 %v2205_v5, %v5955_v0  ;;  %v2246_v54 = vmul.f32 %v2245_v6, %v5957_v49  ;;  %v2324_v52 = vmul.f32 %v2323_v53, %v5980_v28  ;;  %v2285_v18 = vadd.f32 0.0036580483, %v2284_v19  ;;  %v924_v6 = vpop.f32.mrf.mxu3 }
 0x2e4   : > { %3490 = vmatmul.f32.gmra.mxu3 %v3199_v33  ;;  %v2440_v27 = vmul.f32 %v6003_v3, %v6003_v3  ;;  %v6016_v1 = vadd.f32 %v756_v30, %v7319_v50  ;;  %v2167_v41 = vadd.f32 0.05243302, %v2166_v39  ;;  %v2362_v46 = vmul.f32 2.1237322e-06, %v6006_v7 }
 0x2e5   : > { %v2402_v24 = vmul.f32 2.1237322e-06, %v6008_v63  ;;  %v2207_v22 = vadd.f32 0.05243302, %v2206_v62  ;;  %v2247_v8 = vadd.f32 0.05243302, %v2246_v54  ;;  %v2286_v26 = vmul.f32 %v2285_v18, %v5972_v25 }
 0x2e6   : > { %v2325_v45 = vadd.f32 0.0036580483, %v2324_v52  ;;  %v6021_v10 = vmin.f32 %v2440_v27, 16.0  ;;  %v6024_v42 = vmul.f32 0.70710677, %v6016_v1  ;;  %v6027_v58 = vadd.f32 %v812_v12, %v7321_v32 }
 0x2e7   : > { %v2168_v61 = vmul.f32 %v2167_v41, %v5952_v55  ;;  %v2363_v23 = vadd.f32 0.00028619796, %v2362_v46  ;;  %v2403_v44 = vadd.f32 0.00028619796, %v2402_v24  ;;  %v2208_v4 = vmul.f32 %v2207_v22, %v5955_v0 }
 0x2e8   : > { %7329 = vst [vmem:[#allocation10_spill] sm:$0xff] %v6021_v10  ;;  %v2248_v21 = vmul.f32 %v2247_v8, %v5957_v49  ;;  %v2326_v33 = vmul.f32 %v2325_v45, %v5980_v28  ;;  %v2287_v9 = vadd.f32 0.05243302, %v2286_v26  ;;  %v2442_v31 = vmul.f32 2.1237322e-06, %v6021_v10  ;;  %v759_v8 = vpop.f32.mrf.mxu0 }
 0x2e9   : > { %v2480_v37 = vmul.f32 %v6024_v42, %v6024_v42  ;;  %v6037_v16 = vmul.f32 0.70710677, %v6027_v58  ;;  %v2169_v40 = vadd.f32 0.18741608, %v2168_v61  ;;  %v6040_v56 = vadd.f32 %v868_v11, %v7322_v29 }
 0x2ea   : > { %v2364_v15 = vmul.f32 %v2363_v23, %v6006_v7  ;;  %v2404_v5 = vmul.f32 %v2403_v44, %v6008_v63  ;;  %v2209_v53 = vadd.f32 0.18741608, %v2208_v4  ;;  %v2249_v19 = vadd.f32 0.18741608, %v2248_v21 }
 0x2eb   : > { %v2327_v39 = vadd.f32 0.05243302, %v2326_v33  ;;  %v2288_v30 = vmul.f32 %v2287_v9, %v5972_v25  ;;  %v2443_v62 = vadd.f32 0.00028619796, %v2442_v31  ;;  %v6045_v54 = vmin.f32 %v2480_v37, 16.0 }
 0x2ec   : > { %v2520_v52 = vmul.f32 %v6037_v16, %v6037_v16  ;;  %v2170_v18 = vmul.f32 %v2169_v40, %v5952_v55  ;;  %v6051_v27 = vmul.f32 0.70710677, %v6040_v56  ;;  %v6054_v41 = vadd.f32 %v924_v6, %v7324_v35 }
 0x2ed   : > { %v6057_v12 = vmul.f32 0.5, %v5908_v60  ;;  %v6060_v46 = vmul.f32 0.5, %v5914_v13  ;;  %v2365_v24 = vadd.f32 0.0036580483, %v2364_v15  ;;  %v2405_v22 = vadd.f32 0.0036580483, %v2404_v5  ;;  %v815_v15 = vpop.f32.mrf.mxu1 }
 0x2ee   : > { %v2210_v45 = vmul.f32 %v2209_v53, %v5955_v0  ;;  %v6064_v26 = vmul.f32 0.5, %v5917_v36  ;;  %v2250_v61 = vmul.f32 %v2249_v19, %v5957_v49  ;;  %v2328_v23 = vmul.f32 %v2327_v39, %v5980_v28 }
 0x2ef   : > { %7330 = vst [vmem:[#allocation14_spill] sm:$0xff] %v6057_v12  ;;  %v2289_v44 = vadd.f32 0.18741608, %v2288_v30  ;;  %v2444_v11 = vmul.f32 %v2443_v62, %v6021_v10  ;;  %v2482_v60 = vmul.f32 2.1237322e-06, %v6045_v54  ;;  %v6070_v4 = vmin.f32 %v2520_v52, 16.0  ;;  %v871_v62 = vpop.f32.mrf.mxu2 }
 0x2f0   : > { %7331 = vst [vmem:[#allocation17_spill] sm:$0xff] %v6060_v46  ;;  %v2171_v13 = vadd.f32 1.1283791, %v2170_v18  ;;  %v6073_v21 = vmul.f32 0.5, %v5933_v43  ;;  %v2560_v33 = vmul.f32 %v6051_v27, %v6051_v27  ;;  %v6078_v36 = vmul.f32 0.70710677, %v6054_v41 }
 0x2f1   : > { %7332 = vst [vmem:[#allocation12_spill] sm:$0xff] %v6064_v26  ;;  %v6081_v9 = vmul.f32 0.5, %v5946_v20  ;;  %v6084_v31 = vmul.f32 0.5, %v5975_v57  ;;  %v2366_v37 = vmul.f32 %v2365_v24, %v6006_v7  ;;  %v2406_v40 = vmul.f32 %v2405_v22, %v6008_v63 }
 0x2f2   : > { %7333 = vst [vmem:[#allocation20_spill] sm:$0xff] %v6070_v4  ;;  %v2211_v5 = vadd.f32 1.1283791, %v2210_v45  ;;  %v2251_v43 = vadd.f32 1.1283791, %v2250_v61  ;;  %v2290_v53 = vmul.f32 %v2289_v44, %v5972_v25  ;;  %v6091_v20 = vmul.f32 %v2171_v13, %v5921_v17 }
 0x2f3   : > { %7334 = vst [vmem:[#allocation26_spill] sm:$0xff] %v6073_v21  ;;  %v2329_v6 = vadd.f32 0.18741608, %v2328_v23  ;;  %v2445_v19 = vadd.f32 0.0036580483, %v2444_v11  ;;  %v6094_v57 = vmul.f32 0.5, %v5978_v34  ;;  %v2600_v18 = vmul.f32 %v6078_v36, %v6078_v36 }
 0x2f4   : > { %7335 = vst [vmem:[#allocation13_spill] sm:$0xff] %v6081_v9  ;;  %v2483_v39 = vadd.f32 0.00028619796, %v2482_v60  ;;  %v2522_v30 = vmul.f32 2.1237322e-06, %v6070_v4  ;;  %v6096_v52 = vmin.f32 %v2560_v33, 16.0  ;;  %v6104_v61 = vadd.f32 %v759_v8, %v7319_v50  ;;  %v927_v33 = vpop.f32.mrf.mxu3  ;;  %v762_v8 = vpop.f32.mrf.mxu0 }
 0x2f5   : > { %7336 = vst [vmem:[#allocation21_spill] sm:$0xff] %v6084_v31  ;;  %v2367_v24 = vadd.f32 0.05243302, %v2366_v37  ;;  %v2407_v22 = vadd.f32 0.05243302, %v2406_v40  ;;  %v6101_v45 = vmul.f32 0.5, %v5995_v59  ;;  %v6107_v23 = vmul.f32 %v2211_v5, %v5927_v38 }
 0x2f6   : > { %7337 = vst [vmem:[#allocation28_spill] sm:$0xff] %v6091_v20  ;;  %v6110_v17 = vmul.f32 %v2251_v43, %v5930_v48  ;;  %v2330_v34 = vmul.f32 %v2329_v6, %v5980_v28  ;;  %v6114_v44 = vadd.f32 %v815_v15, %v7321_v32  ;;  %v2291_v11 = vadd.f32 1.1283791, %v2290_v53 }
 0x2f7   : > { %7338 = vst [vmem:[#allocation16_spill] sm:$0xff] %v6094_v57  ;;  %v2446_v60 = vmul.f32 %v2445_v19, %v6021_v10  ;;  %v2484_v59 = vmul.f32 %v2483_v39, %v6045_v54  ;;  %v2523_v13 = vadd.f32 0.00028619796, %v2522_v30  ;;  %v6119_v37 = vmul.f32 0.5, %v6016_v1 }
 0x2f8   : > { %7339 = vst [vmem:[#allocation18_spill] sm:$0xff] %v6096_v52  ;;  %v6122_v38 = vmul.f32 0.5, %v6027_v58  ;;  %v2562_v48 = vmul.f32 2.1237322e-06, %v6096_v52  ;;  %v6125_v40 = vmin.f32 %v2600_v18, 16.0  ;;  %v2368_v15 = vmul.f32 %v2367_v24, %v6006_v7 }
 0x2f9   : > { %7340 = vst [vmem:[#allocation29_spill] sm:$0xff] %v6101_v45  ;;  %v2408_v5 = vmul.f32 %v2407_v22, %v6008_v63  ;;  %v6130_v43 = vmul.f32 0.70710677, %v6104_v61  ;;  %v6133_v6 = vadd.f32 %v871_v62, %v7322_v29  ;;  %v2331_v53 = vadd.f32 1.1283791, %v2330_v34  ;;  %v818_v22 = vpop.f32.mrf.mxu1 }
 0x2fa   : > { %7341 = vst [vmem:[#allocation22_spill] sm:$0xff] %v6107_v23  ;;  %v6136_v1 = vmul.f32 0.70710677, %v6114_v44  ;;  %v6139_v58 = vadd.f32 %v927_v33, %v7324_v35  ;;  %v6142_v19 = vadd.f32 %v762_v8, %v7319_v50  ;;  %v2447_v39 = vadd.f32 0.05243302, %v2446_v60 }
 0x2fb   : > { %7342 = vst [vmem:[#allocation19_spill] sm:$0xff] %v6110_v17  ;;  %v2485_v30 = vadd.f32 0.0036580483, %v2484_v59  ;;  %v2524_v18 = vmul.f32 %v2523_v13, %v6070_v4  ;;  %v6146_v24 = vmul.f32 0.5, %v6040_v56  ;;  %v6149_v62 = vmul.f32 %v2291_v11, %v5949_v2  ;;  %v874_v56 = vpop.f32.mrf.mxu2 }
 0x2fc   : > { %7343 = vst [vmem:[#allocation32_spill] sm:$0xff] %v6119_v37  ;;  %v2563_v34 = vadd.f32 0.00028619796, %v2562_v48  ;;  %v6153_v33 = vmul.f32 0.70710677, %v6142_v19  ;;  %v2640_v60 = vmul.f32 %v6130_v43, %v6130_v43  ;;  %v2680_v13 = vmul.f32 %v6136_v1, %v6136_v1 }
 0x2fd   : > { %7344 = vst [vmem:[#allocation24_spill] sm:$0xff] %v6122_v38  ;;  %v2602_v38 = vmul.f32 2.1237322e-06, %v6125_v40  ;;  %v2369_v37 = vadd.f32 0.18741608, %v2368_v15  ;;  %v6168_v48 = vadd.f32 %v818_v22, %v7321_v32  ;;  %v6171_v15 = vmul.f32 %v2331_v53, %v5960_v51 }
 0x2fe   : > { %7345 = vst [vmem:[#allocation34_spill] sm:$0xff] %v6139_v58  ;;  %v2409_v8 = vadd.f32 0.18741608, %v2408_v5  ;;  %v6158_v59 = vmul.f32 0.70710677, %v6133_v6  ;;  %v2800_v11 = vmul.f32 %v6153_v33, %v6153_v33  ;;  %v2448_v5 = vmul.f32 %v2447_v39, %v6021_v10 }
 0x2ff   : > { %7346 = vst [vmem:[#allocation36_spill] sm:$0xff] %v6146_v24  ;;  %v6163_v2 = vmul.f32 0.70710677, %v6139_v58  ;;  %v2486_v24 = vmul.f32 %v2485_v30, %v6045_v54  ;;  %v2525_v45 = vadd.f32 0.0036580483, %v2524_v18  ;;  %v2564_v57 = vmul.f32 %v2563_v34, %v6096_v52 }
 0x300   : > { %7347 = vst [vmem:[#allocation37_spill] sm:$0xff] %v6149_v62  ;;  %v2603_v31 = vadd.f32 0.00028619796, %v2602_v38  ;;  %v6176_v9 = vmin.f32 %v2800_v11, 16.0  ;;  %v6179_v58 = vadd.f32 %v874_v56, %v7322_v29  ;;  %v6182_v21 = vmul.f32 0.5, %v6054_v41 }
 0x301   : > { %7348 = vst [vmem:[#allocation15_spill] sm:$0xff] %v6171_v15  ;;  %v6184_v22 = vmin.f32 %v2640_v60, 16.0  ;;  %v2720_v51 = vmul.f32 %v6158_v59, %v6158_v59  ;;  %v6189_v53 = vmul.f32 0.70710677, %v6168_v48  ;;  %v2370_v39 = vmul.f32 %v2369_v37, %v6006_v7 }
 0x302   : > { %7349 = vst [vmem:[#allocation39_spill] sm:$0xff] %v6179_v58  ;;  %v2410_v38 = vmul.f32 %v2409_v8, %v6008_v63  ;;  %v6193_v30 = vmin.f32 %v2680_v13, 16.0  ;;  %v2760_v18 = vmul.f32 %v6163_v2, %v6163_v2  ;;  %v2449_v34 = vadd.f32 0.18741608, %v2448_v5 }
 0x303   : > { %7350 = vst [vmem:[#allocation25_spill] sm:$0xff] %v6182_v21  ;;  %v2487_v41 = vadd.f32 0.05243302, %v2486_v24  ;;  %v2813_v60 = vmul.f32 3.8918573e-05, %v6176_v9  ;;  %v2840_v56 = vmul.f32 %v6189_v53, %v6189_v53  ;;  %v2526_v11 = vmul.f32 %v2525_v45, %v6070_v4 }
 0x304   : > { %7351 = vst [vmem:[#allocation27_spill] sm:$0xff] %v6193_v30  ;;  %v2565_v21 = vadd.f32 0.0036580483, %v2564_v57  ;;  %v2604_v15 = vmul.f32 %v2603_v31, %v6125_v40  ;;  %v6203_v37 = vmul.f32 0.70710677, %v6179_v58  ;;  %v6206_v13 = vmin.f32 %v2720_v51, 16.0 }
 0x305   : > { %v2642_v8 = vmul.f32 2.1237322e-06, %v6184_v22  ;;  %v2814_v62 = vadd.f32 0.001143296, %v2813_v60  ;;  %v6208_v5 = vmin.f32 %v2840_v56, 16.0  ;;  %v6211_v17 = vmin.f32 %v2760_v18, 16.0 }
 0x306   : > { %7352 = vst [vmem:[#allocation30_spill] sm:$0xff] %v6206_v13  ;;  %v2371_v24 = vadd.f32 1.1283791, %v2370_v39  ;;  %v2682_v26 = vmul.f32 2.1237322e-06, %v6193_v30  ;;  %v2880_v57 = vmul.f32 %v6203_v37, %v6203_v37  ;;  %v6216_v31 = vmul.f32 0.5, %v6104_v61 }
 0x307   : > { %v2411_v45 = vadd.f32 1.1283791, %v2410_v38  ;;  %v2815_v58 = vmul.f32 %v2814_v62, %v6176_v9  ;;  %v2853_v51 = vmul.f32 3.8918573e-05, %v6208_v5  ;;  %v2450_v60 = vmul.f32 %v2449_v34, %v6021_v10 }
 0x308   : > { %7353 = vst [vmem:[#allocation44_spill] sm:$0xff] %v6216_v31  ;;  %v2488_v56 = vmul.f32 %v2487_v41, %v6045_v54  ;;  %v2527_v39 = vadd.f32 0.05243302, %v2526_v11  ;;  %v6222_v46 = vmin.f32 %v2880_v57, 16.0  ;;  %v2566_v18 = vmul.f32 %v2565_v21, %v6096_v52 }
 0x309   : > { %v2605_v23 = vadd.f32 0.0036580483, %v2604_v15  ;;  %v2643_v12 = vadd.f32 0.00028619796, %v2642_v8  ;;  %v2722_v38 = vmul.f32 2.1237322e-06, %v6206_v13  ;;  %v6227_v61 = vmul.f32 %v2371_v24, %v5986_v14 }
 0x30a   : > { %v2683_v31 = vadd.f32 0.00028619796, %v2682_v26  ;;  %v2762_v62 = vmul.f32 2.1237322e-06, %v6211_v17  ;;  %v2854_v20 = vadd.f32 0.001143296, %v2853_v51  ;;  %v6231_v34 = vmul.f32 %v2411_v45, %v5989_v47  ;;  %v930_v26 = vpop.f32.mrf.mxu3 }
 0x30b   : > { %7354 = vst [vmem:[#allocation31_spill] sm:$0xff] %v6227_v61  ;;  %v6234_v41 = vmul.f32 0.5, %v6114_v44  ;;  %v2816_v11 = vadd.f32 0.014752088, %v2815_v58  ;;  %v2893_v21 = vmul.f32 3.8918573e-05, %v6222_v46  ;;  %v2528_v8 = vmul.f32 %v2527_v39, %v6070_v4 }
 0x30c   : > { %7355 = vst [vmem:[#allocation33_spill] sm:$0xff] %v6231_v34  ;;  %v2451_v15 = vadd.f32 1.1283791, %v2450_v60  ;;  %v2802_v57 = vmul.f32 2.1237322e-06, %v6176_v9  ;;  %v2855_v14 = vmul.f32 %v2854_v20, %v6208_v5  ;;  %v2606_v51 = vmul.f32 %v2605_v23, %v6125_v40 }
 0x30d   : > { %7356 = vst [vmem:[#allocation35_spill] sm:$0xff] %v6234_v41  ;;  %v2489_v24 = vadd.f32 0.18741608, %v2488_v56  ;;  %v2567_v61 = vadd.f32 0.05243302, %v2566_v18  ;;  %v2644_v45 = vmul.f32 %v2643_v12, %v6184_v22  ;;  %v2684_v44 = vmul.f32 %v2683_v31, %v6193_v30 }
 0x30e   : > { %v2723_v47 = vadd.f32 0.00028619796, %v2722_v38  ;;  %v2763_v58 = vadd.f32 0.00028619796, %v2762_v62  ;;  %v2856_v41 = vadd.f32 0.014752088, %v2855_v14  ;;  %v2817_v39 = vmul.f32 %v2816_v11, %v6176_v9 }
 0x30f   : > { %v6244_v60 = vmul.f32 0.5, %v6133_v6  ;;  %v2894_v34 = vadd.f32 0.001143296, %v2893_v21  ;;  %v6248_v20 = vadd.f32 %v930_v26, %v7324_v35  ;;  %v2529_v56 = vadd.f32 0.18741608, %v2528_v8  ;;  %v765_v8 = vpop.f32.mrf.mxu0 }
 0x310   : > { %v2803_v18 = vadd.f32 0.00028619796, %v2802_v57  ;;  %v2842_v23 = vmul.f32 2.1237322e-06, %v6208_v5  ;;  %v2857_v38 = vmul.f32 %v2856_v41, %v6208_v5  ;;  %v6253_v12 = vmul.f32 %v2451_v15, %v6003_v3 }
 0x311   : > { %7357 = vst [vmem:[#allocation38_spill] sm:$0xff] %v6244_v60  ;;  %v2568_v31 = vmul.f32 %v2567_v61, %v6096_v52  ;;  %v2724_v6 = vmul.f32 %v2723_v47, %v6206_v13  ;;  %v2895_v62 = vmul.f32 %v2894_v34, %v6222_v46  ;;  %v2607_v11 = vadd.f32 0.05243302, %v2606_v51 }
 0x312   : > { %7358 = vst [vmem:[#allocation40_spill] sm:$0xff] %v6248_v20  ;;  %v2645_v21 = vadd.f32 0.0036580483, %v2644_v45  ;;  %v2685_v14 = vadd.f32 0.0036580483, %v2684_v44  ;;  %v2764_v26 = vmul.f32 %v2763_v58, %v6211_v17  ;;  %v2490_v57 = vmul.f32 %v2489_v24, %v6045_v54 }
 0x313   : > { %7359 = vst [vmem:[#allocation41_spill] sm:$0xff] %v6253_v12  ;;  %v2818_v60 = vadd.f32 0.112945676, %v2817_v39  ;;  %v2896_v10 = vadd.f32 0.014752088, %v2895_v62  ;;  %v2530_v3 = vmul.f32 %v2529_v56, %v6070_v4  ;;  %v2804_v61 = vmul.f32 %v2803_v18, %v6176_v9 }
 0x314   : > { %v6261_v41 = vmul.f32 0.70710677, %v6248_v20  ;;  %v2843_v15 = vadd.f32 0.00028619796, %v2842_v23  ;;  %v2858_v47 = vadd.f32 0.112945676, %v2857_v38  ;;  %v6269_v44 = vadd.f32 %v765_v8, %v7319_v50 }
 0x315   : > { %v2725_v34 = vadd.f32 0.0036580483, %v2724_v6  ;;  %v2897_v51 = vmul.f32 %v2896_v10, %v6222_v46  ;;  %v2569_v24 = vadd.f32 0.18741608, %v2568_v31  ;;  %v2646_v58 = vmul.f32 %v2645_v21, %v6184_v22 }
 0x316   : > { %v2920_v45 = vmul.f32 %v6261_v41, %v6261_v41  ;;  %v2686_v39 = vmul.f32 %v2685_v14, %v6193_v30  ;;  %v2765_v62 = vadd.f32 0.0036580483, %v2764_v26  ;;  %v2491_v56 = vadd.f32 1.1283791, %v2490_v57 }
 0x317   : > { %v2608_v18 = vmul.f32 %v2607_v11, %v6125_v40  ;;  %v2819_v23 = vmul.f32 %v2818_v60, %v6176_v9  ;;  %v2882_v38 = vmul.f32 2.1237322e-06, %v6222_v46  ;;  %v2531_v10 = vadd.f32 1.1283791, %v2530_v3 }
 0x318   : > { %v2805_v6 = vadd.f32 0.0036580483, %v2804_v61  ;;  %v2844_v20 = vmul.f32 %v2843_v15, %v6208_v5  ;;  %v2859_v50 = vmul.f32 %v2858_v47, %v6208_v5  ;;  %v2726_v31 = vmul.f32 %v2725_v34, %v6206_v13 }
 0x319   : > { %v2898_v8 = vadd.f32 0.112945676, %v2897_v51  ;;  %v6279_v21 = vmin.f32 %v2920_v45, 16.0  ;;  %v6282_v14 = vmul.f32 0.70710677, %v6269_v44  ;;  %v2570_v11 = vmul.f32 %v2569_v24, %v6096_v52 }
 0x31a   : > { %v2647_v26 = vadd.f32 0.05243302, %v2646_v58  ;;  %v2687_v60 = vadd.f32 0.05243302, %v2686_v39  ;;  %v2766_v57 = vmul.f32 %v2765_v62, %v6211_v17  ;;  %v2820_v3 = vadd.f32 0.4994258, %v2819_v23 }
 0x31b   : > { %v2883_v61 = vadd.f32 0.00028619796, %v2882_v38  ;;  %v2933_v15 = vmul.f32 3.8918573e-05, %v6279_v21  ;;  %v2960_v47 = vmul.f32 %v6282_v14, %v6282_v14  ;;  %v6290_v34 = vmul.f32 %v2491_v56, %v6024_v42  ;;  %v821_v42 = vpop.f32.mrf.mxu1 }
 0x31c   : > { %v2806_v51 = vmul.f32 %v2805_v6, %v6176_v9  ;;  %v2845_v45 = vadd.f32 0.0036580483, %v2844_v20  ;;  %v2860_v12 = vadd.f32 0.4994258, %v2859_v50  ;;  %v2609_v4 = vadd.f32 0.18741608, %v2608_v18 }
 0x31d   : > { %7360 = vst [vmem:[#allocation56_spill] sm:$0xff] %v6290_v34  ;;  %v2727_v24 = vadd.f32 0.05243302, %v2726_v31  ;;  %v2899_v58 = vmul.f32 %v2898_v8, %v6222_v46  ;;  %v6294_v39 = vmin.f32 %v2960_v47, 16.0  ;;  %v6297_v62 = vmul.f32 %v2531_v10, %v6037_v16 }
 0x31e   : > { %v2648_v23 = vmul.f32 %v2647_v26, %v6184_v22  ;;  %v2688_v38 = vmul.f32 %v2687_v60, %v6193_v30  ;;  %v2767_v52 = vadd.f32 0.05243302, %v2766_v57  ;;  %v2571_v56 = vadd.f32 1.1283791, %v2570_v11 }
 0x31f   : > { %7361 = vst [vmem:[#allocation47_spill] sm:$0xff] %v6297_v62  ;;  %v2821_v6 = vmul.f32 %v2820_v3, %v6176_v9  ;;  %v2884_v20 = vmul.f32 %v2883_v61, %v6222_v46  ;;  %v2934_v18 = vadd.f32 0.001143296, %v2933_v15  ;;  %v2807_v50 = vadd.f32 0.05243302, %v2806_v51 }
 0x320   : > { %v2846_v31 = vmul.f32 %v2845_v45, %v6208_v5  ;;  %v2861_v8 = vmul.f32 %v2860_v12, %v6208_v5  ;;  %v2973_v16 = vmul.f32 3.8918573e-05, %v6294_v39  ;;  %v2610_v10 = vmul.f32 %v2609_v4, %v6125_v40 }
 0x321   : > { %v2728_v26 = vmul.f32 %v2727_v24, %v6206_v13  ;;  %v2900_v60 = vadd.f32 0.4994258, %v2899_v58  ;;  %v6309_v57 = vadd.f32 %v821_v42, %v7321_v32  ;;  %v2649_v11 = vadd.f32 0.18741608, %v2648_v23 }
 0x322   : > { %v2689_v3 = vadd.f32 0.18741608, %v2688_v38  ;;  %v2768_v61 = vmul.f32 %v2767_v52, %v6211_v17  ;;  %v2974_v15 = vadd.f32 0.001143296, %v2973_v16  ;;  %v6312_v47 = vadd.f32 1.0, %v2821_v6 }
 0x323   : > { %v2885_v51 = vadd.f32 0.0036580483, %v2884_v20  ;;  %v2922_v12 = vmul.f32 2.1237322e-06, %v6279_v21  ;;  %v2935_v45 = vmul.f32 %v2934_v18, %v6279_v21  ;;  %v6317_v4 = vmul.f32 0.5, %v6142_v19 }
 0x324   : > { %v2808_v24 = vmul.f32 %v2807_v50, %v6176_v9  ;;  %v2847_v58 = vadd.f32 0.05243302, %v2846_v31  ;;  %v6320_v32 = vadd.f32 1.0, %v2861_v8  ;;  %v2729_v23 = vadd.f32 0.18741608, %v2728_v26 }
 0x325   : > { %7362 = vst [vmem:[#allocation62_spill] sm:$0xff] %v6317_v4  ;;  %v2901_v38 = vmul.f32 %v2900_v60, %v6222_v46  ;;  %v2975_v52 = vmul.f32 %v2974_v15, %v6294_v39  ;;  %v6325_v42 = vmul.f32 0.70710677, %v6309_v57  ;;  %v2650_v6 = vmul.f32 %v2649_v11, %v6184_v22 }
 0x326   : > { %v2690_v20 = vmul.f32 %v2689_v3, %v6193_v30  ;;  %v2769_v18 = vadd.f32 0.18741608, %v2768_v61  ;;  %v2962_v19 = vmul.f32 2.1237322e-06, %v6294_v39  ;;  %3855 = vrcp.f32 %v6312_v47 }
 0x327   : > { %v2886_v50 = vmul.f32 %v2885_v51, %v6222_v46  ;;  %v2923_v31 = vadd.f32 0.00028619796, %v2922_v12  ;;  %v2936_v8 = vadd.f32 0.014752088, %v2935_v45  ;;  %v2809_v16 = vadd.f32 0.18741608, %v2808_v24 }
 0x328   : > { %v2848_v26 = vmul.f32 %v2847_v58, %v6208_v5  ;;  %3857 = vrcp.f32 %v6320_v32  ;;  %v2976_v60 = vadd.f32 0.014752088, %v2975_v52  ;;  %v2611_v15 = vadd.f32 1.1283791, %v2610_v10 }
 0x329   : > { %v2730_v11 = vmul.f32 %v2729_v23, %v6206_v13  ;;  %v6335_v4 = vadd.f32 1.0, %v2901_v38  ;;  %v3000_v3 = vmul.f32 %v6325_v42, %v6325_v42  ;;  %v6340_v61 = vmul.f32 %v2571_v56, %v6051_v27  ;;  %v877_v23 = vpop.f32.mrf.mxu2 }
 0x32a   : > { %v2770_v51 = vmul.f32 %v2769_v18, %v6211_v17  ;;  %v2963_v12 = vadd.f32 0.00028619796, %v2962_v19  ;;  %v2977_v45 = vmul.f32 %v2976_v60, %v6294_v39  ;;  %v2651_v24 = vadd.f32 1.1283791, %v2650_v6 }
 0x32b   : > { %v2887_v58 = vadd.f32 0.05243302, %v2886_v50  ;;  %v2924_v52 = vmul.f32 %v2923_v31, %v6279_v21  ;;  %v2937_v10 = vmul.f32 %v2936_v8, %v6279_v21  ;;  %v2691_v38 = vadd.f32 1.1283791, %v2690_v20 }
 0x32c   : > { %v2810_v62 = vmul.f32 %v2809_v16, %v6176_v9  ;;  %v2849_v34 = vadd.f32 0.18741608, %v2848_v26  ;;  %v2978_v13 = vadd.f32 0.112945676, %v2977_v45  ;;  %v6347_v30 = vpop.eup %3855  ;;  %v6350_v27 = vmul.f32 %v2611_v15, %v6078_v36 }
 0x32d   : > { %v2731_v56 = vadd.f32 1.1283791, %v2730_v11  ;;  %3859 = vrcp.f32 %v6335_v4  ;;  %v6353_v6 = vmin.f32 %v3000_v3, 16.0  ;;  %v2771_v19 = vadd.f32 1.1283791, %v2770_v51 }
 0x32e   : > { %v6355_v18 = vpop.eup %3857  ;;  %v6358_v50 = vmul.f32 0.5, %v6168_v48  ;;  %v2964_v9 = vmul.f32 %v2963_v12, %v6294_v39  ;;  %v6362_v20 = vadd.f32 %v877_v23, %v7322_v29  ;;  %v2888_v31 = vmul.f32 %v2887_v58, %v6222_v46 }
 0x32f   : > { %v2925_v36 = vadd.f32 0.0036580483, %v2924_v52  ;;  %v2938_v8 = vadd.f32 0.112945676, %v2937_v10  ;;  %v2979_v16 = vmul.f32 %v2978_v13, %v6294_v39  ;;  %v6367_v26 = vmul.f32 %v2651_v24, %v6130_v43 }
 0x330   : > { %7363 = vst [vmem:[#allocation42_spill] sm:$0xff] %v6362_v20  ;;  %v6370_v60 = vmul.f32 %v2691_v38, %v6136_v1  ;;  %v2811_v15 = vadd.f32 1.1283791, %v2810_v62  ;;  %v2850_v48 = vmul.f32 %v2849_v34, %v6208_v5  ;;  %v6374_v11 = vmul.f32 %v2731_v56, %v6158_v59 }
 0x331   : > { %v2824_v29 = vmul.f32 %v6347_v30, %v6312_v47  ;;  %v2864_v3 = vmul.f32 %v6355_v18, %v6320_v32  ;;  %v3013_v13 = vmul.f32 3.8918573e-05, %v6353_v6  ;;  %v6382_v43 = vmul.f32 %v2771_v19, %v6163_v2 }
 0x332   : > { %v2834_v1 = vand.u32 2147483648, %v6312_v47  ;;  %v2965_v51 = vadd.f32 0.0036580483, %v2964_v9  ;;  %v6386_v62 = vmul.f32 0.70710677, %v6362_v20  ;;  %v2926_v34 = vmul.f32 %v2925_v36, %v6279_v21 }
 0x333   : > { %7364 = vst [vmem:[#allocation11_spill] sm:$0xff] %v6382_v43  ;;  %v6388_v5 = vpop.eup %3859  ;;  %v2889_v59 = vadd.f32 0.18741608, %v2888_v31  ;;  %v2939_v12 = vmul.f32 %v2938_v8, %v6279_v21  ;;  %v2980_v45 = vadd.f32 0.4994258, %v2979_v16  ;;  %v6393_v24 = vmul.f32 %v2811_v15, %v6153_v33 }
 0x334   : > { %v2851_v58 = vadd.f32 1.1283791, %v2850_v48  ;;  %v6396_v2 = vmul.f32 0.5, %v6269_v44  ;;  %v3002_v52 = vmul.f32 2.1237322e-06, %v6353_v6  ;;  %v2825_v10 = vsub.f32 1.0, %v2824_v29 }
 0x335   : > { %v2832_v23 = vand.u32 2147483647, %v6312_v47  ;;  %v2865_v38 = vsub.f32 1.0, %v2864_v3  ;;  %v3014_v56 = vadd.f32 0.001143296, %v3013_v13  ;;  %vm2828_vm8 = vweird.f32 %v6312_v47 }
 0x336   : > { %7365 = vst [vmem:[#allocation57_spill] sm:$0xff] %v6396_v2  ;;  %v2835_v19 = vor.u32 1.1754944e-38, %v2834_v1  ;;  %v2904_v9 = vmul.f32 %v6388_v5, %v6335_v4  ;;  %v2966_v33 = vmul.f32 %v2965_v51, %v6294_v39  ;;  %v3040_v31 = vmul.f32 %v6386_v62, %v6386_v62 }
 0x337   : > { %v2890_v44 = vmul.f32 %v2889_v59, %v6222_v46  ;;  %v2927_v36 = vadd.f32 0.05243302, %v2926_v34  ;;  %v2940_v8 = vadd.f32 0.4994258, %v2939_v12  ;;  %v2981_v16 = vmul.f32 %v2980_v45, %v6294_v39 }
 0x338   : > { %v6409_v15 = vmul.f32 %v2851_v58, %v6189_v53  ;;  %v2872_v48 = vand.u32 2147483647, %v6320_v32  ;;  %v6413_v29 = vmul.f32 0.5, %v6309_v57  ;;  %v3003_v3 = vadd.f32 0.00028619796, %v3002_v52 }
 0x339   : > { %v2826_v13 = vmul.f32 %v6347_v30, %v2825_v10  ;;  %v2866_v1 = vmul.f32 %v6355_v18, %v2865_v38  ;;  %vm2868_vm9 = vweird.f32 %v6320_v32  ;;  %v3015_v46 = vmul.f32 %v3014_v56, %v6353_v6 }
 0x33a   : > { %7366 = vst [vmem:[#allocation63_spill] sm:$0xff] %v6413_v29  ;;  %v2874_v51 = vand.u32 2147483648, %v6320_v32  ;;  %v2905_v59 = vsub.f32 1.0, %v2904_v9  ;;  %v2967_v34 = vadd.f32 0.05243302, %v2966_v33  ;;  %v6420_v53 = vmin.f32 %v3040_v31, 16.0 }
 0x33b   : > { %vm6422_vm10 = vcmp.eq.f32.partialorder %v2832_v23, 8.507059e+37  ;;  %v2891_v57 = vadd.f32 1.1283791, %v2890_v44  ;;  %v2928_v45 = vmul.f32 %v2927_v36, %v6279_v21  ;;  %v2941_v58 = vmul.f32 %v2940_v8, %v6279_v21 }
 0x33c   : > { %v6428_v52 = vadd.f32 1.0, %v2981_v16  ;;  %vm2829_vm11 = vweird.f32 %v6347_v30  ;;  %vm6431_vm12 = vcmp.eq.f32.partialorder %v2872_v48, 8.507059e+37  ;;  %v3004_v38 = vmul.f32 %v3003_v3, %v6353_v6 }
 0x33d   : > { %v2173_v23 = vmul.f32 3.8918573e-05, %v5952_v55  ;;  %v2827_v56 = vadd.f32 %v6347_v30, %v2826_v13  ;;  %v2867_v9 = vadd.f32 %v6355_v18, %v2866_v1  ;;  %vm2869_vm13 = vweird.f32 %v6355_v18  ;;  %vm6446_vm14 = vmor %vm2828_vm8, %vm2829_vm11 }
 0x33e   : > { %v3016_v33 = vadd.f32 0.014752088, %v3015_v46  ;;  %v2906_v31 = vmul.f32 %v6388_v5, %v2905_v59  ;;  %v2968_v44 = vmul.f32 %v2967_v34, %v6294_v39  ;;  %v3042_v36 = vmul.f32 2.1237322e-06, %v6420_v53  ;;  %vm6455_vm15 = vmor %vm2868_vm9, %vm2869_vm13  ;;  %v933_v59 = vpop.f32.mrf.mxu3 }
 0x33f   : > { %v3053_v8 = vmul.f32 3.8918573e-05, %v6420_v53  ;;  %v2875_v48 = vor.u32 1.1754944e-38, %v2874_v51  ;;  %v2929_v3 = vadd.f32 0.18741608, %v2928_v45  ;;  %v6450_v13 = vadd.f32 1.0, %v2941_v58 }
 0x340   : > { %3861 = vrcp.f32 %v6428_v52  ;;  %vm2908_vm0 = vweird.f32 %v6335_v4  ;;  %v2912_v47 = vand.u32 2147483647, %v6335_v4  ;;  %v3005_v46 = vadd.f32 0.0036580483, %v3004_v38 }
 0x341   : > { %v2174_v34 = vadd.f32 0.001143296, %v2173_v23  ;;  %v2831_v51 = vsel %vm6446_vm14, %v6347_v30, %v2827_v56  ;;  %v2871_v45 = vsel %vm6455_vm15, %v6355_v18, %v2867_v9  ;;  %vm2909_vm1 = vweird.f32 %v6388_v5 }
 0x342   : > { %v3017_v32 = vmul.f32 %v3016_v33, %v6353_v6  ;;  %v2907_v58 = vadd.f32 %v6388_v5, %v2906_v31  ;;  %v2969_v20 = vadd.f32 0.18741608, %v2968_v44  ;;  %v3043_v43 = vadd.f32 0.00028619796, %v3042_v36  ;;  %vm6490_vm2 = vmor %vm2908_vm0, %vm2909_vm1 }
 0x343   : > { %v3054_v29 = vadd.f32 0.001143296, %v3053_v8  ;;  %v2914_v38 = vand.u32 2147483648, %v6335_v4  ;;  %v2930_v23 = vmul.f32 %v2929_v3, %v6279_v21  ;;  %3863 = vrcp.f32 %v6450_v13 }
 0x344   : > { %v6474_v30 = vadd.f32 %v933_v59, %v7324_v35  ;;  %v2836_v18 = vsel %vm6422_vm10, %v2835_v19, %v2831_v51  ;;  %v3006_v56 = vmul.f32 %v3005_v46, %v6353_v6  ;;  %v2175_v9 = vmul.f32 %v2174_v34, %v5952_v55 }
 0x345   : > { %v2213_v33 = vmul.f32 3.8918573e-05, %v5955_v0  ;;  %v2876_v44 = vsel %vm6431_vm12, %v2875_v48, %v2871_v45  ;;  %v2892_v21 = vmul.f32 %v2891_v57, %v6203_v37  ;;  %vm6494_vm3 = vcmp.eq.f32.partialorder %v2912_v47, 8.507059e+37 }
 0x346   : > { %7375 = vst [vmem:[#allocation23_spill] sm:$0xff] %v6474_v30  ;;  %v6481_v31 = vpop.eup %3861  ;;  %v3018_v12 = vadd.f32 0.112945676, %v3017_v32  ;;  %v2911_v10 = vsel %vm6490_vm2, %v6388_v5, %v2907_v58  ;;  %v2970_v36 = vmul.f32 %v2969_v20, %v6294_v39  ;;  %v3044_v37 = vmul.f32 %v3043_v43, %v6420_v53 }
 0x347   : > { %v3055_v57 = vmul.f32 %v3054_v29, %v6420_v53  ;;  %v6505_v4 = vmul.f32 %v2836_v18, %v6393_v24  ;;  %v2915_v8 = vor.u32 1.1754944e-38, %v2914_v38  ;;  %v2931_v16 = vadd.f32 1.1283791, %v2930_v23 }
 0x348   : > { %v6508_v48 = vmul.f32 0.70710677, %v6474_v30  ;;  %v2984_v3 = vmul.f32 %v6481_v31, %v6428_v52  ;;  %v3007_v1 = vadd.f32 0.05243302, %v3006_v56  ;;  %v2176_v47 = vadd.f32 0.014752088, %v2175_v9 }
 0x349   : > { %v2214_v5 = vadd.f32 0.001143296, %v2213_v33  ;;  %v6512_v46 = vpop.eup %3863  ;;  %v6515_v39 = vmul.f32 %v2876_v44, %v6409_v15  ;;  %v2916_v20 = vsel %vm6494_vm3, %v2915_v8, %v2911_v10  ;;  %v2954_v43 = vand.u32 2147483648, %v6450_v13 }
 0x34a   : > { %7380 = vst [vmem:[#allocation58_spill] sm:$0xff] %v6508_v48  ;;  %v3019_v24 = vmul.f32 %v3018_v12, %v6353_v6  ;;  %v2971_v29 = vadd.f32 1.1283791, %v2970_v36  ;;  %v3045_v59 = vadd.f32 0.0036580483, %v3044_v37  ;;  %v2177_v51 = vmul.f32 %v2176_v47, %v5952_v55 }
 0x34b   : > { %7381 = vst [vmem:[#allocation49_spill] sm:$0xff] %v6512_v46  ;;  %v3056_v34 = vadd.f32 0.014752088, %v3055_v57  ;;  %v6523_v45 = vmul.f32 %v2931_v16, %v6261_v41  ;;  %v3080_v32 = vmul.f32 %v6508_v48, %v6508_v48  ;;  %v2215_v15 = vmul.f32 %v2214_v5, %v5955_v0 }
 0x34c   : > { %v2253_v58 = vmul.f32 3.8918573e-05, %v5957_v49  ;;  %v2944_v38 = vmul.f32 %v6512_v46, %v6450_v13  ;;  %v2985_v23 = vsub.f32 1.0, %v2984_v3  ;;  %v3008_v18 = vmul.f32 %v3007_v1, %v6353_v6 }
 0x34d   : > { %7382 = vst [vmem:[#allocation59_spill] sm:$0xff] %v6523_v45  ;;  %v2178_v56 = vadd.f32 0.112945676, %v2177_v51  ;;  %v6532_v9 = vmul.f32 %v2916_v20, %v2892_v21  ;;  %v6535_v41 = vor.u32 1.1754944e-38, %v2954_v43  ;;  %v3020_v44 = vadd.f32 0.4994258, %v3019_v24 }
 0x34e   : > { %v6538_v35 = vmul.f32 %v2971_v29, %v6282_v14  ;;  %v2992_v19 = vand.u32 2147483647, %v6428_v52  ;;  %v3046_v12 = vmul.f32 %v3045_v59, %v6420_v53  ;;  %v3057_v10 = vmul.f32 %v3056_v34, %v6420_v53 }
 0x34f   : > { %7383 = vst [vmem:[#allocation50_spill] sm:$0xff] %v6532_v9  ;;  %v6543_v36 = vmin.f32 %v3080_v32, 16.0  ;;  %v2179_v37 = vmul.f32 %v2178_v56, %v5952_v55  ;;  %v2216_v21 = vadd.f32 0.014752088, %v2215_v15  ;;  %v2254_v57 = vadd.f32 0.001143296, %v2253_v58 }
 0x350   : > { %7384 = vst [vmem:[#allocation60_spill] sm:$0xff] %v6535_v41  ;;  %v2945_v8 = vsub.f32 1.0, %v2944_v38  ;;  %v2986_v16 = vmul.f32 %v6481_v31, %v2985_v23  ;;  %v2994_v3 = vand.u32 2147483648, %v6428_v52  ;;  %v3009_v1 = vadd.f32 0.18741608, %v3008_v18 }
 0x351   : > { %v3021_v14 = vmul.f32 %v3020_v44, %v6353_v6  ;;  %v2180_v47 = vadd.f32 0.4994258, %v2179_v37  ;;  %v2217_v5 = vmul.f32 %v2216_v21, %v5955_v0  ;;  %v2255_v20 = vmul.f32 %v2254_v57, %v5957_v49 }
 0x352   : > { %vm2989_vm4 = vweird.f32 %v6481_v31  ;;  %v3047_v43 = vadd.f32 0.05243302, %v3046_v12  ;;  %v3058_v24 = vadd.f32 0.112945676, %v3057_v10  ;;  %v2293_v29 = vmul.f32 3.8918573e-05, %v5972_v25 }
 0x353   : > { %vm2948_vm5 = vweird.f32 %v6450_v13  ;;  %v3082_v59 = vmul.f32 2.1237322e-06, %v6543_v36  ;;  %v2181_v34 = vmul.f32 %v2180_v47, %v5952_v55  ;;  %v2218_v51 = vadd.f32 0.112945676, %v2217_v5  ;;  %v3305_v5 = vpop.f32.mrf.mxu0 }
 0x354   : > { %v2256_v32 = vadd.f32 0.014752088, %v2255_v20  ;;  %v2946_v15 = vmul.f32 %v6512_v46, %v2945_v8  ;;  %v2987_v58 = vadd.f32 %v6481_v31, %v2986_v16  ;;  %v3010_v38 = vmul.f32 %v3009_v1, %v6353_v6  ;;  %v3361_v20 = vpop.f32.mrf.mxu1 }
 0x355   : > { %v3093_v23 = vmul.f32 3.8918573e-05, %v6543_v36  ;;  %v6560_v18 = vadd.f32 1.0, %v3021_v14  ;;  %v6562_v56 = vadd.f32 1.0, %v2181_v34  ;;  %v2219_v44 = vmul.f32 %v2218_v51, %v5955_v0 }
 0x356   : > { %v2257_v12 = vmul.f32 %v2256_v32, %v5957_v49  ;;  %vm2988_vm6 = vweird.f32 %v6428_v52  ;;  %vm6567_vm7 = vcmp.eq.f32.partialorder %v2992_v19, 8.507059e+37  ;;  %v2995_v10 = vor.u32 1.1754944e-38, %v2994_v3 }
 0x357   : > { %v2294_v37 = vadd.f32 0.001143296, %v2293_v29  ;;  %vm6573_vm8 = vmor %vm2988_vm6, %vm2989_vm4  ;;  %v3048_v21 = vmul.f32 %v3047_v43, %v6420_v53  ;;  %v3059_v57 = vmul.f32 %v3058_v24, %v6420_v53  ;;  %v3083_v8 = vadd.f32 0.00028619796, %v3082_v59 }
 0x358   : > { %3865 = vrcp.f32 %v6562_v56  ;;  %vm2949_vm9 = vweird.f32 %v6512_v46  ;;  %v2991_v52 = vsel %vm6573_vm8, %v6481_v31, %v2987_v58  ;;  %v3094_v19 = vadd.f32 0.001143296, %v3093_v23 }
 0x359   : > { %v2220_v16 = vadd.f32 0.4994258, %v2219_v44  ;;  %v6585_v3 = vadd.f32 %v6512_v46, %v2946_v15  ;;  %v3011_v1 = vadd.f32 1.1283791, %v3010_v38  ;;  %3867 = vrcp.f32 %v6560_v18  ;;  %vm6599_vm10 = vmor %vm2948_vm5, %vm2949_vm9 }
 0x35a   : > { %v2258_v14 = vadd.f32 0.112945676, %v2257_v12  ;;  %v3034_v47 = vand.u32 2147483648, %v6560_v18  ;;  %v2295_v24 = vmul.f32 %v2294_v37, %v5972_v25  ;;  %v2333_v29 = vmul.f32 3.8918573e-05, %v5980_v28 }
 0x35b   : > { %7389 = vst [vmem:[#allocation61_spill] sm:$0xff] %v6585_v3  ;;  %v2221_v43 = vmul.f32 %v2220_v16, %v5955_v0  ;;  %v2996_v31 = vsel %vm6567_vm7, %v2995_v10, %v2991_v52  ;;  %v3049_v59 = vadd.f32 0.18741608, %v3048_v21  ;;  %v3060_v34 = vadd.f32 0.4994258, %v3059_v57 }
 0x35c   : > { %v3084_v51 = vmul.f32 %v3083_v8, %v6543_v36  ;;  %v7390_v32 = vmov 0  ;;  %v3095_v0 = vmul.f32 %v3094_v19, %v6543_v36  ;;  %v2259_v58 = vmul.f32 %v2258_v14, %v5957_v49 }
 0x35d   : > { %v7391_v32 = vsel %vm6599_vm10, 4294967295, %v7390_v32  ;;  %v6604_v15 = vadd.f32 1.0, %v2221_v43  ;;  %v2296_v38 = vadd.f32 0.014752088, %v2295_v24  ;;  %v6612_v12 = vmul.f32 %v3011_v1, %v6325_v42 }
 0x35e   : > { %7392 = vst [vmem:[#allocation8_spill] sm:$0xff] %v7391_v32  ;;  %v3866_v23 = vpop.eup %3865  ;;  %v3362_v10 = vadd.f32 %v3361_v20, %v3305_v5  ;;  %v6615_v37 = vor.u32 1.1754944e-38, %v3034_v47  ;;  %v2334_v21 = vadd.f32 0.001143296, %v2333_v29  ;;  %v6622_v8 = vmul.f32 %v2996_v31, %v6538_v35  ;;  %v7410_v32 = vld [vmem:[#allocation15_spill] sm:$0xff] }
 0x35f   : > { %v2184_v6 = vmul.f32 %v3866_v23, %v6562_v56  ;;  %3869 = vrcp.f32 %v6604_v15  ;;  %v6619_v57 = vpop.eup %3867  ;;  %v3050_v52 = vmul.f32 %v3049_v59, %v6420_v53  ;;  %v3061_v42 = vmul.f32 %v3060_v34, %v6420_v53 }
 0x360   : > { %v2260_v19 = vadd.f32 0.4994258, %v2259_v58  ;;  %v6626_v16 = vadd.f32 0.0036580483, %v3084_v51  ;;  %v3096_v1 = vadd.f32 0.014752088, %v3095_v0  ;;  %v2297_v47 = vmul.f32 %v2296_v38, %v5972_v25 }
 0x361   : > { %v2185_v14 = vsub.f32 1.0, %v2184_v6  ;;  %vm2189_vm11 = vweird.f32 %v3866_v23  ;;  %v2192_v5 = vand.u32 2147483647, %v6562_v56  ;;  %v2194_v20 = vand.u32 2147483648, %v6562_v56 }
 0x362   : > { %v2261_v43 = vmul.f32 %v2260_v19, %v5957_v49  ;;  %v2298_v24 = vadd.f32 0.112945676, %v2297_v47  ;;  %v2335_v29 = vmul.f32 %v2334_v21, %v5980_v28  ;;  %v2373_v53 = vmul.f32 3.8918573e-05, %v6006_v7  ;;  %v3417_v19 = vpop.f32.mrf.mxu2 }
 0x363   : > { %v2186_v35 = vmul.f32 %v3866_v23, %v2185_v14  ;;  %v6636_v31 = vmul.f32 %v6619_v57, %v6560_v18  ;;  %v6638_v59 = vadd.f32 1.1283791, %v3050_v52  ;;  %v6640_v34 = vadd.f32 1.0, %v3061_v42 }
 0x364   : > { %v6642_v51 = vadd.f32 1.0, %v2261_v43  ;;  %vm2188_vm12 = vweird.f32 %v6562_v56  ;;  %v2299_v49 = vmul.f32 %v2298_v24, %v5972_v25  ;;  %v2413_v38 = vmul.f32 3.8918573e-05, %v6008_v63 }
 0x365   : > { %v3870_v0 = vpop.eup %3869  ;;  %v2187_v58 = vadd.f32 %v3866_v23, %v2186_v35  ;;  %v3097_v6 = vmul.f32 %v3096_v1, %v6543_v36  ;;  %vm2190_vm13 = vmor %vm2188_vm12, %vm2189_vm11  ;;  %v2195_v21 = vor.u32 1.1754944e-38, %v2194_v20  ;;  %vm2193_vm14 = vcmp.eq.f32.partialorder %v2192_v5, 8.507059e+37  ;;  %v6654_v1 = vld [vmem:[%s7088_s6] ss:$0 sm:$0xff]  ;;  %v3473_v5 = vpop.f32.mrf.mxu3 }
 0x366   : > { %v2224_v52 = vmul.f32 %v3870_v0, %v6604_v15  ;;  %3871 = vrcp.f32 %v6642_v51  ;;  %v2336_v14 = vadd.f32 0.014752088, %v2335_v29  ;;  %v2374_v47 = vadd.f32 0.001143296, %v2373_v53  ;;  %v7393_v20 = vld [vmem:[#allocation28_spill] sm:$0xff] }
 0x367   : > { %v2191_v42 = vsel %vm2190_vm13, %v3866_v23, %v2187_v58  ;;  %v2300_v35 = vadd.f32 0.4994258, %v2299_v49  ;;  %v3418_v24 = vadd.f32 %v3417_v19, %v3362_v10  ;;  %v2232_v33 = vand.u32 2147483647, %v6604_v15 }
 0x368   : > { %v2196_v56 = vsel %vm2193_vm14, %v2195_v21, %v2191_v42  ;;  %v2225_v43 = vsub.f32 1.0, %v2224_v52  ;;  %v2234_v23 = vand.u32 2147483648, %v6604_v15  ;;  %v2414_v58 = vadd.f32 0.001143296, %v2413_v38 }
 0x369   : > { %v2197_v44 = vmul.f32 %v2196_v56, %v7393_v20  ;;  %vm2229_vm15 = vweird.f32 %v3870_v0  ;;  %v2301_v53 = vmul.f32 %v2300_v35, %v5972_v25  ;;  %v3474_v21 = vadd.f32 %v3473_v5, %v3418_v24 }
 0x36a   : > { %v2226_v29 = vmul.f32 %v3870_v0, %v2225_v43  ;;  %v6667_v10 = vadd.f32 0.112945676, %v3097_v6  ;;  %vm2228_vm0 = vweird.f32 %v6604_v15  ;;  %v2337_v52 = vmul.f32 %v2336_v14, %v5980_v28  ;;  %v7394_v14 = vld [vmem:[#allocation14_spill] sm:$0xff] }
 0x36b   : > { %v3717_v49 = vclamps-f32 %v2197_v44, 1.0  ;;  %v6671_v19 = vadd.f32 1.0, %v2301_v53  ;;  %v3591_v25 = vadd.f32 %v6654_v1, %v3474_v21  ;;  %v2375_v56 = vmul.f32 %v2374_v47, %v6006_v7  ;;  %vm2230_vm1 = vmor %vm2228_vm0, %vm2229_vm15  ;;  %v7395_v47 = vld [vmem:[#allocation22_spill] sm:$0xff] }
 0x36c   : > { %v3872_v38 = vpop.eup %3871  ;;  %v2227_v42 = vadd.f32 %v3870_v0, %v2226_v29  ;;  %v2235_v35 = vor.u32 1.1754944e-38, %v2234_v23  ;;  %v2415_v44 = vmul.f32 %v2414_v58, %v6008_v63  ;;  %vm2233_vm2 = vcmp.eq.f32.partialorder %v2232_v33, 8.507059e+37  ;;  %v7396_v58 = vld [vmem:[#allocation10_spill] sm:$0xff] }
 0x36d   : > { %v3148_v43 = vadd.f32 1.0, %v3717_v49  ;;  %v2264_v6 = vmul.f32 %v3872_v38, %v6642_v51  ;;  %v2272_v15 = vand.u32 2147483647, %v6642_v51  ;;  %3873 = vrcp.f32 %v6671_v19  ;;  %3604 = vst [vmem:[%s6665_s11] sm:$0xff] %v3591_v25  ;;  %v3476_v3 = vpop.f32.mrf.mxu3 }
 0x36e   : > { %v2231_v24 = vsel %vm2230_vm1, %v3870_v0, %v2227_v42  ;;  %vm2268_vm3 = vweird.f32 %v6642_v51  ;;  %v2274_v23 = vand.u32 2147483648, %v6642_v51  ;;  %v2338_v21 = vadd.f32 0.112945676, %v2337_v52  ;;  %v7400_v51 = vld [vmem:[#allocation19_spill] sm:$0xff] }
 0x36f   : > { %v3200_v20 = vmul.f32 %v3148_v43, %v7394_v14  ;;  %v2236_v5 = vsel %vm2233_vm2, %v2235_v35, %v2231_v24  ;;  %v2265_v29 = vsub.f32 1.0, %v2264_v6  ;;  %v2376_v49 = vadd.f32 0.014752088, %v2375_v56 }
 0x370   : > { %v2237_v53 = vmul.f32 %v2236_v5, %v7395_v47  ;;  %vm2269_vm4 = vweird.f32 %v3872_v38  ;;  %v2416_v33 = vadd.f32 0.014752088, %v2415_v44  ;;  %v2453_v42 = vmul.f32 3.8918573e-05, %v7396_v58 }
 0x371   : > { %3325 = vmatmul.f32.gmra.mxu0 %v3200_v20  ;;  %v2266_v0 = vmul.f32 %v3872_v38, %v2265_v29  ;;  %vm6685_vm5 = vcmp.eq.f32.partialorder %v2272_v15, 8.507059e+37  ;;  %v2339_v43 = vmul.f32 %v2338_v21, %v5980_v28  ;;  %v2377_v35 = vmul.f32 %v2376_v49, %v6006_v7  ;;  %vm2270_vm6 = vmor %vm2268_vm3, %vm2269_vm4  ;;  %v7399_v49 = vld [vmem:[#allocation17_spill] sm:$0xff] }
 0x372   : > { %v3718_v55 = vclamps-f32 %v2237_v53, 1.0  ;;  %v2417_v24 = vmul.f32 %v2416_v33, %v6008_v63  ;;  %v2454_v52 = vadd.f32 0.001143296, %v2453_v42  ;;  %v2493_v56 = vmul.f32 3.8918573e-05, %v6045_v54 }
 0x373   : > { %v2267_v6 = vadd.f32 %v3872_v38, %v2266_v0  ;;  %v3874_v14 = vpop.eup %3873  ;;  %v2275_v44 = vor.u32 1.1754944e-38, %v2274_v23  ;;  %v2340_v15 = vadd.f32 0.4994258, %v2339_v43  ;;  %v2378_v5 = vadd.f32 0.112945676, %v2377_v35 }
 0x374   : > { %v3149_v20 = vadd.f32 1.0, %v3718_v55  ;;  %v2304_v47 = vmul.f32 %v3874_v14, %v6671_v19  ;;  %v2312_v53 = vand.u32 2147483647, %v6671_v19  ;;  %v2418_v21 = vadd.f32 0.112945676, %v2417_v24 }
 0x375   : > { %v2271_v29 = vsel %vm2270_vm6, %v3872_v38, %v2267_v6  ;;  %v2341_v42 = vmul.f32 %v2340_v15, %v5980_v28  ;;  %v2379_v55 = vmul.f32 %v2378_v5, %v6006_v7  ;;  %v2314_v43 = vand.u32 2147483648, %v6671_v19  ;;  %v7403_v5 = vld [vmem:[#allocation20_spill] sm:$0xff] }
 0x376   : > { %v3201_v0 = vmul.f32 %v3149_v20, %v7399_v49  ;;  %v2276_v33 = vsel %vm6685_vm5, %v2275_v44, %v2271_v29  ;;  %v2305_v23 = vsub.f32 1.0, %v2304_v47  ;;  %v2419_v38 = vmul.f32 %v2418_v21, %v6008_v63 }
 0x377   : > { %v2277_v30 = vmul.f32 %v2276_v33, %v7400_v51  ;;  %v6705_v35 = vadd.f32 1.0, %v2341_v42  ;;  %v2380_v6 = vadd.f32 0.4994258, %v2379_v55  ;;  %v2455_v24 = vmul.f32 %v2454_v52, %v7396_v58  ;;  %v3364_v33 = vpop.f32.mrf.mxu1  ;;  %v7404_v42 = vld [vmem:[#allocation12_spill] sm:$0xff] }
 0x378   : > { %3381 = vmatmul.f32.gmra.mxu1 %v3201_v0  ;;  %v2494_v20 = vadd.f32 0.001143296, %v2493_v56  ;;  %v2306_v44 = vmul.f32 %v3874_v14, %v2305_v23  ;;  %vm2309_vm7 = vweird.f32 %v3874_v14  ;;  %v2420_v28 = vadd.f32 0.4994258, %v2419_v38 }
 0x379   : > { %v3719_v25 = vclamps-f32 %v2277_v30, 1.0  ;;  %vm2308_vm8 = vweird.f32 %v6671_v19  ;;  %vm6709_vm9 = vcmp.eq.f32.partialorder %v2312_v53, 8.507059e+37  ;;  %3875 = vrcp.f32 %v6705_v35  ;;  %v3308_v53 = vpop.f32.mrf.mxu0 }
 0x37a   : > { %v2533_v29 = vmul.f32 3.8918573e-05, %v7403_v5  ;;  %v2307_v21 = vadd.f32 %v3874_v14, %v2306_v44  ;;  %v2381_v49 = vmul.f32 %v2380_v6, %v6006_v7  ;;  %v2421_v52 = vmul.f32 %v2420_v28, %v6008_v63  ;;  %vm2310_vm11 = vmor %vm2308_vm8, %vm2309_vm7  ;;  %v7405_v6 = vld [vmem:[#allocation37_spill] sm:$0xff] }
 0x37b   : > { %v3150_v47 = vadd.f32 1.0, %v3719_v25  ;;  %v2315_v30 = vor.u32 1.1754944e-38, %v2314_v43  ;;  %v2352_v56 = vand.u32 2147483647, %v6705_v35  ;;  %v2456_v0 = vadd.f32 0.014752088, %v2455_v24 }
 0x37c   : > { %v2495_v19 = vmul.f32 %v2494_v20, %v6045_v54  ;;  %v2311_v51 = vsel %vm2310_vm11, %v3874_v14, %v2307_v21  ;;  %v6720_v23 = vadd.f32 1.0, %v2381_v49  ;;  %v6722_v38 = vadd.f32 1.0, %v2421_v52 }
 0x37d   : > { %v3202_v55 = vmul.f32 %v3150_v47, %v7404_v42  ;;  %3877 = vrcp.f32 %v6640_v34  ;;  %v2316_v7 = vsel %vm6709_vm9, %v2315_v30, %v2311_v51  ;;  %v2354_v63 = vand.u32 2147483648, %v6705_v35  ;;  %v7408_v51 = vld [vmem:[#allocation18_spill] sm:$0xff] }
 0x37e   : > { %v2457_v43 = vmul.f32 %v2456_v0, %v7396_v58  ;;  %v2317_v24 = vmul.f32 %v2316_v7, %v7405_v6  ;;  %3879 = vrcp.f32 %v6720_v23  ;;  %v2496_v20 = vadd.f32 0.014752088, %v2495_v19  ;;  %v7409_v6 = vld [vmem:[#allocation26_spill] sm:$0xff] }
 0x37f   : > { %3437 = vmatmul.f32.gmra.mxu2 %v3202_v55  ;;  %v2534_v14 = vadd.f32 0.001143296, %v2533_v29  ;;  %v3876_v25 = vpop.eup %3875  ;;  %v6733_v44 = vmul.f32 %v6667_v10, %v6543_v36  ;;  %v3365_v28 = vadd.f32 %v3364_v33, %v3308_v53  ;;  %vm2348_vm12 = vweird.f32 %v6705_v35 }
 0x380   : > { %3881 = vrcp.f32 %v6722_v38  ;;  %v3720_v15 = vclamps-f32 %v2317_v24, 1.0  ;;  %v2344_v47 = vmul.f32 %v3876_v25, %v6705_v35  ;;  %vm6738_vm13 = vcmp.eq.f32.partialorder %v2352_v56, 8.507059e+37 }
 0x381   : > { %v2392_v49 = vand.u32 2147483647, %v6720_v23  ;;  %v2355_v29 = vor.u32 1.1754944e-38, %v2354_v63  ;;  %v2394_v52 = vand.u32 2147483648, %v6720_v23  ;;  %v2432_v10 = vand.u32 2147483647, %v6722_v38 }
 0x382   : > { %v2458_v30 = vadd.f32 0.112945676, %v2457_v43  ;;  %v3151_v0 = vadd.f32 1.0, %v3720_v15  ;;  %v2345_v19 = vsub.f32 1.0, %v2344_v47  ;;  %v2497_v53 = vmul.f32 %v2496_v20, %v6045_v54  ;;  %v3420_v20 = vpop.f32.mrf.mxu2 }
 0x383   : > { %v2535_v33 = vmul.f32 %v2534_v14, %v7403_v5  ;;  %v6747_v42 = vpop.eup %3877  ;;  %vm2349_vm14 = vweird.f32 %v3876_v25  ;;  %vm2388_vm15 = vweird.f32 %v6720_v23  ;;  %v2434_v56 = vand.u32 2147483648, %v6722_v38 }
 0x384   : > { %v2459_v55 = vmul.f32 %v2458_v30, %v7396_v58  ;;  %v2573_v7 = vmul.f32 3.8918573e-05, %v7408_v51  ;;  %v3880_v63 = vpop.eup %3879  ;;  %v3203_v43 = vmul.f32 %v3151_v0, %v7409_v6  ;;  %v2346_v24 = vmul.f32 %v3876_v25, %v2345_v19  ;;  %vm2350_vm3 = vmor %vm2348_vm12, %vm2349_vm14 }
 0x385   : > { %vm2428_vm0 = vweird.f32 %v6722_v38  ;;  %v2498_v15 = vadd.f32 0.112945676, %v2497_v53  ;;  %v2536_v14 = vadd.f32 0.014752088, %v2535_v33  ;;  %v2384_v48 = vmul.f32 %v3880_v63, %v6720_v23 }
 0x386   : > { %v3882_v47 = vpop.eup %3881  ;;  %vm2389_vm1 = vweird.f32 %v3880_v63  ;;  %v2460_v45 = vadd.f32 0.4994258, %v2459_v55  ;;  %v3421_v2 = vadd.f32 %v3420_v20, %v3365_v28  ;;  %3493 = vmatmul.f32.gmra.mxu3 %v3203_v43  ;;  %v2347_v41 = vadd.f32 %v3876_v25, %v2346_v24 }
 0x387   : > { %v2424_v30 = vmul.f32 %v3882_v47, %v6722_v38  ;;  %vm2429_vm2 = vweird.f32 %v3882_v47  ;;  %v2499_v0 = vmul.f32 %v2498_v15, %v6045_v54  ;;  %v2385_v19 = vsub.f32 1.0, %v2384_v48  ;;  %vm2390_vm5 = vmor %vm2388_vm15, %vm2389_vm1 }
 0x388   : > { %v2461_v53 = vmul.f32 %v2460_v45, %v7396_v58  ;;  %v3477_v33 = vadd.f32 %v3476_v3, %v3421_v2  ;;  %v2537_v6 = vmul.f32 %v2536_v14, %v7403_v5  ;;  %v2351_v55 = vsel %vm2350_vm3, %v3876_v25, %v2347_v41  ;;  %vm2430_vm7 = vmor %vm2428_vm0, %vm2429_vm2 }
 0x389   : > { %v2425_v28 = vsub.f32 1.0, %v2424_v30  ;;  %v2500_v43 = vadd.f32 0.4994258, %v2499_v0  ;;  %v2574_v24 = vadd.f32 0.001143296, %v2573_v7  ;;  %v2356_v20 = vsel %vm6738_vm13, %v2355_v29, %v2351_v55  ;;  %v7413_v0 = vld [vmem:[#allocation33_spill] sm:$0xff] }
 0x38a   : > { %v2386_v46 = vmul.f32 %v3880_v63, %v2385_v19  ;;  %v6765_v15 = vadd.f32 1.0, %v2461_v53  ;;  %v3592_v35 = vadd.f32 %v6654_v1, %v3477_v33  ;;  %v2357_v48 = vmul.f32 %v2356_v20, %v7410_v32 }
 0x38b   : > { %v2426_v9 = vmul.f32 %v3882_v47, %v2425_v28  ;;  %v2501_v2 = vmul.f32 %v2500_v43, %v6045_v54  ;;  %v2538_v45 = vadd.f32 0.112945676, %v2537_v6  ;;  %vm2393_vm4 = vcmp.eq.f32.partialorder %v2392_v49, 8.507059e+37 }
 0x38c   : > { %v2387_v3 = vadd.f32 %v3880_v63, %v2386_v46  ;;  %v2395_v41 = vor.u32 1.1754944e-38, %v2394_v52  ;;  %3883 = vrcp.f32 %v6765_v15  ;;  %3605 = vst [vmem:[%s6665_s11 + $0x8] sm:$0xff] %v3592_v35  ;;  %v3721_v58 = vclamps-f32 %v2357_v48, 1.0 }
 0x38d   : > { %v2427_v25 = vadd.f32 %v3882_v47, %v2426_v9  ;;  %vm2433_vm6 = vcmp.eq.f32.partialorder %v2432_v10, 8.507059e+37  ;;  %v6775_v21 = vadd.f32 1.0, %v2501_v2  ;;  %v2435_v54 = vor.u32 1.1754944e-38, %v2434_v56  ;;  %v7411_v10 = vld [vmem:[#allocation31_spill] sm:$0xff]  ;;  %v7412_v56 = vld [vmem:[#allocation13_spill] sm:$0xff] }
 0x38e   : > { %v2391_v32 = vsel %vm2390_vm5, %v3880_v63, %v2387_v3  ;;  %v2539_v46 = vmul.f32 %v2538_v45, %v7403_v5  ;;  %v2575_v49 = vmul.f32 %v2574_v24, %v7408_v51  ;;  %v3152_v29 = vadd.f32 1.0, %v3721_v58 }
 0x38f   : > { %v2396_v52 = vsel %vm2393_vm4, %v2395_v41, %v2391_v32  ;;  %v2431_v7 = vsel %vm2430_vm7, %v3882_v47, %v2427_v25  ;;  %v2472_v23 = vand.u32 2147483647, %v6765_v15  ;;  %v3025_v9 = vsub.f32 1.0, %v6636_v31  ;;  %v7416_v32 = vld [vmem:[#allocation21_spill] sm:$0xff] }
 0x390   : > { %v2397_v14 = vmul.f32 %v2396_v52, %v7411_v10  ;;  %v2436_v30 = vsel %vm2433_vm6, %v2435_v54, %v2431_v7  ;;  %3885 = vrcp.f32 %v6775_v21  ;;  %v6787_v38 = vadd.f32 0.4994258, %v6733_v44  ;;  %v7418_v7 = vld [vmem:[#allocation16_spill] sm:$0xff] }
 0x391   : > { %v3204_v63 = vmul.f32 %v3152_v29, %v7412_v56  ;;  %v2437_v19 = vmul.f32 %v2436_v30, %v7413_v0  ;;  %v2613_v53 = vmul.f32 3.8918573e-05, %v6125_v40  ;;  %vm2468_vm8 = vweird.f32 %v6765_v15  ;;  %v7417_v29 = vld [vmem:[#allocation27_spill] sm:$0xff] }
 0x392   : > { %v3884_v33 = vpop.eup %3883  ;;  %v3722_v47 = vclamps-f32 %v2397_v14, 1.0  ;;  %v2540_v6 = vadd.f32 0.4994258, %v2539_v46  ;;  %v2576_v55 = vadd.f32 0.014752088, %v2575_v49  ;;  %vm6794_vm9 = vcmp.eq.f32.partialorder %v2472_v23, 8.507059e+37 }
 0x393   : > { %3328 = vmatmul.f32.gmra.mxu0 %v3204_v63  ;;  %v3723_v28 = vclamps-f32 %v2437_v19, 1.0  ;;  %v2464_v43 = vmul.f32 %v3884_v33, %v6765_v15  ;;  %v2474_v44 = vand.u32 2147483648, %v6765_v15  ;;  %v2512_v35 = vand.u32 2147483647, %v6775_v21 }
 0x394   : > { %v3153_v20 = vadd.f32 1.0, %v3722_v47  ;;  %v2541_v48 = vmul.f32 %v2540_v6, %v7403_v5  ;;  %v2577_v2 = vmul.f32 %v2576_v55, %v7408_v51  ;;  %v2614_v41 = vadd.f32 0.001143296, %v2613_v53  ;;  %v3311_v55 = vpop.f32.mrf.mxu0 }
 0x395   : > { %v3154_v45 = vadd.f32 1.0, %v3723_v28  ;;  %v2465_v3 = vsub.f32 1.0, %v2464_v43  ;;  %v2653_v58 = vmul.f32 3.8918573e-05, %v6184_v22  ;;  %v2693_v52 = vmul.f32 3.8918573e-05, %v7417_v29  ;;  %v3367_v28 = vpop.f32.mrf.mxu1 }
 0x396   : > { %v3886_v25 = vpop.eup %3885  ;;  %v3205_v54 = vmul.f32 %v3153_v20, %v7416_v32  ;;  %v6804_v46 = vadd.f32 1.0, %v2541_v48  ;;  %v2578_v49 = vadd.f32 0.112945676, %v2577_v2  ;;  %vm2469_vm11 = vweird.f32 %v3884_v33 }
 0x397   : > { %v3206_v23 = vmul.f32 %v3154_v45, %v7418_v7  ;;  %v2466_v10 = vmul.f32 %v3884_v33, %v2465_v3  ;;  %v2504_v5 = vmul.f32 %v3886_v25, %v6775_v21  ;;  %v2475_v14 = vor.u32 1.1754944e-38, %v2474_v44  ;;  %vm2470_vm13 = vmor %vm2468_vm8, %vm2469_vm11  ;;  %v7422_v7 = vld [vmem:[#allocation30_spill] sm:$0xff] }
 0x398   : > { %3384 = vmatmul.f32.gmra.mxu1 %v3205_v54  ;;  %vm2508_vm12 = vweird.f32 %v6775_v21  ;;  %v2514_v30 = vand.u32 2147483648, %v6775_v21  ;;  %3887 = vrcp.f32 %v6804_v46  ;;  %v2579_v0 = vmul.f32 %v2578_v49, %v7408_v51 }
 0x399   : > { %3440 = vmatmul.f32.gmra.mxu2 %v3206_v23  ;;  %v2467_v56 = vadd.f32 %v3884_v33, %v2466_v10  ;;  %v2505_v63 = vsub.f32 1.0, %v2504_v5  ;;  %v2615_v19 = vmul.f32 %v2614_v41, %v6125_v40  ;;  %vm2509_vm14 = vweird.f32 %v3886_v25 }
 0x39a   : > { %vm6816_vm15 = vcmp.eq.f32.partialorder %v2512_v35, 8.507059e+37  ;;  %v2654_v47 = vadd.f32 0.001143296, %v2653_v58  ;;  %v2694_v6 = vadd.f32 0.001143296, %v2693_v52  ;;  %v2515_v45 = vor.u32 1.1754944e-38, %v2514_v30  ;;  %vm2510_vm0 = vmor %vm2508_vm12, %vm2509_vm14 }
 0x39b   : > { %v2471_v43 = vsel %vm2470_vm13, %v3884_v33, %v2467_v56  ;;  %v2506_v44 = vmul.f32 %v3886_v25, %v2505_v63  ;;  %v2580_v20 = vadd.f32 0.4994258, %v2579_v0  ;;  %v2616_v48 = vadd.f32 0.014752088, %v2615_v19  ;;  %v7421_v35 = vld [vmem:[#allocation41_spill] sm:$0xff]  ;;  %v7423_v19 = vld [vmem:[#allocation56_spill] sm:$0xff] }
 0x39c   : > { %v2476_v2 = vsel %vm6794_vm9, %v2475_v14, %v2471_v43  ;;  %v2655_v15 = vmul.f32 %v2654_v47, %v6184_v22  ;;  %v2695_v3 = vmul.f32 %v2694_v6, %v7417_v29  ;;  %v3368_v33 = vadd.f32 %v3367_v28, %v3311_v55  ;;  %v7424_v43 = vld [vmem:[#allocation29_spill] sm:$0xff] }
 0x39d   : > { %v2477_v41 = vmul.f32 %v2476_v2, %v7421_v35  ;;  %v2507_v32 = vadd.f32 %v3886_v25, %v2506_v44  ;;  %v2581_v58 = vmul.f32 %v2580_v20, %v7408_v51  ;;  %v2617_v54 = vmul.f32 %v2616_v48, %v6125_v40 }
 0x39e   : > { %v3888_v49 = vpop.eup %3887  ;;  %v2656_v24 = vadd.f32 0.014752088, %v2655_v15  ;;  %v2696_v52 = vadd.f32 0.014752088, %v2695_v3  ;;  %v2733_v23 = vmul.f32 3.8918573e-05, %v7422_v7  ;;  %vm2548_vm2 = vweird.f32 %v6804_v46 }
 0x39f   : > { %v3724_v10 = vclamps-f32 %v2477_v41, 1.0  ;;  %v2511_v5 = vsel %vm2510_vm0, %v3886_v25, %v2507_v32  ;;  %v2544_v14 = vmul.f32 %v3888_v49, %v6804_v46  ;;  %v2552_v30 = vand.u32 2147483647, %v6804_v46 }
 0x3a0   : > { %v2516_v51 = vsel %vm6816_vm15, %v2515_v45, %v2511_v5  ;;  %v6835_v56 = vadd.f32 1.0, %v2581_v58  ;;  %v2618_v63 = vadd.f32 0.112945676, %v2617_v54  ;;  %v2657_v0 = vmul.f32 %v2656_v24, %v6184_v22  ;;  %v3423_v45 = vpop.f32.mrf.mxu2  ;;  %v3479_v24 = vpop.f32.mrf.mxu3 }
 0x3a1   : > { %v3155_v21 = vadd.f32 1.0, %v3724_v10  ;;  %v2517_v47 = vmul.f32 %v2516_v51, %v7423_v19  ;;  %v2545_v6 = vsub.f32 1.0, %v2544_v14  ;;  %v2697_v55 = vmul.f32 %v2696_v52, %v7417_v29  ;;  %v7427_v10 = vld [vmem:[#allocation32_spill] sm:$0xff] }
 0x3a2   : > { %vm2549_vm1 = vweird.f32 %v3888_v49  ;;  %v2554_v25 = vand.u32 2147483648, %v6804_v46  ;;  %3889 = vrcp.f32 %v6835_v56  ;;  %v2734_v28 = vadd.f32 0.001143296, %v2733_v23 }
 0x3a3   : > { %v3207_v53 = vmul.f32 %v3155_v21, %v7424_v43  ;;  %v3725_v44 = vclamps-f32 %v2517_v47, 1.0  ;;  %v2546_v20 = vmul.f32 %v3888_v49, %v2545_v6  ;;  %v2619_v48 = vmul.f32 %v2618_v63, %v6125_v40  ;;  %vm2550_vm5 = vmor %vm2548_vm2, %vm2549_vm1  ;;  %v7428_v47 = vld [vmem:[#allocation47_spill] sm:$0xff] }
 0x3a4   : > { %vm6845_vm3 = vcmp.eq.f32.partialorder %v2552_v30, 8.507059e+37  ;;  %v2658_v15 = vadd.f32 0.112945676, %v2657_v0  ;;  %v2698_v3 = vadd.f32 0.112945676, %v2697_v55  ;;  %v3424_v58 = vadd.f32 %v3423_v45, %v3368_v33 }
 0x3a5   : > { %3496 = vmatmul.f32.gmra.mxu3 %v3207_v53  ;;  %v3156_v35 = vadd.f32 1.0, %v3725_v44  ;;  %v2547_v41 = vadd.f32 %v3888_v49, %v2546_v20  ;;  %v2620_v32 = vadd.f32 0.4994258, %v2619_v48  ;;  %vm3029_vm4 = vweird.f32 %v6619_v57 }
 0x3a6   : > { %v2555_v54 = vor.u32 1.1754944e-38, %v2554_v25  ;;  %v2659_v46 = vmul.f32 %v2658_v15, %v6184_v22  ;;  %v2699_v52 = vmul.f32 %v2698_v3, %v7417_v29  ;;  %v2735_v23 = vmul.f32 %v2734_v28, %v7422_v7 }
 0x3a7   : > { %v3208_v5 = vmul.f32 %v3156_v35, %v7427_v10  ;;  %v2551_v14 = vsel %vm2550_vm5, %v3888_v49, %v2547_v41  ;;  %v2621_v30 = vmul.f32 %v2620_v32, %v6125_v40  ;;  %v3480_v51 = vadd.f32 %v3479_v24, %v3424_v58  ;;  %v7429_v41 = vld [vmem:[#allocation24_spill] sm:$0xff] }
 0x3a8   : > { %v3890_v63 = vpop.eup %3889  ;;  %v3026_v33 = vmul.f32 %v6619_v57, %v3025_v9  ;;  %vm3028_vm6 = vweird.f32 %v6560_v18  ;;  %v2556_v0 = vsel %vm6845_vm3, %v2555_v54, %v2551_v14  ;;  %v2660_v21 = vadd.f32 0.4994258, %v2659_v46 }
 0x3a9   : > { %v2700_v19 = vadd.f32 0.4994258, %v2699_v52  ;;  %3331 = vmatmul.f32.gmra.mxu0 %v3208_v5  ;;  %v2557_v6 = vmul.f32 %v2556_v0, %v7428_v47  ;;  %v2584_v49 = vmul.f32 %v3890_v63, %v6835_v56  ;;  %v6864_v40 = vadd.f32 1.0, %v2621_v30  ;;  %vm6900_vm11 = vmor %vm3028_vm6, %vm3029_vm4  ;;  %v3314_v47 = vpop.f32.mrf.mxu0 }
 0x3aa   : > { %v2736_v55 = vadd.f32 0.014752088, %v2735_v23  ;;  %v3101_v31 = vmul.f32 %v6787_v38, %v6543_v36  ;;  %v3593_v9 = vadd.f32 %v6654_v1, %v3480_v51  ;;  %v2661_v25 = vmul.f32 %v2660_v21, %v6184_v22 }
 0x3ab   : > { %v2701_v28 = vmul.f32 %v2700_v19, %v7417_v29  ;;  %v3726_v43 = vclamps-f32 %v2557_v6, 1.0  ;;  %v2585_v53 = vsub.f32 1.0, %v2584_v49  ;;  %3891 = vrcp.f32 %v6864_v40  ;;  %v3370_v6 = vpop.f32.mrf.mxu1 }
 0x3ac   : > { %v2773_v44 = vmul.f32 3.8918573e-05, %v6211_v17  ;;  %v2592_v20 = vand.u32 2147483647, %v6835_v56  ;;  %v2594_v48 = vand.u32 2147483648, %v6835_v56  ;;  %3606 = vst [vmem:[%s6665_s11 + $0x10] sm:$0xff] %v3593_v9  ;;  %vm2589_vm7 = vweird.f32 %v3890_v63 }
 0x3ad   : > { %v6876_v2 = vadd.f32 1.0, %v2661_v25  ;;  %v6878_v38 = vadd.f32 1.0, %v2701_v28  ;;  %v3157_v45 = vadd.f32 1.0, %v3726_v43  ;;  %v2586_v15 = vmul.f32 %v3890_v63, %v2585_v53 }
 0x3ae   : > { %v2737_v22 = vmul.f32 %v2736_v55, %v7422_v7  ;;  %v6882_v29 = vadd.f32 %v6619_v57, %v3026_v33  ;;  %v6886_v3 = vmul.f32 %v6747_v42, %v6640_v34  ;;  %v6888_v35 = vadd.f32 1.0, %v3101_v31 }
 0x3af   : > { %3893 = vrcp.f32 %v6876_v2  ;;  %v3209_v32 = vmul.f32 %v3157_v45, %v7429_v41  ;;  %v2587_v58 = vadd.f32 %v3890_v63, %v2586_v15  ;;  %vm2588_vm8 = vweird.f32 %v6835_v56 }
 0x3b0   : > { %v2774_v54 = vadd.f32 0.001143296, %v2773_v44  ;;  %vm2590_vm9 = vmor %vm2588_vm8, %vm2589_vm7  ;;  %v2595_v24 = vor.u32 1.1754944e-38, %v2594_v48  ;;  %v2632_v46 = vand.u32 2147483647, %v6864_v40  ;;  %v2634_v52 = vand.u32 2147483648, %v6864_v40 }
 0x3b1   : > { %3895 = vrcp.f32 %v6878_v38  ;;  %v3892_v23 = vpop.eup %3891  ;;  %v6906_v56 = vmul.f32 %v6626_v16, %v6543_v36  ;;  %3387 = vmatmul.f32.gmra.mxu1 %v3209_v32  ;;  %v2591_v5 = vsel %vm2590_vm9, %v3890_v63, %v2587_v58  ;;  %vm2593_vm12 = vcmp.eq.f32.partialorder %v2592_v20, 8.507059e+37 }
 0x3b2   : > { %v2738_v14 = vadd.f32 0.112945676, %v2737_v22  ;;  %v3031_v30 = vsel %vm6900_vm11, %v6619_v57, %v6882_v29  ;;  %v3065_v51 = vsub.f32 1.0, %v6886_v3  ;;  %v2596_v33 = vsel %vm2593_vm12, %v2595_v24, %v2591_v5 }
 0x3b3   : > { %v2624_v0 = vmul.f32 %v3892_v23, %v6864_v40  ;;  %3897 = vrcp.f32 %v6888_v35  ;;  %v2597_v21 = vmul.f32 %v2596_v33, %v6340_v61  ;;  %v2775_v63 = vmul.f32 %v2774_v54, %v6211_v17 }
 0x3b4   : > { %v2739_v16 = vmul.f32 %v2738_v14, %v7422_v7  ;;  %vm2628_vm13 = vweird.f32 %v6864_v40  ;;  %vm6919_vm14 = vcmp.eq.f32.partialorder %v2632_v46, 8.507059e+37  ;;  %v2635_v31 = vor.u32 1.1754944e-38, %v2634_v52  ;;  %v7437_v52 = vld [vmem:[#allocation36_spill] sm:$0xff] }
 0x3b5   : > { %v3894_v19 = vpop.eup %3893  ;;  %v2625_v49 = vsub.f32 1.0, %v2624_v0  ;;  %v3727_v9 = vclamps-f32 %v2597_v21, 1.0  ;;  %vm2668_vm15 = vweird.f32 %v6876_v2  ;;  %vm2629_vm0 = vweird.f32 %v3892_v23 }
 0x3b6   : > { %v2664_v25 = vmul.f32 %v3894_v19, %v6876_v2  ;;  %v2740_v61 = vadd.f32 0.4994258, %v2739_v16  ;;  %v2672_v53 = vand.u32 2147483647, %v6876_v2  ;;  %v2776_v44 = vadd.f32 0.014752088, %v2775_v63  ;;  %vm2630_vm2 = vmor %vm2628_vm13, %vm2629_vm0 }
 0x3b7   : > { %v3896_v28 = vpop.eup %3895  ;;  %v2626_v43 = vmul.f32 %v3892_v23, %v2625_v49  ;;  %v3158_v20 = vadd.f32 1.0, %v3727_v9  ;;  %v2674_v45 = vand.u32 2147483648, %v6876_v2  ;;  %v2712_v41 = vand.u32 2147483647, %v6878_v38 }
 0x3b8   : > { %v2665_v48 = vsub.f32 1.0, %v2664_v25  ;;  %v2704_v15 = vmul.f32 %v3896_v28, %v6878_v38  ;;  %v2741_v32 = vmul.f32 %v2740_v61, %v7422_v7  ;;  %v2777_v58 = vmul.f32 %v2776_v44, %v6211_v17 }
 0x3b9   : > { %v2627_v22 = vadd.f32 %v3892_v23, %v2626_v43  ;;  %v6931_v54 = vpop.eup %3897  ;;  %v7434_v24 = vand.u32 2147483647, %v6560_v18  ;;  %v3210_v5 = vmul.f32 %v3158_v20, %v7437_v52  ;;  %vm2669_vm3 = vweird.f32 %v3894_v19  ;;  %v3317_v20 = vpop.f32.mrf.mxu0 }
 0x3ba   : > { %v2666_v14 = vmul.f32 %v3894_v19, %v2665_v48  ;;  %v2705_v33 = vsub.f32 1.0, %v2704_v15  ;;  %v2714_v7 = vand.u32 2147483648, %v6878_v38  ;;  %v6943_v21 = vadd.f32 1.0, %v2741_v32  ;;  %vm2670_vm5 = vmor %vm2668_vm15, %vm2669_vm3  ;;  %v3482_v15 = vpop.f32.mrf.mxu3 }
 0x3bb   : > { %vm6935_vm1 = vcmp.eq.f32.partialorder %v7434_v24, 8.507059e+37  ;;  %v2631_v0 = vsel %vm2630_vm2, %v3892_v23, %v2627_v22  ;;  %v2778_v16 = vadd.f32 0.112945676, %v2777_v58  ;;  %3443 = vmatmul.f32.gmra.mxu2 %v3210_v5  ;;  %vm2709_vm4 = vweird.f32 %v3896_v28 }
 0x3bc   : > { %v2636_v18 = vsel %vm6919_vm14, %v2635_v31, %v2631_v0  ;;  %v2667_v63 = vadd.f32 %v3894_v19, %v2666_v14  ;;  %v2706_v49 = vmul.f32 %v3896_v28, %v2705_v33  ;;  %v2675_v40 = vor.u32 1.1754944e-38, %v2674_v45 }
 0x3bd   : > { %v2637_v9 = vmul.f32 %v2636_v18, %v6350_v27  ;;  %vm2708_vm6 = vweird.f32 %v6878_v38  ;;  %3899 = vrcp.f32 %v6943_v21  ;;  %vm2673_vm7 = vcmp.eq.f32.partialorder %v2672_v53, 8.507059e+37  ;;  %v3373_v27 = vpop.f32.mrf.mxu1  ;;  %v3426_v38 = vpop.f32.mrf.mxu2 }
 0x3be   : > { %v2671_v23 = vsel %vm2670_vm5, %v3894_v19, %v2667_v63  ;;  %v2707_v25 = vadd.f32 %v3896_v28, %v2706_v49  ;;  %v2779_v61 = vmul.f32 %v2778_v16, %v6211_v17  ;;  %v3371_v55 = vadd.f32 %v3370_v6, %v3314_v47  ;;  %vm2710_vm8 = vmor %vm2708_vm6, %vm2709_vm4  ;;  %v7440_v16 = vld [vmem:[#allocation35_spill] sm:$0xff] }
 0x3bf   : > { %v3728_v31 = vclamps-f32 %v2637_v9, 1.0  ;;  %v2676_v43 = vsel %vm2673_vm7, %v2675_v40, %v2671_v23  ;;  %v2715_v44 = vor.u32 1.1754944e-38, %v2714_v7  ;;  %vm2713_vm9 = vcmp.eq.f32.partialorder %v2712_v41, 8.507059e+37 }
 0x3c0   : > { %v2677_v2 = vmul.f32 %v2676_v43, %v6367_v26  ;;  %v2711_v48 = vsel %vm2710_vm8, %v3896_v28, %v2707_v25  ;;  %v2780_v45 = vadd.f32 0.4994258, %v2779_v61  ;;  %v3066_v19 = vmul.f32 %v6747_v42, %v3065_v51  ;;  %v7438_v51 = vld [vmem:[#allocation25_spill] sm:$0xff] }
 0x3c1   : > { %vm3068_vm12 = vweird.f32 %v6640_v34  ;;  %v3159_v47 = vadd.f32 1.0, %v3728_v31  ;;  %v2716_v6 = vsel %vm2713_vm9, %v2715_v44, %v2711_v48  ;;  %v3427_v53 = vadd.f32 %v3426_v38, %v3371_v55 }
 0x3c2   : > { %v3087_v22 = vadd.f32 0.05243302, %v6906_v56  ;;  %v3729_v32 = vclamps-f32 %v2677_v2, 1.0  ;;  %v2717_v58 = vmul.f32 %v2716_v6, %v6370_v60  ;;  %v2781_v26 = vmul.f32 %v2780_v45, %v6211_v17  ;;  %v3485_v40 = vpop.f32.mrf.mxu3 }
 0x3c3   : > { %v3900_v28 = vpop.eup %3899  ;;  %v3036_v3 = vsel %vm6935_vm1, %v6615_v37, %v3031_v30  ;;  %vm3069_vm13 = vweird.f32 %v6747_v42  ;;  %v3211_v41 = vmul.f32 %v3159_v47, %v7438_v51  ;;  %v3483_v56 = vadd.f32 %v3482_v15, %v3427_v53  ;;  %v7439_v30 = vld [vmem:[#allocation44_spill] sm:$0xff]  ;;  %v7446_v15 = vld [vmem:[#allocation62_spill] sm:$0xff] }
 0x3c4   : > { %v3160_v24 = vadd.f32 1.0, %v3729_v32  ;;  %v3730_v52 = vclamps-f32 %v2717_v58, 1.0  ;;  %v2744_v17 = vmul.f32 %v3900_v28, %v6943_v21  ;;  %v3733_v60 = vclamps-f32 %v6505_v4, 1.0  ;;  %vm7000_vm15 = vmor %vm3068_vm12, %vm3069_vm13 }
 0x3c5   : > { %v3067_v10 = vadd.f32 %v6747_v42, %v3066_v19  ;;  %v3104_v57 = vmul.f32 %v6931_v54, %v6888_v35  ;;  %3499 = vmatmul.f32.gmra.mxu3 %v3211_v41  ;;  %v6976_v29 = vadd.f32 1.0, %v2781_v26  ;;  %v3594_v37 = vadd.f32 %v6654_v1, %v3483_v56  ;;  %v3429_v9 = vpop.f32.mrf.mxu2  ;;  %v3376_v2 = vpop.f32.mrf.mxu1 }
 0x3c6   : > { %v3212_v46 = vmul.f32 %v3160_v24, %v7439_v30  ;;  %v3161_v5 = vadd.f32 1.0, %v3730_v52  ;;  %v2745_v14 = vsub.f32 1.0, %v2744_v17  ;;  %v3734_v33 = vclamps-f32 %v6515_v39, 1.0  ;;  %v7463_v30 = vld [vmem:[#allocation23_spill] sm:$0xff] }
 0x3c7   : > { %v3374_v0 = vadd.f32 %v3373_v27, %v3317_v20  ;;  %v2752_v7 = vand.u32 2147483647, %v6943_v21  ;;  %v2754_v4 = vand.u32 2147483648, %v6943_v21  ;;  %3901 = vrcp.f32 %v6976_v29  ;;  %3607 = vst [vmem:[%s6665_s11 + $0x18] sm:$0xff] %v3594_v37 }
 0x3c8   : > { %3334 = vmatmul.f32.gmra.mxu0 %v3212_v46  ;;  %v3213_v18 = vmul.f32 %v3161_v5, %v7440_v16  ;;  %v2746_v63 = vmul.f32 %v3900_v28, %v2745_v14  ;;  %vm2749_vm11 = vweird.f32 %v3900_v28  ;;  %v3164_v49 = vadd.f32 1.0, %v3733_v60  ;;  %v7447_v60 = vld [vmem:[#allocation50_spill] sm:$0xff]  ;;  %v7449_v46 = vld [vmem:[#allocation49_spill] sm:$0xff] }
 0x3c9   : > { %v3072_v23 = vand.u32 2147483647, %v6640_v34  ;;  %v3074_v39 = vand.u32 2147483648, %v6640_v34  ;;  %v3088_v25 = vmul.f32 %v3087_v22, %v6543_v36  ;;  %v3430_v61 = vadd.f32 %v3429_v9, %v3374_v0  ;;  %v7450_v5 = vld [vmem:[#allocation61_spill] sm:$0xff] }
 0x3ca   : > { %v7441_v55 = vand.u32 2147483647, %v6450_v13  ;;  %v3037_v43 = vmul.f32 %v3036_v3, %v6612_v12  ;;  %3390 = vmatmul.f32.gmra.mxu1 %v3213_v18  ;;  %v2747_v20 = vadd.f32 %v3900_v28, %v2746_v63  ;;  %vm2748_vm0 = vweird.f32 %v6943_v21  ;;  %v3320_v13 = vpop.f32.mrf.mxu0  ;;  %v7453_v18 = vld [vmem:[#allocation38_spill] sm:$0xff]  ;;  %v7454_v9 = vld [vmem:[#allocation57_spill] sm:$0xff] }
 0x3cb   : > { %v3165_v27 = vadd.f32 1.0, %v3734_v33  ;;  %v3071_v48 = vsel %vm7000_vm15, %v6747_v42, %v3067_v10  ;;  %v3105_v12 = vsub.f32 1.0, %v3104_v57  ;;  %vm2750_vm1 = vmor %vm2748_vm0, %vm2749_vm11  ;;  %v2755_v45 = vor.u32 1.1754944e-38, %v2754_v4  ;;  %v7452_v33 = vld [vmem:[#allocation60_spill] sm:$0xff] }
 0x3cc   : > { %vm6991_vm14 = vcmp.eq.f32.partialorder %v7441_v55, 8.507059e+37  ;;  %v3486_v34 = vadd.f32 %v3485_v40, %v3430_v61  ;;  %v2751_v38 = vsel %vm2750_vm1, %v3900_v28, %v2747_v20  ;;  %vm2753_vm2 = vcmp.eq.f32.partialorder %v2752_v7, 8.507059e+37  ;;  %v7456_v20 = vld [vmem:[#allocation39_spill] sm:$0xff] }
 0x3cd   : > { %v3216_v19 = vmul.f32 %v3164_v49, %v7446_v15  ;;  %v3737_v47 = vclamps-f32 %v6622_v8, 1.0  ;;  %v3902_v21 = vpop.eup %3901  ;;  %vm3073_vm3 = vcmp.eq.f32.partialorder %v3072_v23, 8.507059e+37  ;;  %v3075_v6 = vor.u32 1.1754944e-38, %v3074_v39  ;;  %v3432_v52 = vpop.f32.mrf.mxu2 }
 0x3ce   : > { %v2756_v53 = vsel %vm2753_vm2, %v2755_v45, %v2751_v38  ;;  %v3595_v22 = vadd.f32 %v6654_v1, %v3486_v34  ;;  %v2784_v32 = vmul.f32 %v3902_v21, %v6976_v29  ;;  %v3217_v58 = vmul.f32 %v3165_v27, %v6358_v50  ;;  %v3379_v39 = vpop.f32.mrf.mxu1  ;;  %v7458_v38 = vld [vmem:[#allocation11_spill] sm:$0xff] }
 0x3cf   : > { %v2757_v42 = vmul.f32 %v2756_v53, %v6374_v11  ;;  %v3738_v26 = vclamps-f32 %v3037_v43, 1.0  ;;  %v3052_v28 = vmul.f32 %v6638_v59, %v6386_v62  ;;  %v3076_v3 = vsel %vm3073_vm3, %v3075_v6, %v3071_v48  ;;  %v3488_v11 = vpop.f32.mrf.mxu3  ;;  %v7455_v43 = vld [vmem:[#allocation63_spill] sm:$0xff] }
 0x3d0   : > { %v3089_v51 = vadd.f32 0.18741608, %v3088_v25  ;;  %v3377_v41 = vadd.f32 %v3376_v2, %v3320_v13  ;;  %3608 = vst [vmem:[%s6665_s11 + $0x20] sm:$0xff] %v3595_v22  ;;  %v3106_v8 = vmul.f32 %v6931_v54, %v3105_v12  ;;  %v2785_v24 = vsub.f32 1.0, %v2784_v32  ;;  %3337 = vmatmul.f32.gmra.mxu0 %v3216_v19  ;;  %v7457_v12 = vld [vmem:[#allocation59_spill] sm:$0xff] }
 0x3d1   : > { %v3731_v56 = vclamps-f32 %v2757_v42, 1.0  ;;  %v3168_v1 = vadd.f32 1.0, %v3737_v47  ;;  %v2792_v17 = vand.u32 2147483647, %v6976_v29  ;;  %v2794_v50 = vand.u32 2147483648, %v6976_v29 }
 0x3d2   : > { %v3735_v10 = vclamps-f32 %v7447_v60, 1.0  ;;  %v3433_v57 = vadd.f32 %v3432_v52, %v3377_v41  ;;  %v2786_v59 = vmul.f32 %v3902_v21, %v2785_v24  ;;  %vm2789_vm4 = vweird.f32 %v3902_v21  ;;  %3393 = vmatmul.f32.gmra.mxu1 %v3217_v58  ;;  %v3323_v23 = vpop.f32.mrf.mxu0  ;;  %v7461_v52 = vld [vmem:[#allocation42_spill] sm:$0xff]  ;;  %v7462_v60 = vld [vmem:[#allocation40_spill] sm:$0xff] }
 0x3d3   : > { %v3162_v62 = vadd.f32 1.0, %v3731_v56  ;;  %v3169_v37 = vadd.f32 1.0, %v3738_v26  ;;  %v7451_v14 = vsel %vm6599_vm10, %v7449_v46, %v7450_v5  ;;  %v3077_v7 = vmul.f32 %v3076_v3, %v3052_v28  ;;  %v7460_v56 = vld [vmem:[#allocation58_spill] sm:$0xff] }
 0x3d4   : > { %v2956_v0 = vsel %vm6991_vm14, %v7452_v33, %v7451_v14  ;;  %v3090_v4 = vmul.f32 %v3089_v51, %v6543_v36  ;;  %v3489_v16 = vadd.f32 %v3488_v11, %v3433_v57  ;;  %v2787_v49 = vadd.f32 %v3902_v21, %v2786_v59  ;;  %v7040_v36 = vld [vmem:[%s7088_s6] ss:$0 sm:$0xff] }
 0x3d5   : > { %v3214_v63 = vmul.f32 %v3162_v62, %v7453_v18  ;;  %vm2788_vm5 = vweird.f32 %v6976_v29  ;;  %v3220_v40 = vmul.f32 %v3168_v1, %v7454_v9  ;;  %v3107_v25 = vadd.f32 %v6931_v54, %v3106_v8  ;;  %v3435_v19 = vpop.f32.mrf.mxu2 }
 0x3d6   : > { %vm3109_vm10 = vweird.f32 %v6931_v54  ;;  %vm2790_vm6 = vmor %vm2788_vm5, %vm2789_vm4  ;;  %v2795_v61 = vor.u32 1.1754944e-38, %v2794_v50  ;;  %v3596_v55 = vadd.f32 %v7040_v36, %v3489_v16  ;;  %vm2793_vm7 = vcmp.eq.f32.partialorder %v2792_v17, 8.507059e+37 }
 0x3d7   : > { %3446 = vmatmul.f32.gmra.mxu2 %v3214_v63  ;;  %v2791_v29 = vsel %vm2790_vm6, %v3902_v21, %v2787_v49  ;;  %v3166_v31 = vadd.f32 1.0, %v3735_v10  ;;  %v3221_v44 = vmul.f32 %v3169_v37, %v7455_v43  ;;  %v982_v27 = vmul.f32 0.5, %v7456_v20  ;;  %v3491_v32 = vpop.f32.mrf.mxu3 }
 0x3d8   : > { %v3114_v13 = vand.u32 2147483648, %v6888_v35  ;;  %v2796_v2 = vsel %vm2793_vm7, %v2795_v61, %v2791_v29  ;;  %v3380_v48 = vadd.f32 %v3379_v39, %v3323_v23  ;;  %3609 = vst [vmem:[%s6665_s11 + $0x28] sm:$0xff] %v3596_v55  ;;  %v2957_v45 = vmul.f32 %v2956_v0, %v7457_v12  ;;  %3340 = vmatmul.f32.gmra.mxu0 %v3220_v40 }
 0x3d9   : > { %vm3108_vm8 = vweird.f32 %v6888_v35  ;;  %v3112_v34 = vand.u32 2147483647, %v6888_v35  ;;  %v2797_v15 = vmul.f32 %v2796_v2, %v7458_v38  ;;  %v3091_v47 = vadd.f32 1.1283791, %v3090_v4  ;;  %v7459_v35 = vld [vmem:[#allocation34_spill] sm:$0xff] }
 0x3da   : > { %vm3110_vm9 = vmor %vm3108_vm8, %vm3109_vm10  ;;  %v3436_v21 = vadd.f32 %v3435_v19, %v3380_v48  ;;  %v3218_v22 = vmul.f32 %v3166_v31, %v982_v27  ;;  %3396 = vmatmul.f32.gmra.mxu1 %v3221_v44  ;;  %v3739_v42 = vclamps-f32 %v3077_v7, 1.0  ;;  %v3115_v58 = vor.u32 1.1754944e-38, %v3114_v13 }
 0x3db   : > { %v3111_v6 = vsel %vm3110_vm9, %v6931_v54, %v3107_v25  ;;  %v3732_v53 = vclamps-f32 %v2797_v15, 1.0  ;;  %v979_v28 = vmul.f32 0.5, %v7459_v35  ;;  %vm3113_vm12 = vcmp.eq.f32.partialorder %v3112_v34, 8.507059e+37 }
 0x3dc   : > { %v3492_v26 = vadd.f32 %v3491_v32, %v3436_v21  ;;  %v3736_v51 = vclamps-f32 %v2957_v45, 1.0  ;;  %v3116_v41 = vsel %vm3113_vm12, %v3115_v58, %v3111_v6  ;;  %v3092_v24 = vmul.f32 %v3091_v47, %v7460_v56 }
 0x3dd   : > { %v3163_v3 = vadd.f32 1.0, %v3732_v53  ;;  %v3170_v54 = vadd.f32 1.0, %v3739_v42  ;;  %v986_v11 = vmul.f32 0.5, %v7461_v52  ;;  %v983_v10 = vmul.f32 0.5, %v7462_v60 }
 0x3de   : > { %v3597_v8 = vadd.f32 %v7040_v36, %v3492_v26  ;;  %v3117_v17 = vmul.f32 %v3116_v41, %v3092_v24  ;;  %v3167_v50 = vadd.f32 1.0, %v3736_v51  ;;  %v987_v46 = vmul.f32 0.5, %v7463_v30 }
 0x3df   : > { %v3215_v1 = vmul.f32 %v3163_v3, %v979_v28  ;;  %3449 = vmatmul.f32.gmra.mxu2 %v3218_v22  ;;  %v3222_v57 = vmul.f32 %v3170_v54, %v986_v11 }
 0x3e0   : > { %3610 = vst [vmem:[%s6665_s11 + $0x30] sm:$0xff] %v3597_v8  ;;  %v3219_v62 = vmul.f32 %v3167_v50, %v983_v10  ;;  %v3740_v59 = vclamps-f32 %v3117_v17, 1.0 }
 0x3e1   : > { %3502 = vmatmul.f32.gmra.mxu3 %v3215_v1 }
 0x3e2   : > { %v3171_v37 = vadd.f32 1.0, %v3740_v59 }
 0x3e4   : > { %v3223_v5 = vmul.f32 %v3171_v37, %v987_v46 }
 0x3e7   : > { %3452 = vmatmul.f32.gmra.mxu2 %v3222_v57 }
 0x3e9   : > { %3505 = vmatmul.f32.gmra.mxu3 %v3219_v62 }
 0x3ee   : > { %v3326_v14 = vpop.f32.mrf.mxu0 }
 0x3f1   : > { %3508 = vmatmul.f32.gmra.mxu3 %v3223_v5 }
 0x3f5   : > { %v3382_v33 = vpop.f32.mrf.mxu1 }
 0x3f6   : > { %v3383_v7 = vadd.f32 %v3382_v33, %v3326_v14 }
 0x402   : > { %v3438_v0 = vpop.f32.mrf.mxu2 }
 0x403   : > { %v3439_v4 = vadd.f32 %v3438_v0, %v3383_v7 }
 0x409   : > { %v3494_v16 = vpop.f32.mrf.mxu3 }
 0x40a   : > { %v3495_v18 = vadd.f32 %v3494_v16, %v3439_v4 }
 0x40c   : > { %v3598_v63 = vadd.f32 %v7040_v36, %v3495_v18 }
 0x40e   : > { %3611 = vst [vmem:[%s6665_s11 + $0x38] sm:$0xff] %v3598_v63 }
 0x410   : > { %v3329_v49 = vpop.f32.mrf.mxu0 }
 0x415   : > { %v3385_v9 = vpop.f32.mrf.mxu1 }
 0x416   : > { %v3386_v23 = vadd.f32 %v3385_v9, %v3329_v49 }
 0x41c   : > { %v3441_v40 = vpop.f32.mrf.mxu2 }
 0x41d   : > { %v3442_v39 = vadd.f32 %v3441_v40, %v3386_v23 }
 0x426   : > { %v3332_v29 = vpop.f32.mrf.mxu0 }
 0x428   : > { %v3497_v25 = vpop.f32.mrf.mxu3 }
 0x429   : > { %v3498_v61 = vadd.f32 %v3497_v25, %v3442_v39 }
 0x42b   : > { %v3599_v55 = vadd.f32 %v7040_v36, %v3498_v61 }
 0x42d   : > { %3612 = vst [vmem:[%s6665_s11 + $0x40] sm:$0xff] %v3599_v55 }
 0x42e   : > { %v3388_v31 = vpop.f32.mrf.mxu1 }
 0x42f   : > { %v3389_v44 = vadd.f32 %v3388_v31, %v3332_v29 }
 0x43e   : > { %v3444_v43 = vpop.f32.mrf.mxu2 }
 0x43f   : > { %v3445_v20 = vadd.f32 %v3444_v43, %v3389_v44 }
 0x445   : > { %v3335_v48 = vpop.f32.mrf.mxu0 }
 0x447   : > { %v3391_v12 = vpop.f32.mrf.mxu1 }
 0x448   : > { %v3500_v27 = vpop.f32.mrf.mxu3  ;;  %v3392_v34 = vadd.f32 %v3391_v12, %v3335_v48 }
 0x449   : > { %v3501_v13 = vadd.f32 %v3500_v27, %v3445_v20 }
 0x44b   : > { %v3600_v2 = vadd.f32 %v7040_v36, %v3501_v13 }
 0x44d   : > { %3613 = vst [vmem:[%s6665_s11 + $0x48] sm:$0xff] %v3600_v2  ;;  %v3338_v38 = vpop.f32.mrf.mxu0 }
 0x44f   : > { %v3394_v19 = vpop.f32.mrf.mxu1 }
 0x450   : > { %v3395_v53 = vadd.f32 %v3394_v19, %v3338_v38 }
 0x455   : > { %v3341_v32 = vpop.f32.mrf.mxu0 }
 0x457   : > { %v3397_v58 = vpop.f32.mrf.mxu1 }
 0x458   : > { %v3398_v3 = vadd.f32 %v3397_v58, %v3341_v32 }
 0x45a   : > { %v3447_v45 = vpop.f32.mrf.mxu2 }
 0x45b   : > { %v3448_v15 = vadd.f32 %v3447_v45, %v3392_v34 }
 0x462   : > { %v3450_v21 = vpop.f32.mrf.mxu2 }
 0x463   : > { %v3451_v42 = vadd.f32 %v3450_v21, %v3395_v53 }
 0x464   : > { %v3503_v47 = vpop.f32.mrf.mxu3 }
 0x465   : > { %v3504_v6 = vadd.f32 %v3503_v47, %v3448_v15 }
 0x467   : > { %v3601_v22 = vadd.f32 %v7040_v36, %v3504_v6 }
 0x469   : > { %3614 = vst [vmem:[%s6665_s11 + $0x50] sm:$0xff] %v3601_v22 }
 0x46a   : > { %v3453_v28 = vpop.f32.mrf.mxu2 }
 0x46b   : > { %v3454_v41 = vadd.f32 %v3453_v28, %v3398_v3 }
 0x46c   : > { %v3506_v26 = vpop.f32.mrf.mxu3 }
 0x46d   : > { %v3507_v35 = vadd.f32 %v3506_v26, %v3451_v42 }
 0x46f   : > { %v3602_v51 = vadd.f32 %v7040_v36, %v3507_v35 }
 0x471   : > { %3615 = vst [vmem:[%s6665_s11 + $0x58] sm:$0xff] %v3602_v51 }
 0x474   : > { %v3509_v8 = vpop.f32.mrf.mxu3 }
 0x475   : > { %v3510_v56 = vadd.f32 %v3509_v8, %v3454_v41 }
 0x477   : > { %v3603_v24 = vadd.f32 %v7040_v36, %v3510_v56 }
 0x479   : > { %3616 = vst [vmem:[%s6665_s11 + $0x60] sm:$0xff] %v3603_v24 }
 0x47a PF: > { %s17_s26 = sadd.s32 1, %s3928_s26   ;;  %s7464_s24 = smov %s3924_s25 }
 0x47b   : > { %p14_p5 = scmp.ge.s32.totalorder %s17_s26, 4   ;;  %s7465_s25 = smov %s7467_s27 }
 0x47d   :  { %16 = sbr.rel (!%p14_p5) target bundleno = 2 (0x2), region = 94 }

</bundles_post_ra>
